<compile_context>
chip_gen: v6e
topology: v6e:2x2x1
jax: 0.10.0
libtpu: 0.0.40
codegen_flags: <defaults>
</compile_context>

<pallas_src>
import jax
import jax.numpy as jnp
from jax import lax
from jax.experimental import pallas as pl
from jax.experimental.pallas import tpu as pltpu


# ----------------------------------------------------------------------------
# Fused Seq2Seq kernel (single invocation).
# ----------------------------------------------------------------------------
def seq2seq_kernel(src_ref, trg_ref,
                   e_wih_ref, e_whh_ref, e_b_ref,
                   d_wih_ref, d_whh_ref, d_b_ref,
                   wout_ref, bout_ref,
                   out_ref, hs_ref):
    S, B, _E = src_ref.shape
    Tm1 = trg_ref.shape[0]
    H = e_whh_ref.shape[1]
    Vp = out_ref.shape[1]

    # Hoist weight loads and bias broadcasts out of the recurrent loops
    # (JAX does not CSE broadcast_in_dim inside loops).
    e_w = tuple(e_wih_ref[g] for g in range(3))            # each (E, H)
    e_u = tuple(e_whh_ref[g] for g in range(3))            # each (H, H)
    e_b = tuple(jnp.broadcast_to(e_b_ref[g], (B, H)) for g in range(4))
    d_w = tuple(d_wih_ref[g] for g in range(3))
    d_u = tuple(d_whh_ref[g] for g in range(3))
    d_b = tuple(jnp.broadcast_to(d_b_ref[g], (B, H)) for g in range(4))

    def gru(x, h, w, u, b):
        # PyTorch GRU gate order (r, z, n); b = (b_r, b_z, b_in, b_hn) with
        # b_r / b_z pre-folded (b_ih + b_hh) outside the kernel.
        r = jax.nn.sigmoid(
            jnp.dot(x, w[0], preferred_element_type=jnp.float32)
            + jnp.dot(h, u[0], preferred_element_type=jnp.float32) + b[0])
        z = jax.nn.sigmoid(
            jnp.dot(x, w[1], preferred_element_type=jnp.float32)
            + jnp.dot(h, u[1], preferred_element_type=jnp.float32) + b[1])
        n = jnp.tanh(
            jnp.dot(x, w[2], preferred_element_type=jnp.float32) + b[2]
            + r * (jnp.dot(h, u[2], preferred_element_type=jnp.float32) + b[3]))
        return (1.0 - z) * n + z * h

    # ---- encoder recurrence: hidden state carried in vregs, no grid steps ----
    def enc_step(t, h):
        return gru(src_ref[t], h, e_w, e_u, e_b)

    h = lax.fori_loop(0, S, enc_step, jnp.zeros((B, H), jnp.float32),
                      unroll=True)

    # ---- decoder recurrence: record all hidden states into a (T-1)*B x H slab ----
    def dec_step(t, h):
        h = gru(trg_ref[t], h, d_w, d_u, d_b)
        row = pl.multiple_of(t * B, 8)        # B is a multiple of 8 (padded)
        hs_ref[pl.ds(row, B)] = h
        return h

    lax.fori_loop(0, Tm1, dec_step, h, unroll=True)

    # ---- one MXU-shaped fc_out over all timesteps (lane-dense Vp output) ----
    logits = (jnp.dot(hs_ref[...], wout_ref[...],
                      preferred_element_type=jnp.float32)
              + bout_ref[...])                              # ((T-1)*B, Vp)
    out_ref[pl.ds(0, B)] = jnp.zeros((B, Vp), jnp.float32)  # outputs[:, 0] == 0
    out_ref[pl.ds(B, Tm1 * B)] = logits


def run_seq2seq(src_emb, trg_emb, e_wih, e_whh, e_b, d_wih, d_whh, d_b,
                w_out, b_out):
    S, B, E = src_emb.shape
    Tm1 = trg_emb.shape[0]
    H = e_whh.shape[1]
    Vp = w_out.shape[1]
    T = Tm1 + 1

    def full(shape):
        nd = len(shape)
        return pl.BlockSpec(shape, lambda i: (0,) * nd)

    return pl.pallas_call(
        seq2seq_kernel,
        out_shape=jax.ShapeDtypeStruct((T * B, Vp), jnp.float32),
        grid_spec=pltpu.PrefetchScalarGridSpec(
            num_scalar_prefetch=0,
            grid=(1,),
            in_specs=[
                full((S, B, E)),          # src embeddings, time-major
                full((Tm1, B, E)),        # trg[:, :-1] embeddings, time-major
                full((3, E, H)),          # encoder W_ih (gate-stacked r,z,n)
                full((3, H, H)),          # encoder W_hh
                full((4, 1, H)),          # encoder biases (b_r, b_z, b_in, b_hn)
                full((3, E, H)),          # decoder W_ih
                full((3, H, H)),          # decoder W_hh
                full((4, 1, H)),          # decoder biases
                full((H, Vp)),            # fc_out weight (V padded to 128 lanes)
                full((1, Vp)),            # fc_out bias
            ],
            out_specs=full((T * B, Vp)),
            scratch_shapes=[pltpu.VMEM((Tm1 * B, H), jnp.float32)],
        ),
        compiler_params=pltpu.CompilerParams(
            dimension_semantics=("arbitrary",)),
    )(src_emb, trg_emb, e_wih, e_whh, e_b, d_wih, d_whh, d_b, w_out, b_out)


# ----------------------------------------------------------------------------
# Seq2Seq wrapper (parameter setup + embedding gather are plain-JAX glue).
# ----------------------------------------------------------------------------
class Seq2SeqPallas:
    def __init__(self, key, src_vocab, trg_vocab, emb_dim, hidden_dim):
        self.E, self.H, self.V = emb_dim, hidden_dim, trg_vocab
        bnd = 1.0 / float(hidden_dim) ** 0.5
        ks = jax.random.split(key, 10)
        u = lambda k, shape: jax.random.uniform(k, shape, jnp.float32, -bnd, bnd)
        # embeddings
        self.enc_emb = jax.random.normal(ks[0], (src_vocab, emb_dim), jnp.float32)
        self.dec_emb = jax.random.normal(ks[1], (trg_vocab, emb_dim), jnp.float32)
        # encoder GRU, gate-stacked [r, z, n]; biases [b_r, b_z, b_in, b_hn]
        # (b_r / b_z are the folded b_ih + b_hh reparametrization)
        self.e_wih = u(ks[2], (3, emb_dim, hidden_dim))
        self.e_whh = u(ks[3], (3, hidden_dim, hidden_dim))
        self.e_b = u(ks[4], (4, 1, hidden_dim))
        # decoder GRU
        self.d_wih = u(ks[5], (3, emb_dim, hidden_dim))
        self.d_whh = u(ks[6], (3, hidden_dim, hidden_dim))
        self.d_b = u(ks[7], (4, 1, hidden_dim))
        # fc_out
        self.w_out = u(ks[8], (hidden_dim, trg_vocab))
        self.b_out = u(ks[9], (1, trg_vocab))

    def forward(self, src, trg, teacher_forcing_ratio=1.0):
        # src: (B, S) int32 token ids, trg: (B, T) int32 token ids
        assert teacher_forcing_ratio >= 1.0, "only deterministic TF=1.0 supported"
        B, S = src.shape
        T = trg.shape[1]
        Bp = ((B + 7) // 8) * 8                # pad batch (sublane) dim to >= 8
        Vp = ((self.V + 127) // 128) * 128     # pad vocab to lane-dense multiple of 128

        # Time-major gathers (no separate activation transpose pass).
        src_emb = self.enc_emb[src.T]                 # (S, B, E)
        trg_emb = self.dec_emb[trg[:, :T - 1].T]      # (T-1, B, E)
        if Bp != B:
            pad = ((0, 0), (0, Bp - B), (0, 0))
            src_emb = jnp.pad(src_emb, pad)
            trg_emb = jnp.pad(trg_emb, pad)
        w_out = jnp.pad(self.w_out, ((0, 0), (0, Vp - self.V)))
        b_out = jnp.pad(self.b_out, ((0, 0), (0, Vp - self.V)))

        out_flat = run_seq2seq(src_emb, trg_emb,
                               self.e_wih, self.e_whh, self.e_b,
                               self.d_wih, self.d_whh, self.d_b,
                               w_out, b_out)          # (T*Bp, Vp)
        out = out_flat.reshape(T, Bp, Vp)[:, :B, :self.V]
        return jnp.transpose(out, (1, 0, 2))          # (B, T, V)


# ----------------------------------------------------------------------------
# Pure-JAX reference (mirrors the PyTorch forward with teacher forcing = 1.0).
# ----------------------------------------------------------------------------
def ref_forward(m: Seq2SeqPallas, src, trg):
    B, T = trg.shape

    def gru(x, h, w, u, b):
        r = jax.nn.sigmoid(x @ w[0] + h @ u[0] + b[0])
        z = jax.nn.sigmoid(x @ w[1] + h @ u[1] + b[1])
        n = jnp.tanh(x @ w[2] + b[2] + r * (h @ u[2] + b[3]))
        return (1.0 - z) * n + z * h

    h = jnp.zeros((B, m.H), jnp.float32)
    for t in range(src.shape[1]):
        h = gru(m.enc_emb[src[:, t]], h, m.e_wih, m.e_whh, m.e_b)
    outputs = [jnp.zeros((B, m.V), jnp.float32)]
    for t in range(1, T):
        x = m.dec_emb[trg[:, t - 1]]
        h = gru(x, h, m.d_wih, m.d_whh, m.d_b)
        outputs.append(h @ m.w_out + m.b_out)
    return jnp.stack(outputs, axis=1)


if __name__ == "__main__":
    key = jax.random.PRNGKey(0)
    k_model, k_src, k_trg = jax.random.split(key, 3)

    B, S, T = 2, 10, 8
    SRC_VOCAB, TRG_VOCAB, E, H = 20, 16, 32, 32

    model = Seq2SeqPallas(k_model, SRC_VOCAB, TRG_VOCAB, E, H)
    src = jax.random.randint(k_src, (B, S), 0, SRC_VOCAB, dtype=jnp.int32)
    trg = jax.random.randint(k_trg, (B, T), 0, TRG_VOCAB, dtype=jnp.int32)

    out = jax.block_until_ready(model.forward(src, trg, teacher_forcing_ratio=1.0))
    ref = jax.block_until_ready(ref_forward(model, src, trg))

    assert out.shape == (B, T, TRG_VOCAB) and out.dtype == jnp.float32
    assert jnp.allclose(out, ref, atol=1e-4, rtol=1e-4), "mismatch vs reference"
    print("KERNEL_OK")
</pallas_src>

<mosaic_0001>
module attributes {stable_mosaic.version = 11 : i64} {
  func.func @seq2seq_kernel(%arg0: i32, %arg1: memref<10x8x32xf32, #tpu.memory_space<vmem>>, %arg2: memref<7x8x32xf32, #tpu.memory_space<vmem>>, %arg3: memref<3x32x32xf32, #tpu.memory_space<vmem>>, %arg4: memref<3x32x32xf32, #tpu.memory_space<vmem>>, %arg5: memref<4x1x32xf32, #tpu.memory_space<vmem>>, %arg6: memref<3x32x32xf32, #tpu.memory_space<vmem>>, %arg7: memref<3x32x32xf32, #tpu.memory_space<vmem>>, %arg8: memref<4x1x32xf32, #tpu.memory_space<vmem>>, %arg9: memref<32x128xf32, #tpu.memory_space<vmem>>, %arg10: memref<1x128xf32, #tpu.memory_space<vmem>>, %arg11: memref<64x128xf32, #tpu.memory_space<vmem>>, %arg12: memref<56x32xf32, #tpu.memory_space<vmem>>) attributes {dimension_semantics = [#tpu.dimension_semantics<arbitrary>], iteration_bounds = array<i64: 1>, scalar_prefetch = 0 : i64, scratch_operands = 1 : i64, tpu.core_type = #tpu.core_type<tc>, window_params = [{pipeline_mode = #tpu.pipeline_mode<synchronous>, transform_indices = @transform_0, window_bounds = array<i64: 10, 8, 32>}, {pipeline_mode = #tpu.pipeline_mode<synchronous>, transform_indices = @transform_1, window_bounds = array<i64: 7, 8, 32>}, {pipeline_mode = #tpu.pipeline_mode<synchronous>, transform_indices = @transform_2, window_bounds = array<i64: 3, 32, 32>}, {pipeline_mode = #tpu.pipeline_mode<synchronous>, transform_indices = @transform_3, window_bounds = array<i64: 3, 32, 32>}, {pipeline_mode = #tpu.pipeline_mode<synchronous>, transform_indices = @transform_4, window_bounds = array<i64: 4, 1, 32>}, {pipeline_mode = #tpu.pipeline_mode<synchronous>, transform_indices = @transform_5, window_bounds = array<i64: 3, 32, 32>}, {pipeline_mode = #tpu.pipeline_mode<synchronous>, transform_indices = @transform_6, window_bounds = array<i64: 3, 32, 32>}, {pipeline_mode = #tpu.pipeline_mode<synchronous>, transform_indices = @transform_7, window_bounds = array<i64: 4, 1, 32>}, {pipeline_mode = #tpu.pipeline_mode<synchronous>, transform_indices = @transform_8, window_bounds = array<i64: 32, 128>}, {pipeline_mode = #tpu.pipeline_mode<synchronous>, transform_indices = @transform_9, window_bounds = array<i64: 1, 128>}, {pipeline_mode = #tpu.pipeline_mode<synchronous>, transform_indices = @transform_10, window_bounds = array<i64: 64, 128>}]} {
    %c0 = arith.constant 0 : index
    %c0_0 = arith.constant 0 : index
    %c0_1 = arith.constant 0 : index
    %0 = vector.load %arg3[%c0, %c0_0, %c0_1] : memref<3x32x32xf32, #tpu.memory_space<vmem>>, vector<1x32x32xf32>
    %1 = vector.shape_cast %0 : vector<1x32x32xf32> to vector<32x32xf32>
    %c1 = arith.constant 1 : index
    %c0_2 = arith.constant 0 : index
    %c0_3 = arith.constant 0 : index
    %2 = vector.load %arg3[%c1, %c0_2, %c0_3] : memref<3x32x32xf32, #tpu.memory_space<vmem>>, vector<1x32x32xf32>
    %3 = vector.shape_cast %2 : vector<1x32x32xf32> to vector<32x32xf32>
    %c2 = arith.constant 2 : index
    %c0_4 = arith.constant 0 : index
    %c0_5 = arith.constant 0 : index
    %4 = vector.load %arg3[%c2, %c0_4, %c0_5] : memref<3x32x32xf32, #tpu.memory_space<vmem>>, vector<1x32x32xf32>
    %5 = vector.shape_cast %4 : vector<1x32x32xf32> to vector<32x32xf32>
    %c0_6 = arith.constant 0 : index
    %c0_7 = arith.constant 0 : index
    %c0_8 = arith.constant 0 : index
    %6 = vector.load %arg4[%c0_6, %c0_7, %c0_8] : memref<3x32x32xf32, #tpu.memory_space<vmem>>, vector<1x32x32xf32>
    %7 = vector.shape_cast %6 : vector<1x32x32xf32> to vector<32x32xf32>
    %c1_9 = arith.constant 1 : index
    %c0_10 = arith.constant 0 : index
    %c0_11 = arith.constant 0 : index
    %8 = vector.load %arg4[%c1_9, %c0_10, %c0_11] : memref<3x32x32xf32, #tpu.memory_space<vmem>>, vector<1x32x32xf32>
    %9 = vector.shape_cast %8 : vector<1x32x32xf32> to vector<32x32xf32>
    %c2_12 = arith.constant 2 : index
    %c0_13 = arith.constant 0 : index
    %c0_14 = arith.constant 0 : index
    %10 = vector.load %arg4[%c2_12, %c0_13, %c0_14] : memref<3x32x32xf32, #tpu.memory_space<vmem>>, vector<1x32x32xf32>
    %11 = vector.shape_cast %10 : vector<1x32x32xf32> to vector<32x32xf32>
    %c0_15 = arith.constant 0 : index
    %c0_16 = arith.constant 0 : index
    %c0_17 = arith.constant 0 : index
    %12 = vector.load %arg5[%c0_15, %c0_16, %c0_17] : memref<4x1x32xf32, #tpu.memory_space<vmem>>, vector<1x1x32xf32>
    %13 = vector.shape_cast %12 : vector<1x1x32xf32> to vector<1x32xf32>
    %14 = vector.shape_cast %13 : vector<1x32xf32> to vector<1x32xf32>
    %15 = vector.broadcast %14 : vector<1x32xf32> to vector<8x32xf32>
    %c1_18 = arith.constant 1 : index
    %c0_19 = arith.constant 0 : index
    %c0_20 = arith.constant 0 : index
    %16 = vector.load %arg5[%c1_18, %c0_19, %c0_20] : memref<4x1x32xf32, #tpu.memory_space<vmem>>, vector<1x1x32xf32>
    %17 = vector.shape_cast %16 : vector<1x1x32xf32> to vector<1x32xf32>
    %18 = vector.shape_cast %17 : vector<1x32xf32> to vector<1x32xf32>
    %19 = vector.broadcast %18 : vector<1x32xf32> to vector<8x32xf32>
    %c2_21 = arith.constant 2 : index
    %c0_22 = arith.constant 0 : index
    %c0_23 = arith.constant 0 : index
    %20 = vector.load %arg5[%c2_21, %c0_22, %c0_23] : memref<4x1x32xf32, #tpu.memory_space<vmem>>, vector<1x1x32xf32>
    %21 = vector.shape_cast %20 : vector<1x1x32xf32> to vector<1x32xf32>
    %22 = vector.shape_cast %21 : vector<1x32xf32> to vector<1x32xf32>
    %23 = vector.broadcast %22 : vector<1x32xf32> to vector<8x32xf32>
    %c3 = arith.constant 3 : index
    %c0_24 = arith.constant 0 : index
    %c0_25 = arith.constant 0 : index
    %24 = vector.load %arg5[%c3, %c0_24, %c0_25] : memref<4x1x32xf32, #tpu.memory_space<vmem>>, vector<1x1x32xf32>
    %25 = vector.shape_cast %24 : vector<1x1x32xf32> to vector<1x32xf32>
    %26 = vector.shape_cast %25 : vector<1x32xf32> to vector<1x32xf32>
    %27 = vector.broadcast %26 : vector<1x32xf32> to vector<8x32xf32>
    %c0_26 = arith.constant 0 : index
    %c0_27 = arith.constant 0 : index
    %c0_28 = arith.constant 0 : index
    %28 = vector.load %arg6[%c0_26, %c0_27, %c0_28] : memref<3x32x32xf32, #tpu.memory_space<vmem>>, vector<1x32x32xf32>
    %29 = vector.shape_cast %28 : vector<1x32x32xf32> to vector<32x32xf32>
    %c1_29 = arith.constant 1 : index
    %c0_30 = arith.constant 0 : index
    %c0_31 = arith.constant 0 : index
    %30 = vector.load %arg6[%c1_29, %c0_30, %c0_31] : memref<3x32x32xf32, #tpu.memory_space<vmem>>, vector<1x32x32xf32>
    %31 = vector.shape_cast %30 : vector<1x32x32xf32> to vector<32x32xf32>
    %c2_32 = arith.constant 2 : index
    %c0_33 = arith.constant 0 : index
    %c0_34 = arith.constant 0 : index
    %32 = vector.load %arg6[%c2_32, %c0_33, %c0_34] : memref<3x32x32xf32, #tpu.memory_space<vmem>>, vector<1x32x32xf32>
    %33 = vector.shape_cast %32 : vector<1x32x32xf32> to vector<32x32xf32>
    %c0_35 = arith.constant 0 : index
    %c0_36 = arith.constant 0 : index
    %c0_37 = arith.constant 0 : index
    %34 = vector.load %arg7[%c0_35, %c0_36, %c0_37] : memref<3x32x32xf32, #tpu.memory_space<vmem>>, vector<1x32x32xf32>
    %35 = vector.shape_cast %34 : vector<1x32x32xf32> to vector<32x32xf32>
    %c1_38 = arith.constant 1 : index
    %c0_39 = arith.constant 0 : index
    %c0_40 = arith.constant 0 : index
    %36 = vector.load %arg7[%c1_38, %c0_39, %c0_40] : memref<3x32x32xf32, #tpu.memory_space<vmem>>, vector<1x32x32xf32>
    %37 = vector.shape_cast %36 : vector<1x32x32xf32> to vector<32x32xf32>
    %c2_41 = arith.constant 2 : index
    %c0_42 = arith.constant 0 : index
    %c0_43 = arith.constant 0 : index
    %38 = vector.load %arg7[%c2_41, %c0_42, %c0_43] : memref<3x32x32xf32, #tpu.memory_space<vmem>>, vector<1x32x32xf32>
    %39 = vector.shape_cast %38 : vector<1x32x32xf32> to vector<32x32xf32>
    %c0_44 = arith.constant 0 : index
    %c0_45 = arith.constant 0 : index
    %c0_46 = arith.constant 0 : index
    %40 = vector.load %arg8[%c0_44, %c0_45, %c0_46] : memref<4x1x32xf32, #tpu.memory_space<vmem>>, vector<1x1x32xf32>
    %41 = vector.shape_cast %40 : vector<1x1x32xf32> to vector<1x32xf32>
    %42 = vector.shape_cast %41 : vector<1x32xf32> to vector<1x32xf32>
    %43 = vector.broadcast %42 : vector<1x32xf32> to vector<8x32xf32>
    %c1_47 = arith.constant 1 : index
    %c0_48 = arith.constant 0 : index
    %c0_49 = arith.constant 0 : index
    %44 = vector.load %arg8[%c1_47, %c0_48, %c0_49] : memref<4x1x32xf32, #tpu.memory_space<vmem>>, vector<1x1x32xf32>
    %45 = vector.shape_cast %44 : vector<1x1x32xf32> to vector<1x32xf32>
    %46 = vector.shape_cast %45 : vector<1x32xf32> to vector<1x32xf32>
    %47 = vector.broadcast %46 : vector<1x32xf32> to vector<8x32xf32>
    %c2_50 = arith.constant 2 : index
    %c0_51 = arith.constant 0 : index
    %c0_52 = arith.constant 0 : index
    %48 = vector.load %arg8[%c2_50, %c0_51, %c0_52] : memref<4x1x32xf32, #tpu.memory_space<vmem>>, vector<1x1x32xf32>
    %49 = vector.shape_cast %48 : vector<1x1x32xf32> to vector<1x32xf32>
    %50 = vector.shape_cast %49 : vector<1x32xf32> to vector<1x32xf32>
    %51 = vector.broadcast %50 : vector<1x32xf32> to vector<8x32xf32>
    %c3_53 = arith.constant 3 : index
    %c0_54 = arith.constant 0 : index
    %c0_55 = arith.constant 0 : index
    %52 = vector.load %arg8[%c3_53, %c0_54, %c0_55] : memref<4x1x32xf32, #tpu.memory_space<vmem>>, vector<1x1x32xf32>
    %53 = vector.shape_cast %52 : vector<1x1x32xf32> to vector<1x32xf32>
    %54 = vector.shape_cast %53 : vector<1x32xf32> to vector<1x32xf32>
    %55 = vector.broadcast %54 : vector<1x32xf32> to vector<8x32xf32>
    %cst = arith.constant 0.000000e+00 : f32
    %56 = vector.broadcast %cst : f32 to vector<8x32xf32>
    %c0_i32 = arith.constant 0 : i32
    %57 = arith.index_cast %c0_i32 : i32 to index
    %c0_56 = arith.constant 0 : index
    %c0_57 = arith.constant 0 : index
    %58 = vector.load %arg1[%57, %c0_56, %c0_57] : memref<10x8x32xf32, #tpu.memory_space<vmem>>, vector<1x8x32xf32>
    %59 = vector.shape_cast %58 : vector<1x8x32xf32> to vector<8x32xf32>
    %cst_58 = arith.constant dense<0.000000e+00> : vector<8x32xf32>
    %60 = tpu.matmul %59, %1, %cst_58 {dimension_numbers = #tpu.dot_dimension_numbers<[1], [0], [0], [1], [0, 0, 1, 1], [], []>} : vector<8x32xf32>, vector<32x32xf32>, vector<8x32xf32> -> vector<8x32xf32>
    %cst_59 = arith.constant dense<0.000000e+00> : vector<8x32xf32>
    %61 = tpu.matmul %56, %7, %cst_59 {dimension_numbers = #tpu.dot_dimension_numbers<[1], [0], [0], [1], [0, 0, 1, 1], [], []>} : vector<8x32xf32>, vector<32x32xf32>, vector<8x32xf32> -> vector<8x32xf32>
    %62 = arith.addf %60, %61 : vector<8x32xf32>
    %63 = arith.addf %62, %15 : vector<8x32xf32>
    %64 = arith.negf %63 : vector<8x32xf32>
    %65 = math.exp %64 : vector<8x32xf32>
    %cst_60 = arith.constant 1.000000e+00 : f32
    %66 = vector.broadcast %cst_60 : f32 to vector<8x32xf32>
    %67 = arith.addf %66, %65 : vector<8x32xf32>
    %68 = arith.divf %66, %67 : vector<8x32xf32>
    %cst_61 = arith.constant dense<0.000000e+00> : vector<8x32xf32>
    %69 = tpu.matmul %59, %3, %cst_61 {dimension_numbers = #tpu.dot_dimension_numbers<[1], [0], [0], [1], [0, 0, 1, 1], [], []>} : vector<8x32xf32>, vector<32x32xf32>, vector<8x32xf32> -> vector<8x32xf32>
    %cst_62 = arith.constant dense<0.000000e+00> : vector<8x32xf32>
    %70 = tpu.matmul %56, %9, %cst_62 {dimension_numbers = #tpu.dot_dimension_numbers<[1], [0], [0], [1], [0, 0, 1, 1], [], []>} : vector<8x32xf32>, vector<32x32xf32>, vector<8x32xf32> -> vector<8x32xf32>
    %71 = arith.addf %69, %70 : vector<8x32xf32>
    %72 = arith.addf %71, %19 : vector<8x32xf32>
    %73 = arith.negf %72 : vector<8x32xf32>
    %74 = math.exp %73 : vector<8x32xf32>
    %cst_63 = arith.constant 1.000000e+00 : f32
    %75 = vector.broadcast %cst_63 : f32 to vector<8x32xf32>
    %76 = arith.addf %75, %74 : vector<8x32xf32>
    %77 = arith.divf %75, %76 : vector<8x32xf32>
    %cst_64 = arith.constant dense<0.000000e+00> : vector<8x32xf32>
    %78 = tpu.matmul %59, %5, %cst_64 {dimension_numbers = #tpu.dot_dimension_numbers<[1], [0], [0], [1], [0, 0, 1, 1], [], []>} : vector<8x32xf32>, vector<32x32xf32>, vector<8x32xf32> -> vector<8x32xf32>
    %79 = arith.addf %78, %23 : vector<8x32xf32>
    %cst_65 = arith.constant dense<0.000000e+00> : vector<8x32xf32>
    %80 = tpu.matmul %56, %11, %cst_65 {dimension_numbers = #tpu.dot_dimension_numbers<[1], [0], [0], [1], [0, 0, 1, 1], [], []>} : vector<8x32xf32>, vector<32x32xf32>, vector<8x32xf32> -> vector<8x32xf32>
    %81 = arith.addf %80, %27 : vector<8x32xf32>
    %82 = arith.mulf %68, %81 : vector<8x32xf32>
    %83 = arith.addf %79, %82 : vector<8x32xf32>
    %84 = math.tanh %83 : vector<8x32xf32>
    %cst_66 = arith.constant 1.000000e+00 : f32
    %85 = vector.broadcast %cst_66 : f32 to vector<8x32xf32>
    %86 = arith.subf %85, %77 : vector<8x32xf32>
    %87 = arith.mulf %86, %84 : vector<8x32xf32>
    %88 = arith.mulf %77, %56 : vector<8x32xf32>
    %89 = arith.addf %87, %88 : vector<8x32xf32>
    %c1_i32 = arith.constant 1 : i32
    %90 = arith.index_cast %c1_i32 : i32 to index
    %c0_67 = arith.constant 0 : index
    %c0_68 = arith.constant 0 : index
    %91 = vector.load %arg1[%90, %c0_67, %c0_68] : memref<10x8x32xf32, #tpu.memory_space<vmem>>, vector<1x8x32xf32>
    %92 = vector.shape_cast %91 : vector<1x8x32xf32> to vector<8x32xf32>
    %cst_69 = arith.constant dense<0.000000e+00> : vector<8x32xf32>
    %93 = tpu.matmul %92, %1, %cst_69 {dimension_numbers = #tpu.dot_dimension_numbers<[1], [0], [0], [1], [0, 0, 1, 1], [], []>} : vector<8x32xf32>, vector<32x32xf32>, vector<8x32xf32> -> vector<8x32xf32>
    %cst_70 = arith.constant dense<0.000000e+00> : vector<8x32xf32>
    %94 = tpu.matmul %89, %7, %cst_70 {dimension_numbers = #tpu.dot_dimension_numbers<[1], [0], [0], [1], [0, 0, 1, 1], [], []>} : vector<8x32xf32>, vector<32x32xf32>, vector<8x32xf32> -> vector<8x32xf32>
    %95 = arith.addf %93, %94 : vector<8x32xf32>
    %96 = arith.addf %95, %15 : vector<8x32xf32>
    %97 = arith.negf %96 : vector<8x32xf32>
    %98 = math.exp %97 : vector<8x32xf32>
    %cst_71 = arith.constant 1.000000e+00 : f32
    %99 = vector.broadcast %cst_71 : f32 to vector<8x32xf32>
    %100 = arith.addf %99, %98 : vector<8x32xf32>
    %101 = arith.divf %99, %100 : vector<8x32xf32>
    %cst_72 = arith.constant dense<0.000000e+00> : vector<8x32xf32>
    %102 = tpu.matmul %92, %3, %cst_72 {dimension_numbers = #tpu.dot_dimension_numbers<[1], [0], [0], [1], [0, 0, 1, 1], [], []>} : vector<8x32xf32>, vector<32x32xf32>, vector<8x32xf32> -> vector<8x32xf32>
    %cst_73 = arith.constant dense<0.000000e+00> : vector<8x32xf32>
    %103 = tpu.matmul %89, %9, %cst_73 {dimension_numbers = #tpu.dot_dimension_numbers<[1], [0], [0], [1], [0, 0, 1, 1], [], []>} : vector<8x32xf32>, vector<32x32xf32>, vector<8x32xf32> -> vector<8x32xf32>
    %104 = arith.addf %102, %103 : vector<8x32xf32>
    %105 = arith.addf %104, %19 : vector<8x32xf32>
    %106 = arith.negf %105 : vector<8x32xf32>
    %107 = math.exp %106 : vector<8x32xf32>
    %cst_74 = arith.constant 1.000000e+00 : f32
    %108 = vector.broadcast %cst_74 : f32 to vector<8x32xf32>
    %109 = arith.addf %108, %107 : vector<8x32xf32>
    %110 = arith.divf %108, %109 : vector<8x32xf32>
    %cst_75 = arith.constant dense<0.000000e+00> : vector<8x32xf32>
    %111 = tpu.matmul %92, %5, %cst_75 {dimension_numbers = #tpu.dot_dimension_numbers<[1], [0], [0], [1], [0, 0, 1, 1], [], []>} : vector<8x32xf32>, vector<32x32xf32>, vector<8x32xf32> -> vector<8x32xf32>
    %112 = arith.addf %111, %23 : vector<8x32xf32>
    %cst_76 = arith.constant dense<0.000000e+00> : vector<8x32xf32>
    %113 = tpu.matmul %89, %11, %cst_76 {dimension_numbers = #tpu.dot_dimension_numbers<[1], [0], [0], [1], [0, 0, 1, 1], [], []>} : vector<8x32xf32>, vector<32x32xf32>, vector<8x32xf32> -> vector<8x32xf32>
    %114 = arith.addf %113, %27 : vector<8x32xf32>
    %115 = arith.mulf %101, %114 : vector<8x32xf32>
    %116 = arith.addf %112, %115 : vector<8x32xf32>
    %117 = math.tanh %116 : vector<8x32xf32>
    %cst_77 = arith.constant 1.000000e+00 : f32
    %118 = vector.broadcast %cst_77 : f32 to vector<8x32xf32>
    %119 = arith.subf %118, %110 : vector<8x32xf32>
    %120 = arith.mulf %119, %117 : vector<8x32xf32>
    %121 = arith.mulf %110, %89 : vector<8x32xf32>
    %122 = arith.addf %120, %121 : vector<8x32xf32>
    %c2_i32 = arith.constant 2 : i32
    %123 = arith.index_cast %c2_i32 : i32 to index
    %c0_78 = arith.constant 0 : index
    %c0_79 = arith.constant 0 : index
    %124 = vector.load %arg1[%123, %c0_78, %c0_79] : memref<10x8x32xf32, #tpu.memory_space<vmem>>, vector<1x8x32xf32>
    %125 = vector.shape_cast %124 : vector<1x8x32xf32> to vector<8x32xf32>
    %cst_80 = arith.constant dense<0.000000e+00> : vector<8x32xf32>
    %126 = tpu.matmul %125, %1, %cst_80 {dimension_numbers = #tpu.dot_dimension_numbers<[1], [0], [0], [1], [0, 0, 1, 1], [], []>} : vector<8x32xf32>, vector<32x32xf32>, vector<8x32xf32> -> vector<8x32xf32>
    %cst_81 = arith.constant dense<0.000000e+00> : vector<8x32xf32>
    %127 = tpu.matmul %122, %7, %cst_81 {dimension_numbers = #tpu.dot_dimension_numbers<[1], [0], [0], [1], [0, 0, 1, 1], [], []>} : vector<8x32xf32>, vector<32x32xf32>, vector<8x32xf32> -> vector<8x32xf32>
    %128 = arith.addf %126, %127 : vector<8x32xf32>
    %129 = arith.addf %128, %15 : vector<8x32xf32>
    %130 = arith.negf %129 : vector<8x32xf32>
    %131 = math.exp %130 : vector<8x32xf32>
    %cst_82 = arith.constant 1.000000e+00 : f32
    %132 = vector.broadcast %cst_82 : f32 to vector<8x32xf32>
    %133 = arith.addf %132, %131 : vector<8x32xf32>
    %134 = arith.divf %132, %133 : vector<8x32xf32>
    %cst_83 = arith.constant dense<0.000000e+00> : vector<8x32xf32>
    %135 = tpu.matmul %125, %3, %cst_83 {dimension_numbers = #tpu.dot_dimension_numbers<[1], [0], [0], [1], [0, 0, 1, 1], [], []>} : vector<8x32xf32>, vector<32x32xf32>, vector<8x32xf32> -> vector<8x32xf32>
    %cst_84 = arith.constant dense<0.000000e+00> : vector<8x32xf32>
    %136 = tpu.matmul %122, %9, %cst_84 {dimension_numbers = #tpu.dot_dimension_numbers<[1], [0], [0], [1], [0, 0, 1, 1], [], []>} : vector<8x32xf32>, vector<32x32xf32>, vector<8x32xf32> -> vector<8x32xf32>
    %137 = arith.addf %135, %136 : vector<8x32xf32>
    %138 = arith.addf %137, %19 : vector<8x32xf32>
    %139 = arith.negf %138 : vector<8x32xf32>
    %140 = math.exp %139 : vector<8x32xf32>
    %cst_85 = arith.constant 1.000000e+00 : f32
    %141 = vector.broadcast %cst_85 : f32 to vector<8x32xf32>
    %142 = arith.addf %141, %140 : vector<8x32xf32>
    %143 = arith.divf %141, %142 : vector<8x32xf32>
    %cst_86 = arith.constant dense<0.000000e+00> : vector<8x32xf32>
    %144 = tpu.matmul %125, %5, %cst_86 {dimension_numbers = #tpu.dot_dimension_numbers<[1], [0], [0], [1], [0, 0, 1, 1], [], []>} : vector<8x32xf32>, vector<32x32xf32>, vector<8x32xf32> -> vector<8x32xf32>
    %145 = arith.addf %144, %23 : vector<8x32xf32>
    %cst_87 = arith.constant dense<0.000000e+00> : vector<8x32xf32>
    %146 = tpu.matmul %122, %11, %cst_87 {dimension_numbers = #tpu.dot_dimension_numbers<[1], [0], [0], [1], [0, 0, 1, 1], [], []>} : vector<8x32xf32>, vector<32x32xf32>, vector<8x32xf32> -> vector<8x32xf32>
    %147 = arith.addf %146, %27 : vector<8x32xf32>
    %148 = arith.mulf %134, %147 : vector<8x32xf32>
    %149 = arith.addf %145, %148 : vector<8x32xf32>
    %150 = math.tanh %149 : vector<8x32xf32>
    %cst_88 = arith.constant 1.000000e+00 : f32
    %151 = vector.broadcast %cst_88 : f32 to vector<8x32xf32>
    %152 = arith.subf %151, %143 : vector<8x32xf32>
    %153 = arith.mulf %152, %150 : vector<8x32xf32>
    %154 = arith.mulf %143, %122 : vector<8x32xf32>
    %155 = arith.addf %153, %154 : vector<8x32xf32>
    %c3_i32 = arith.constant 3 : i32
    %156 = arith.index_cast %c3_i32 : i32 to index
    %c0_89 = arith.constant 0 : index
    %c0_90 = arith.constant 0 : index
    %157 = vector.load %arg1[%156, %c0_89, %c0_90] : memref<10x8x32xf32, #tpu.memory_space<vmem>>, vector<1x8x32xf32>
    %158 = vector.shape_cast %157 : vector<1x8x32xf32> to vector<8x32xf32>
    %cst_91 = arith.constant dense<0.000000e+00> : vector<8x32xf32>
    %159 = tpu.matmul %158, %1, %cst_91 {dimension_numbers = #tpu.dot_dimension_numbers<[1], [0], [0], [1], [0, 0, 1, 1], [], []>} : vector<8x32xf32>, vector<32x32xf32>, vector<8x32xf32> -> vector<8x32xf32>
    %cst_92 = arith.constant dense<0.000000e+00> : vector<8x32xf32>
    %160 = tpu.matmul %155, %7, %cst_92 {dimension_numbers = #tpu.dot_dimension_numbers<[1], [0], [0], [1], [0, 0, 1, 1], [], []>} : vector<8x32xf32>, vector<32x32xf32>, vector<8x32xf32> -> vector<8x32xf32>
    %161 = arith.addf %159, %160 : vector<8x32xf32>
    %162 = arith.addf %161, %15 : vector<8x32xf32>
    %163 = arith.negf %162 : vector<8x32xf32>
    %164 = math.exp %163 : vector<8x32xf32>
    %cst_93 = arith.constant 1.000000e+00 : f32
    %165 = vector.broadcast %cst_93 : f32 to vector<8x32xf32>
    %166 = arith.addf %165, %164 : vector<8x32xf32>
    %167 = arith.divf %165, %166 : vector<8x32xf32>
    %cst_94 = arith.constant dense<0.000000e+00> : vector<8x32xf32>
    %168 = tpu.matmul %158, %3, %cst_94 {dimension_numbers = #tpu.dot_dimension_numbers<[1], [0], [0], [1], [0, 0, 1, 1], [], []>} : vector<8x32xf32>, vector<32x32xf32>, vector<8x32xf32> -> vector<8x32xf32>
    %cst_95 = arith.constant dense<0.000000e+00> : vector<8x32xf32>
    %169 = tpu.matmul %155, %9, %cst_95 {dimension_numbers = #tpu.dot_dimension_numbers<[1], [0], [0], [1], [0, 0, 1, 1], [], []>} : vector<8x32xf32>, vector<32x32xf32>, vector<8x32xf32> -> vector<8x32xf32>
    %170 = arith.addf %168, %169 : vector<8x32xf32>
    %171 = arith.addf %170, %19 : vector<8x32xf32>
    %172 = arith.negf %171 : vector<8x32xf32>
    %173 = math.exp %172 : vector<8x32xf32>
    %cst_96 = arith.constant 1.000000e+00 : f32
    %174 = vector.broadcast %cst_96 : f32 to vector<8x32xf32>
    %175 = arith.addf %174, %173 : vector<8x32xf32>
    %176 = arith.divf %174, %175 : vector<8x32xf32>
    %cst_97 = arith.constant dense<0.000000e+00> : vector<8x32xf32>
    %177 = tpu.matmul %158, %5, %cst_97 {dimension_numbers = #tpu.dot_dimension_numbers<[1], [0], [0], [1], [0, 0, 1, 1], [], []>} : vector<8x32xf32>, vector<32x32xf32>, vector<8x32xf32> -> vector<8x32xf32>
    %178 = arith.addf %177, %23 : vector<8x32xf32>
    %cst_98 = arith.constant dense<0.000000e+00> : vector<8x32xf32>
    %179 = tpu.matmul %155, %11, %cst_98 {dimension_numbers = #tpu.dot_dimension_numbers<[1], [0], [0], [1], [0, 0, 1, 1], [], []>} : vector<8x32xf32>, vector<32x32xf32>, vector<8x32xf32> -> vector<8x32xf32>
    %180 = arith.addf %179, %27 : vector<8x32xf32>
    %181 = arith.mulf %167, %180 : vector<8x32xf32>
    %182 = arith.addf %178, %181 : vector<8x32xf32>
    %183 = math.tanh %182 : vector<8x32xf32>
    %cst_99 = arith.constant 1.000000e+00 : f32
    %184 = vector.broadcast %cst_99 : f32 to vector<8x32xf32>
    %185 = arith.subf %184, %176 : vector<8x32xf32>
    %186 = arith.mulf %185, %183 : vector<8x32xf32>
    %187 = arith.mulf %176, %155 : vector<8x32xf32>
    %188 = arith.addf %186, %187 : vector<8x32xf32>
    %c4_i32 = arith.constant 4 : i32
    %189 = arith.index_cast %c4_i32 : i32 to index
    %c0_100 = arith.constant 0 : index
    %c0_101 = arith.constant 0 : index
    %190 = vector.load %arg1[%189, %c0_100, %c0_101] : memref<10x8x32xf32, #tpu.memory_space<vmem>>, vector<1x8x32xf32>
    %191 = vector.shape_cast %190 : vector<1x8x32xf32> to vector<8x32xf32>
    %cst_102 = arith.constant dense<0.000000e+00> : vector<8x32xf32>
    %192 = tpu.matmul %191, %1, %cst_102 {dimension_numbers = #tpu.dot_dimension_numbers<[1], [0], [0], [1], [0, 0, 1, 1], [], []>} : vector<8x32xf32>, vector<32x32xf32>, vector<8x32xf32> -> vector<8x32xf32>
    %cst_103 = arith.constant dense<0.000000e+00> : vector<8x32xf32>
    %193 = tpu.matmul %188, %7, %cst_103 {dimension_numbers = #tpu.dot_dimension_numbers<[1], [0], [0], [1], [0, 0, 1, 1], [], []>} : vector<8x32xf32>, vector<32x32xf32>, vector<8x32xf32> -> vector<8x32xf32>
    %194 = arith.addf %192, %193 : vector<8x32xf32>
    %195 = arith.addf %194, %15 : vector<8x32xf32>
    %196 = arith.negf %195 : vector<8x32xf32>
    %197 = math.exp %196 : vector<8x32xf32>
    %cst_104 = arith.constant 1.000000e+00 : f32
    %198 = vector.broadcast %cst_104 : f32 to vector<8x32xf32>
    %199 = arith.addf %198, %197 : vector<8x32xf32>
    %200 = arith.divf %198, %199 : vector<8x32xf32>
    %cst_105 = arith.constant dense<0.000000e+00> : vector<8x32xf32>
    %201 = tpu.matmul %191, %3, %cst_105 {dimension_numbers = #tpu.dot_dimension_numbers<[1], [0], [0], [1], [0, 0, 1, 1], [], []>} : vector<8x32xf32>, vector<32x32xf32>, vector<8x32xf32> -> vector<8x32xf32>
    %cst_106 = arith.constant dense<0.000000e+00> : vector<8x32xf32>
    %202 = tpu.matmul %188, %9, %cst_106 {dimension_numbers = #tpu.dot_dimension_numbers<[1], [0], [0], [1], [0, 0, 1, 1], [], []>} : vector<8x32xf32>, vector<32x32xf32>, vector<8x32xf32> -> vector<8x32xf32>
    %203 = arith.addf %201, %202 : vector<8x32xf32>
    %204 = arith.addf %203, %19 : vector<8x32xf32>
    %205 = arith.negf %204 : vector<8x32xf32>
    %206 = math.exp %205 : vector<8x32xf32>
    %cst_107 = arith.constant 1.000000e+00 : f32
    %207 = vector.broadcast %cst_107 : f32 to vector<8x32xf32>
    %208 = arith.addf %207, %206 : vector<8x32xf32>
    %209 = arith.divf %207, %208 : vector<8x32xf32>
    %cst_108 = arith.constant dense<0.000000e+00> : vector<8x32xf32>
    %210 = tpu.matmul %191, %5, %cst_108 {dimension_numbers = #tpu.dot_dimension_numbers<[1], [0], [0], [1], [0, 0, 1, 1], [], []>} : vector<8x32xf32>, vector<32x32xf32>, vector<8x32xf32> -> vector<8x32xf32>
    %211 = arith.addf %210, %23 : vector<8x32xf32>
    %cst_109 = arith.constant dense<0.000000e+00> : vector<8x32xf32>
    %212 = tpu.matmul %188, %11, %cst_109 {dimension_numbers = #tpu.dot_dimension_numbers<[1], [0], [0], [1], [0, 0, 1, 1], [], []>} : vector<8x32xf32>, vector<32x32xf32>, vector<8x32xf32> -> vector<8x32xf32>
    %213 = arith.addf %212, %27 : vector<8x32xf32>
    %214 = arith.mulf %200, %213 : vector<8x32xf32>
    %215 = arith.addf %211, %214 : vector<8x32xf32>
    %216 = math.tanh %215 : vector<8x32xf32>
    %cst_110 = arith.constant 1.000000e+00 : f32
    %217 = vector.broadcast %cst_110 : f32 to vector<8x32xf32>
    %218 = arith.subf %217, %209 : vector<8x32xf32>
    %219 = arith.mulf %218, %216 : vector<8x32xf32>
    %220 = arith.mulf %209, %188 : vector<8x32xf32>
    %221 = arith.addf %219, %220 : vector<8x32xf32>
    %c5_i32 = arith.constant 5 : i32
    %222 = arith.index_cast %c5_i32 : i32 to index
    %c0_111 = arith.constant 0 : index
    %c0_112 = arith.constant 0 : index
    %223 = vector.load %arg1[%222, %c0_111, %c0_112] : memref<10x8x32xf32, #tpu.memory_space<vmem>>, vector<1x8x32xf32>
    %224 = vector.shape_cast %223 : vector<1x8x32xf32> to vector<8x32xf32>
    %cst_113 = arith.constant dense<0.000000e+00> : vector<8x32xf32>
    %225 = tpu.matmul %224, %1, %cst_113 {dimension_numbers = #tpu.dot_dimension_numbers<[1], [0], [0], [1], [0, 0, 1, 1], [], []>} : vector<8x32xf32>, vector<32x32xf32>, vector<8x32xf32> -> vector<8x32xf32>
    %cst_114 = arith.constant dense<0.000000e+00> : vector<8x32xf32>
    %226 = tpu.matmul %221, %7, %cst_114 {dimension_numbers = #tpu.dot_dimension_numbers<[1], [0], [0], [1], [0, 0, 1, 1], [], []>} : vector<8x32xf32>, vector<32x32xf32>, vector<8x32xf32> -> vector<8x32xf32>
    %227 = arith.addf %225, %226 : vector<8x32xf32>
    %228 = arith.addf %227, %15 : vector<8x32xf32>
    %229 = arith.negf %228 : vector<8x32xf32>
    %230 = math.exp %229 : vector<8x32xf32>
    %cst_115 = arith.constant 1.000000e+00 : f32
    %231 = vector.broadcast %cst_115 : f32 to vector<8x32xf32>
    %232 = arith.addf %231, %230 : vector<8x32xf32>
    %233 = arith.divf %231, %232 : vector<8x32xf32>
    %cst_116 = arith.constant dense<0.000000e+00> : vector<8x32xf32>
    %234 = tpu.matmul %224, %3, %cst_116 {dimension_numbers = #tpu.dot_dimension_numbers<[1], [0], [0], [1], [0, 0, 1, 1], [], []>} : vector<8x32xf32>, vector<32x32xf32>, vector<8x32xf32> -> vector<8x32xf32>
    %cst_117 = arith.constant dense<0.000000e+00> : vector<8x32xf32>
    %235 = tpu.matmul %221, %9, %cst_117 {dimension_numbers = #tpu.dot_dimension_numbers<[1], [0], [0], [1], [0, 0, 1, 1], [], []>} : vector<8x32xf32>, vector<32x32xf32>, vector<8x32xf32> -> vector<8x32xf32>
    %236 = arith.addf %234, %235 : vector<8x32xf32>
    %237 = arith.addf %236, %19 : vector<8x32xf32>
    %238 = arith.negf %237 : vector<8x32xf32>
    %239 = math.exp %238 : vector<8x32xf32>
    %cst_118 = arith.constant 1.000000e+00 : f32
    %240 = vector.broadcast %cst_118 : f32 to vector<8x32xf32>
    %241 = arith.addf %240, %239 : vector<8x32xf32>
    %242 = arith.divf %240, %241 : vector<8x32xf32>
    %cst_119 = arith.constant dense<0.000000e+00> : vector<8x32xf32>
    %243 = tpu.matmul %224, %5, %cst_119 {dimension_numbers = #tpu.dot_dimension_numbers<[1], [0], [0], [1], [0, 0, 1, 1], [], []>} : vector<8x32xf32>, vector<32x32xf32>, vector<8x32xf32> -> vector<8x32xf32>
    %244 = arith.addf %243, %23 : vector<8x32xf32>
    %cst_120 = arith.constant dense<0.000000e+00> : vector<8x32xf32>
    %245 = tpu.matmul %221, %11, %cst_120 {dimension_numbers = #tpu.dot_dimension_numbers<[1], [0], [0], [1], [0, 0, 1, 1], [], []>} : vector<8x32xf32>, vector<32x32xf32>, vector<8x32xf32> -> vector<8x32xf32>
    %246 = arith.addf %245, %27 : vector<8x32xf32>
    %247 = arith.mulf %233, %246 : vector<8x32xf32>
    %248 = arith.addf %244, %247 : vector<8x32xf32>
    %249 = math.tanh %248 : vector<8x32xf32>
    %cst_121 = arith.constant 1.000000e+00 : f32
    %250 = vector.broadcast %cst_121 : f32 to vector<8x32xf32>
    %251 = arith.subf %250, %242 : vector<8x32xf32>
    %252 = arith.mulf %251, %249 : vector<8x32xf32>
    %253 = arith.mulf %242, %221 : vector<8x32xf32>
    %254 = arith.addf %252, %253 : vector<8x32xf32>
    %c6_i32 = arith.constant 6 : i32
    %255 = arith.index_cast %c6_i32 : i32 to index
    %c0_122 = arith.constant 0 : index
    %c0_123 = arith.constant 0 : index
    %256 = vector.load %arg1[%255, %c0_122, %c0_123] : memref<10x8x32xf32, #tpu.memory_space<vmem>>, vector<1x8x32xf32>
    %257 = vector.shape_cast %256 : vector<1x8x32xf32> to vector<8x32xf32>
    %cst_124 = arith.constant dense<0.000000e+00> : vector<8x32xf32>
    %258 = tpu.matmul %257, %1, %cst_124 {dimension_numbers = #tpu.dot_dimension_numbers<[1], [0], [0], [1], [0, 0, 1, 1], [], []>} : vector<8x32xf32>, vector<32x32xf32>, vector<8x32xf32> -> vector<8x32xf32>
    %cst_125 = arith.constant dense<0.000000e+00> : vector<8x32xf32>
    %259 = tpu.matmul %254, %7, %cst_125 {dimension_numbers = #tpu.dot_dimension_numbers<[1], [0], [0], [1], [0, 0, 1, 1], [], []>} : vector<8x32xf32>, vector<32x32xf32>, vector<8x32xf32> -> vector<8x32xf32>
    %260 = arith.addf %258, %259 : vector<8x32xf32>
    %261 = arith.addf %260, %15 : vector<8x32xf32>
    %262 = arith.negf %261 : vector<8x32xf32>
    %263 = math.exp %262 : vector<8x32xf32>
    %cst_126 = arith.constant 1.000000e+00 : f32
    %264 = vector.broadcast %cst_126 : f32 to vector<8x32xf32>
    %265 = arith.addf %264, %263 : vector<8x32xf32>
    %266 = arith.divf %264, %265 : vector<8x32xf32>
    %cst_127 = arith.constant dense<0.000000e+00> : vector<8x32xf32>
    %267 = tpu.matmul %257, %3, %cst_127 {dimension_numbers = #tpu.dot_dimension_numbers<[1], [0], [0], [1], [0, 0, 1, 1], [], []>} : vector<8x32xf32>, vector<32x32xf32>, vector<8x32xf32> -> vector<8x32xf32>
    %cst_128 = arith.constant dense<0.000000e+00> : vector<8x32xf32>
    %268 = tpu.matmul %254, %9, %cst_128 {dimension_numbers = #tpu.dot_dimension_numbers<[1], [0], [0], [1], [0, 0, 1, 1], [], []>} : vector<8x32xf32>, vector<32x32xf32>, vector<8x32xf32> -> vector<8x32xf32>
    %269 = arith.addf %267, %268 : vector<8x32xf32>
    %270 = arith.addf %269, %19 : vector<8x32xf32>
    %271 = arith.negf %270 : vector<8x32xf32>
    %272 = math.exp %271 : vector<8x32xf32>
    %cst_129 = arith.constant 1.000000e+00 : f32
    %273 = vector.broadcast %cst_129 : f32 to vector<8x32xf32>
    %274 = arith.addf %273, %272 : vector<8x32xf32>
    %275 = arith.divf %273, %274 : vector<8x32xf32>
    %cst_130 = arith.constant dense<0.000000e+00> : vector<8x32xf32>
    %276 = tpu.matmul %257, %5, %cst_130 {dimension_numbers = #tpu.dot_dimension_numbers<[1], [0], [0], [1], [0, 0, 1, 1], [], []>} : vector<8x32xf32>, vector<32x32xf32>, vector<8x32xf32> -> vector<8x32xf32>
    %277 = arith.addf %276, %23 : vector<8x32xf32>
    %cst_131 = arith.constant dense<0.000000e+00> : vector<8x32xf32>
    %278 = tpu.matmul %254, %11, %cst_131 {dimension_numbers = #tpu.dot_dimension_numbers<[1], [0], [0], [1], [0, 0, 1, 1], [], []>} : vector<8x32xf32>, vector<32x32xf32>, vector<8x32xf32> -> vector<8x32xf32>
    %279 = arith.addf %278, %27 : vector<8x32xf32>
    %280 = arith.mulf %266, %279 : vector<8x32xf32>
    %281 = arith.addf %277, %280 : vector<8x32xf32>
    %282 = math.tanh %281 : vector<8x32xf32>
    %cst_132 = arith.constant 1.000000e+00 : f32
    %283 = vector.broadcast %cst_132 : f32 to vector<8x32xf32>
    %284 = arith.subf %283, %275 : vector<8x32xf32>
    %285 = arith.mulf %284, %282 : vector<8x32xf32>
    %286 = arith.mulf %275, %254 : vector<8x32xf32>
    %287 = arith.addf %285, %286 : vector<8x32xf32>
    %c7_i32 = arith.constant 7 : i32
    %288 = arith.index_cast %c7_i32 : i32 to index
    %c0_133 = arith.constant 0 : index
    %c0_134 = arith.constant 0 : index
    %289 = vector.load %arg1[%288, %c0_133, %c0_134] : memref<10x8x32xf32, #tpu.memory_space<vmem>>, vector<1x8x32xf32>
    %290 = vector.shape_cast %289 : vector<1x8x32xf32> to vector<8x32xf32>
    %cst_135 = arith.constant dense<0.000000e+00> : vector<8x32xf32>
    %291 = tpu.matmul %290, %1, %cst_135 {dimension_numbers = #tpu.dot_dimension_numbers<[1], [0], [0], [1], [0, 0, 1, 1], [], []>} : vector<8x32xf32>, vector<32x32xf32>, vector<8x32xf32> -> vector<8x32xf32>
    %cst_136 = arith.constant dense<0.000000e+00> : vector<8x32xf32>
    %292 = tpu.matmul %287, %7, %cst_136 {dimension_numbers = #tpu.dot_dimension_numbers<[1], [0], [0], [1], [0, 0, 1, 1], [], []>} : vector<8x32xf32>, vector<32x32xf32>, vector<8x32xf32> -> vector<8x32xf32>
    %293 = arith.addf %291, %292 : vector<8x32xf32>
    %294 = arith.addf %293, %15 : vector<8x32xf32>
    %295 = arith.negf %294 : vector<8x32xf32>
    %296 = math.exp %295 : vector<8x32xf32>
    %cst_137 = arith.constant 1.000000e+00 : f32
    %297 = vector.broadcast %cst_137 : f32 to vector<8x32xf32>
    %298 = arith.addf %297, %296 : vector<8x32xf32>
    %299 = arith.divf %297, %298 : vector<8x32xf32>
    %cst_138 = arith.constant dense<0.000000e+00> : vector<8x32xf32>
    %300 = tpu.matmul %290, %3, %cst_138 {dimension_numbers = #tpu.dot_dimension_numbers<[1], [0], [0], [1], [0, 0, 1, 1], [], []>} : vector<8x32xf32>, vector<32x32xf32>, vector<8x32xf32> -> vector<8x32xf32>
    %cst_139 = arith.constant dense<0.000000e+00> : vector<8x32xf32>
    %301 = tpu.matmul %287, %9, %cst_139 {dimension_numbers = #tpu.dot_dimension_numbers<[1], [0], [0], [1], [0, 0, 1, 1], [], []>} : vector<8x32xf32>, vector<32x32xf32>, vector<8x32xf32> -> vector<8x32xf32>
    %302 = arith.addf %300, %301 : vector<8x32xf32>
    %303 = arith.addf %302, %19 : vector<8x32xf32>
    %304 = arith.negf %303 : vector<8x32xf32>
    %305 = math.exp %304 : vector<8x32xf32>
    %cst_140 = arith.constant 1.000000e+00 : f32
    %306 = vector.broadcast %cst_140 : f32 to vector<8x32xf32>
    %307 = arith.addf %306, %305 : vector<8x32xf32>
    %308 = arith.divf %306, %307 : vector<8x32xf32>
    %cst_141 = arith.constant dense<0.000000e+00> : vector<8x32xf32>
    %309 = tpu.matmul %290, %5, %cst_141 {dimension_numbers = #tpu.dot_dimension_numbers<[1], [0], [0], [1], [0, 0, 1, 1], [], []>} : vector<8x32xf32>, vector<32x32xf32>, vector<8x32xf32> -> vector<8x32xf32>
    %310 = arith.addf %309, %23 : vector<8x32xf32>
    %cst_142 = arith.constant dense<0.000000e+00> : vector<8x32xf32>
    %311 = tpu.matmul %287, %11, %cst_142 {dimension_numbers = #tpu.dot_dimension_numbers<[1], [0], [0], [1], [0, 0, 1, 1], [], []>} : vector<8x32xf32>, vector<32x32xf32>, vector<8x32xf32> -> vector<8x32xf32>
    %312 = arith.addf %311, %27 : vector<8x32xf32>
    %313 = arith.mulf %299, %312 : vector<8x32xf32>
    %314 = arith.addf %310, %313 : vector<8x32xf32>
    %315 = math.tanh %314 : vector<8x32xf32>
    %cst_143 = arith.constant 1.000000e+00 : f32
    %316 = vector.broadcast %cst_143 : f32 to vector<8x32xf32>
    %317 = arith.subf %316, %308 : vector<8x32xf32>
    %318 = arith.mulf %317, %315 : vector<8x32xf32>
    %319 = arith.mulf %308, %287 : vector<8x32xf32>
    %320 = arith.addf %318, %319 : vector<8x32xf32>
    %c8_i32 = arith.constant 8 : i32
    %321 = arith.index_cast %c8_i32 : i32 to index
    %c0_144 = arith.constant 0 : index
    %c0_145 = arith.constant 0 : index
    %322 = vector.load %arg1[%321, %c0_144, %c0_145] : memref<10x8x32xf32, #tpu.memory_space<vmem>>, vector<1x8x32xf32>
    %323 = vector.shape_cast %322 : vector<1x8x32xf32> to vector<8x32xf32>
    %cst_146 = arith.constant dense<0.000000e+00> : vector<8x32xf32>
    %324 = tpu.matmul %323, %1, %cst_146 {dimension_numbers = #tpu.dot_dimension_numbers<[1], [0], [0], [1], [0, 0, 1, 1], [], []>} : vector<8x32xf32>, vector<32x32xf32>, vector<8x32xf32> -> vector<8x32xf32>
    %cst_147 = arith.constant dense<0.000000e+00> : vector<8x32xf32>
    %325 = tpu.matmul %320, %7, %cst_147 {dimension_numbers = #tpu.dot_dimension_numbers<[1], [0], [0], [1], [0, 0, 1, 1], [], []>} : vector<8x32xf32>, vector<32x32xf32>, vector<8x32xf32> -> vector<8x32xf32>
    %326 = arith.addf %324, %325 : vector<8x32xf32>
    %327 = arith.addf %326, %15 : vector<8x32xf32>
    %328 = arith.negf %327 : vector<8x32xf32>
    %329 = math.exp %328 : vector<8x32xf32>
    %cst_148 = arith.constant 1.000000e+00 : f32
    %330 = vector.broadcast %cst_148 : f32 to vector<8x32xf32>
    %331 = arith.addf %330, %329 : vector<8x32xf32>
    %332 = arith.divf %330, %331 : vector<8x32xf32>
    %cst_149 = arith.constant dense<0.000000e+00> : vector<8x32xf32>
    %333 = tpu.matmul %323, %3, %cst_149 {dimension_numbers = #tpu.dot_dimension_numbers<[1], [0], [0], [1], [0, 0, 1, 1], [], []>} : vector<8x32xf32>, vector<32x32xf32>, vector<8x32xf32> -> vector<8x32xf32>
    %cst_150 = arith.constant dense<0.000000e+00> : vector<8x32xf32>
    %334 = tpu.matmul %320, %9, %cst_150 {dimension_numbers = #tpu.dot_dimension_numbers<[1], [0], [0], [1], [0, 0, 1, 1], [], []>} : vector<8x32xf32>, vector<32x32xf32>, vector<8x32xf32> -> vector<8x32xf32>
    %335 = arith.addf %333, %334 : vector<8x32xf32>
    %336 = arith.addf %335, %19 : vector<8x32xf32>
    %337 = arith.negf %336 : vector<8x32xf32>
    %338 = math.exp %337 : vector<8x32xf32>
    %cst_151 = arith.constant 1.000000e+00 : f32
    %339 = vector.broadcast %cst_151 : f32 to vector<8x32xf32>
    %340 = arith.addf %339, %338 : vector<8x32xf32>
    %341 = arith.divf %339, %340 : vector<8x32xf32>
    %cst_152 = arith.constant dense<0.000000e+00> : vector<8x32xf32>
    %342 = tpu.matmul %323, %5, %cst_152 {dimension_numbers = #tpu.dot_dimension_numbers<[1], [0], [0], [1], [0, 0, 1, 1], [], []>} : vector<8x32xf32>, vector<32x32xf32>, vector<8x32xf32> -> vector<8x32xf32>
    %343 = arith.addf %342, %23 : vector<8x32xf32>
    %cst_153 = arith.constant dense<0.000000e+00> : vector<8x32xf32>
    %344 = tpu.matmul %320, %11, %cst_153 {dimension_numbers = #tpu.dot_dimension_numbers<[1], [0], [0], [1], [0, 0, 1, 1], [], []>} : vector<8x32xf32>, vector<32x32xf32>, vector<8x32xf32> -> vector<8x32xf32>
    %345 = arith.addf %344, %27 : vector<8x32xf32>
    %346 = arith.mulf %332, %345 : vector<8x32xf32>
    %347 = arith.addf %343, %346 : vector<8x32xf32>
    %348 = math.tanh %347 : vector<8x32xf32>
    %cst_154 = arith.constant 1.000000e+00 : f32
    %349 = vector.broadcast %cst_154 : f32 to vector<8x32xf32>
    %350 = arith.subf %349, %341 : vector<8x32xf32>
    %351 = arith.mulf %350, %348 : vector<8x32xf32>
    %352 = arith.mulf %341, %320 : vector<8x32xf32>
    %353 = arith.addf %351, %352 : vector<8x32xf32>
    %c9_i32 = arith.constant 9 : i32
    %354 = arith.index_cast %c9_i32 : i32 to index
    %c0_155 = arith.constant 0 : index
    %c0_156 = arith.constant 0 : index
    %355 = vector.load %arg1[%354, %c0_155, %c0_156] : memref<10x8x32xf32, #tpu.memory_space<vmem>>, vector<1x8x32xf32>
    %356 = vector.shape_cast %355 : vector<1x8x32xf32> to vector<8x32xf32>
    %cst_157 = arith.constant dense<0.000000e+00> : vector<8x32xf32>
    %357 = tpu.matmul %356, %1, %cst_157 {dimension_numbers = #tpu.dot_dimension_numbers<[1], [0], [0], [1], [0, 0, 1, 1], [], []>} : vector<8x32xf32>, vector<32x32xf32>, vector<8x32xf32> -> vector<8x32xf32>
    %cst_158 = arith.constant dense<0.000000e+00> : vector<8x32xf32>
    %358 = tpu.matmul %353, %7, %cst_158 {dimension_numbers = #tpu.dot_dimension_numbers<[1], [0], [0], [1], [0, 0, 1, 1], [], []>} : vector<8x32xf32>, vector<32x32xf32>, vector<8x32xf32> -> vector<8x32xf32>
    %359 = arith.addf %357, %358 : vector<8x32xf32>
    %360 = arith.addf %359, %15 : vector<8x32xf32>
    %361 = arith.negf %360 : vector<8x32xf32>
    %362 = math.exp %361 : vector<8x32xf32>
    %cst_159 = arith.constant 1.000000e+00 : f32
    %363 = vector.broadcast %cst_159 : f32 to vector<8x32xf32>
    %364 = arith.addf %363, %362 : vector<8x32xf32>
    %365 = arith.divf %363, %364 : vector<8x32xf32>
    %cst_160 = arith.constant dense<0.000000e+00> : vector<8x32xf32>
    %366 = tpu.matmul %356, %3, %cst_160 {dimension_numbers = #tpu.dot_dimension_numbers<[1], [0], [0], [1], [0, 0, 1, 1], [], []>} : vector<8x32xf32>, vector<32x32xf32>, vector<8x32xf32> -> vector<8x32xf32>
    %cst_161 = arith.constant dense<0.000000e+00> : vector<8x32xf32>
    %367 = tpu.matmul %353, %9, %cst_161 {dimension_numbers = #tpu.dot_dimension_numbers<[1], [0], [0], [1], [0, 0, 1, 1], [], []>} : vector<8x32xf32>, vector<32x32xf32>, vector<8x32xf32> -> vector<8x32xf32>
    %368 = arith.addf %366, %367 : vector<8x32xf32>
    %369 = arith.addf %368, %19 : vector<8x32xf32>
    %370 = arith.negf %369 : vector<8x32xf32>
    %371 = math.exp %370 : vector<8x32xf32>
    %cst_162 = arith.constant 1.000000e+00 : f32
    %372 = vector.broadcast %cst_162 : f32 to vector<8x32xf32>
    %373 = arith.addf %372, %371 : vector<8x32xf32>
    %374 = arith.divf %372, %373 : vector<8x32xf32>
    %cst_163 = arith.constant dense<0.000000e+00> : vector<8x32xf32>
    %375 = tpu.matmul %356, %5, %cst_163 {dimension_numbers = #tpu.dot_dimension_numbers<[1], [0], [0], [1], [0, 0, 1, 1], [], []>} : vector<8x32xf32>, vector<32x32xf32>, vector<8x32xf32> -> vector<8x32xf32>
    %376 = arith.addf %375, %23 : vector<8x32xf32>
    %cst_164 = arith.constant dense<0.000000e+00> : vector<8x32xf32>
    %377 = tpu.matmul %353, %11, %cst_164 {dimension_numbers = #tpu.dot_dimension_numbers<[1], [0], [0], [1], [0, 0, 1, 1], [], []>} : vector<8x32xf32>, vector<32x32xf32>, vector<8x32xf32> -> vector<8x32xf32>
    %378 = arith.addf %377, %27 : vector<8x32xf32>
    %379 = arith.mulf %365, %378 : vector<8x32xf32>
    %380 = arith.addf %376, %379 : vector<8x32xf32>
    %381 = math.tanh %380 : vector<8x32xf32>
    %cst_165 = arith.constant 1.000000e+00 : f32
    %382 = vector.broadcast %cst_165 : f32 to vector<8x32xf32>
    %383 = arith.subf %382, %374 : vector<8x32xf32>
    %384 = arith.mulf %383, %381 : vector<8x32xf32>
    %385 = arith.mulf %374, %353 : vector<8x32xf32>
    %386 = arith.addf %384, %385 : vector<8x32xf32>
    %c10_i32 = arith.constant 10 : i32
    %c0_i32_166 = arith.constant 0 : i32
    %387 = arith.index_cast %c0_i32_166 : i32 to index
    %c0_167 = arith.constant 0 : index
    %c0_168 = arith.constant 0 : index
    %388 = vector.load %arg2[%387, %c0_167, %c0_168] : memref<7x8x32xf32, #tpu.memory_space<vmem>>, vector<1x8x32xf32>
    %389 = vector.shape_cast %388 : vector<1x8x32xf32> to vector<8x32xf32>
    %cst_169 = arith.constant dense<0.000000e+00> : vector<8x32xf32>
    %390 = tpu.matmul %389, %29, %cst_169 {dimension_numbers = #tpu.dot_dimension_numbers<[1], [0], [0], [1], [0, 0, 1, 1], [], []>} : vector<8x32xf32>, vector<32x32xf32>, vector<8x32xf32> -> vector<8x32xf32>
    %cst_170 = arith.constant dense<0.000000e+00> : vector<8x32xf32>
    %391 = tpu.matmul %386, %35, %cst_170 {dimension_numbers = #tpu.dot_dimension_numbers<[1], [0], [0], [1], [0, 0, 1, 1], [], []>} : vector<8x32xf32>, vector<32x32xf32>, vector<8x32xf32> -> vector<8x32xf32>
    %392 = arith.addf %390, %391 : vector<8x32xf32>
    %393 = arith.addf %392, %43 : vector<8x32xf32>
    %394 = arith.negf %393 : vector<8x32xf32>
    %395 = math.exp %394 : vector<8x32xf32>
    %cst_171 = arith.constant 1.000000e+00 : f32
    %396 = vector.broadcast %cst_171 : f32 to vector<8x32xf32>
    %397 = arith.addf %396, %395 : vector<8x32xf32>
    %398 = arith.divf %396, %397 : vector<8x32xf32>
    %cst_172 = arith.constant dense<0.000000e+00> : vector<8x32xf32>
    %399 = tpu.matmul %389, %31, %cst_172 {dimension_numbers = #tpu.dot_dimension_numbers<[1], [0], [0], [1], [0, 0, 1, 1], [], []>} : vector<8x32xf32>, vector<32x32xf32>, vector<8x32xf32> -> vector<8x32xf32>
    %cst_173 = arith.constant dense<0.000000e+00> : vector<8x32xf32>
    %400 = tpu.matmul %386, %37, %cst_173 {dimension_numbers = #tpu.dot_dimension_numbers<[1], [0], [0], [1], [0, 0, 1, 1], [], []>} : vector<8x32xf32>, vector<32x32xf32>, vector<8x32xf32> -> vector<8x32xf32>
    %401 = arith.addf %399, %400 : vector<8x32xf32>
    %402 = arith.addf %401, %47 : vector<8x32xf32>
    %403 = arith.negf %402 : vector<8x32xf32>
    %404 = math.exp %403 : vector<8x32xf32>
    %cst_174 = arith.constant 1.000000e+00 : f32
    %405 = vector.broadcast %cst_174 : f32 to vector<8x32xf32>
    %406 = arith.addf %405, %404 : vector<8x32xf32>
    %407 = arith.divf %405, %406 : vector<8x32xf32>
    %cst_175 = arith.constant dense<0.000000e+00> : vector<8x32xf32>
    %408 = tpu.matmul %389, %33, %cst_175 {dimension_numbers = #tpu.dot_dimension_numbers<[1], [0], [0], [1], [0, 0, 1, 1], [], []>} : vector<8x32xf32>, vector<32x32xf32>, vector<8x32xf32> -> vector<8x32xf32>
    %409 = arith.addf %408, %51 : vector<8x32xf32>
    %cst_176 = arith.constant dense<0.000000e+00> : vector<8x32xf32>
    %410 = tpu.matmul %386, %39, %cst_176 {dimension_numbers = #tpu.dot_dimension_numbers<[1], [0], [0], [1], [0, 0, 1, 1], [], []>} : vector<8x32xf32>, vector<32x32xf32>, vector<8x32xf32> -> vector<8x32xf32>
    %411 = arith.addf %410, %55 : vector<8x32xf32>
    %412 = arith.mulf %398, %411 : vector<8x32xf32>
    %413 = arith.addf %409, %412 : vector<8x32xf32>
    %414 = math.tanh %413 : vector<8x32xf32>
    %cst_177 = arith.constant 1.000000e+00 : f32
    %415 = vector.broadcast %cst_177 : f32 to vector<8x32xf32>
    %416 = arith.subf %415, %407 : vector<8x32xf32>
    %417 = arith.mulf %416, %414 : vector<8x32xf32>
    %418 = arith.mulf %407, %386 : vector<8x32xf32>
    %419 = arith.addf %417, %418 : vector<8x32xf32>
    %c8_i32_178 = arith.constant 8 : i32
    %420 = arith.muli %c0_i32_166, %c8_i32_178 : i32
    %421 = tpu.assume_multiple %420, 8 : i32
    %422 = arith.index_cast %421 : i32 to index
    %c0_179 = arith.constant 0 : index
    %423 = vector.load %arg12[%422, %c0_179] : memref<56x32xf32, #tpu.memory_space<vmem>>, vector<8x32xf32>
    tpu.vector_store %arg12[%422, %c0_179], %419 {strides = array<i32>} : memref<56x32xf32, #tpu.memory_space<vmem>>, vector<8x32xf32>,
    %c1_i32_180 = arith.constant 1 : i32
    %424 = arith.index_cast %c1_i32_180 : i32 to index
    %c0_181 = arith.constant 0 : index
    %c0_182 = arith.constant 0 : index
    %425 = vector.load %arg2[%424, %c0_181, %c0_182] : memref<7x8x32xf32, #tpu.memory_space<vmem>>, vector<1x8x32xf32>
    %426 = vector.shape_cast %425 : vector<1x8x32xf32> to vector<8x32xf32>
    %cst_183 = arith.constant dense<0.000000e+00> : vector<8x32xf32>
    %427 = tpu.matmul %426, %29, %cst_183 {dimension_numbers = #tpu.dot_dimension_numbers<[1], [0], [0], [1], [0, 0, 1, 1], [], []>} : vector<8x32xf32>, vector<32x32xf32>, vector<8x32xf32> -> vector<8x32xf32>
    %cst_184 = arith.constant dense<0.000000e+00> : vector<8x32xf32>
    %428 = tpu.matmul %419, %35, %cst_184 {dimension_numbers = #tpu.dot_dimension_numbers<[1], [0], [0], [1], [0, 0, 1, 1], [], []>} : vector<8x32xf32>, vector<32x32xf32>, vector<8x32xf32> -> vector<8x32xf32>
    %429 = arith.addf %427, %428 : vector<8x32xf32>
    %430 = arith.addf %429, %43 : vector<8x32xf32>
    %431 = arith.negf %430 : vector<8x32xf32>
    %432 = math.exp %431 : vector<8x32xf32>
    %cst_185 = arith.constant 1.000000e+00 : f32
    %433 = vector.broadcast %cst_185 : f32 to vector<8x32xf32>
    %434 = arith.addf %433, %432 : vector<8x32xf32>
    %435 = arith.divf %433, %434 : vector<8x32xf32>
    %cst_186 = arith.constant dense<0.000000e+00> : vector<8x32xf32>
    %436 = tpu.matmul %426, %31, %cst_186 {dimension_numbers = #tpu.dot_dimension_numbers<[1], [0], [0], [1], [0, 0, 1, 1], [], []>} : vector<8x32xf32>, vector<32x32xf32>, vector<8x32xf32> -> vector<8x32xf32>
    %cst_187 = arith.constant dense<0.000000e+00> : vector<8x32xf32>
    %437 = tpu.matmul %419, %37, %cst_187 {dimension_numbers = #tpu.dot_dimension_numbers<[1], [0], [0], [1], [0, 0, 1, 1], [], []>} : vector<8x32xf32>, vector<32x32xf32>, vector<8x32xf32> -> vector<8x32xf32>
    %438 = arith.addf %436, %437 : vector<8x32xf32>
    %439 = arith.addf %438, %47 : vector<8x32xf32>
    %440 = arith.negf %439 : vector<8x32xf32>
    %441 = math.exp %440 : vector<8x32xf32>
    %cst_188 = arith.constant 1.000000e+00 : f32
    %442 = vector.broadcast %cst_188 : f32 to vector<8x32xf32>
    %443 = arith.addf %442, %441 : vector<8x32xf32>
    %444 = arith.divf %442, %443 : vector<8x32xf32>
    %cst_189 = arith.constant dense<0.000000e+00> : vector<8x32xf32>
    %445 = tpu.matmul %426, %33, %cst_189 {dimension_numbers = #tpu.dot_dimension_numbers<[1], [0], [0], [1], [0, 0, 1, 1], [], []>} : vector<8x32xf32>, vector<32x32xf32>, vector<8x32xf32> -> vector<8x32xf32>
    %446 = arith.addf %445, %51 : vector<8x32xf32>
    %cst_190 = arith.constant dense<0.000000e+00> : vector<8x32xf32>
    %447 = tpu.matmul %419, %39, %cst_190 {dimension_numbers = #tpu.dot_dimension_numbers<[1], [0], [0], [1], [0, 0, 1, 1], [], []>} : vector<8x32xf32>, vector<32x32xf32>, vector<8x32xf32> -> vector<8x32xf32>
    %448 = arith.addf %447, %55 : vector<8x32xf32>
    %449 = arith.mulf %435, %448 : vector<8x32xf32>
    %450 = arith.addf %446, %449 : vector<8x32xf32>
    %451 = math.tanh %450 : vector<8x32xf32>
    %cst_191 = arith.constant 1.000000e+00 : f32
    %452 = vector.broadcast %cst_191 : f32 to vector<8x32xf32>
    %453 = arith.subf %452, %444 : vector<8x32xf32>
    %454 = arith.mulf %453, %451 : vector<8x32xf32>
    %455 = arith.mulf %444, %419 : vector<8x32xf32>
    %456 = arith.addf %454, %455 : vector<8x32xf32>
    %c8_i32_192 = arith.constant 8 : i32
    %457 = arith.muli %c1_i32_180, %c8_i32_192 : i32
    %458 = tpu.assume_multiple %457, 8 : i32
    %459 = arith.index_cast %458 : i32 to index
    %c0_193 = arith.constant 0 : index
    %460 = vector.load %arg12[%459, %c0_193] : memref<56x32xf32, #tpu.memory_space<vmem>>, vector<8x32xf32>
    tpu.vector_store %arg12[%459, %c0_193], %456 {strides = array<i32>} : memref<56x32xf32, #tpu.memory_space<vmem>>, vector<8x32xf32>,
    %c2_i32_194 = arith.constant 2 : i32
    %461 = arith.index_cast %c2_i32_194 : i32 to index
    %c0_195 = arith.constant 0 : index
    %c0_196 = arith.constant 0 : index
    %462 = vector.load %arg2[%461, %c0_195, %c0_196] : memref<7x8x32xf32, #tpu.memory_space<vmem>>, vector<1x8x32xf32>
    %463 = vector.shape_cast %462 : vector<1x8x32xf32> to vector<8x32xf32>
    %cst_197 = arith.constant dense<0.000000e+00> : vector<8x32xf32>
    %464 = tpu.matmul %463, %29, %cst_197 {dimension_numbers = #tpu.dot_dimension_numbers<[1], [0], [0], [1], [0, 0, 1, 1], [], []>} : vector<8x32xf32>, vector<32x32xf32>, vector<8x32xf32> -> vector<8x32xf32>
    %cst_198 = arith.constant dense<0.000000e+00> : vector<8x32xf32>
    %465 = tpu.matmul %456, %35, %cst_198 {dimension_numbers = #tpu.dot_dimension_numbers<[1], [0], [0], [1], [0, 0, 1, 1], [], []>} : vector<8x32xf32>, vector<32x32xf32>, vector<8x32xf32> -> vector<8x32xf32>
    %466 = arith.addf %464, %465 : vector<8x32xf32>
    %467 = arith.addf %466, %43 : vector<8x32xf32>
    %468 = arith.negf %467 : vector<8x32xf32>
    %469 = math.exp %468 : vector<8x32xf32>
    %cst_199 = arith.constant 1.000000e+00 : f32
    %470 = vector.broadcast %cst_199 : f32 to vector<8x32xf32>
    %471 = arith.addf %470, %469 : vector<8x32xf32>
    %472 = arith.divf %470, %471 : vector<8x32xf32>
    %cst_200 = arith.constant dense<0.000000e+00> : vector<8x32xf32>
    %473 = tpu.matmul %463, %31, %cst_200 {dimension_numbers = #tpu.dot_dimension_numbers<[1], [0], [0], [1], [0, 0, 1, 1], [], []>} : vector<8x32xf32>, vector<32x32xf32>, vector<8x32xf32> -> vector<8x32xf32>
    %cst_201 = arith.constant dense<0.000000e+00> : vector<8x32xf32>
    %474 = tpu.matmul %456, %37, %cst_201 {dimension_numbers = #tpu.dot_dimension_numbers<[1], [0], [0], [1], [0, 0, 1, 1], [], []>} : vector<8x32xf32>, vector<32x32xf32>, vector<8x32xf32> -> vector<8x32xf32>
    %475 = arith.addf %473, %474 : vector<8x32xf32>
    %476 = arith.addf %475, %47 : vector<8x32xf32>
    %477 = arith.negf %476 : vector<8x32xf32>
    %478 = math.exp %477 : vector<8x32xf32>
    %cst_202 = arith.constant 1.000000e+00 : f32
    %479 = vector.broadcast %cst_202 : f32 to vector<8x32xf32>
    %480 = arith.addf %479, %478 : vector<8x32xf32>
    %481 = arith.divf %479, %480 : vector<8x32xf32>
    %cst_203 = arith.constant dense<0.000000e+00> : vector<8x32xf32>
    %482 = tpu.matmul %463, %33, %cst_203 {dimension_numbers = #tpu.dot_dimension_numbers<[1], [0], [0], [1], [0, 0, 1, 1], [], []>} : vector<8x32xf32>, vector<32x32xf32>, vector<8x32xf32> -> vector<8x32xf32>
    %483 = arith.addf %482, %51 : vector<8x32xf32>
    %cst_204 = arith.constant dense<0.000000e+00> : vector<8x32xf32>
    %484 = tpu.matmul %456, %39, %cst_204 {dimension_numbers = #tpu.dot_dimension_numbers<[1], [0], [0], [1], [0, 0, 1, 1], [], []>} : vector<8x32xf32>, vector<32x32xf32>, vector<8x32xf32> -> vector<8x32xf32>
    %485 = arith.addf %484, %55 : vector<8x32xf32>
    %486 = arith.mulf %472, %485 : vector<8x32xf32>
    %487 = arith.addf %483, %486 : vector<8x32xf32>
    %488 = math.tanh %487 : vector<8x32xf32>
    %cst_205 = arith.constant 1.000000e+00 : f32
    %489 = vector.broadcast %cst_205 : f32 to vector<8x32xf32>
    %490 = arith.subf %489, %481 : vector<8x32xf32>
    %491 = arith.mulf %490, %488 : vector<8x32xf32>
    %492 = arith.mulf %481, %456 : vector<8x32xf32>
    %493 = arith.addf %491, %492 : vector<8x32xf32>
    %c8_i32_206 = arith.constant 8 : i32
    %494 = arith.muli %c2_i32_194, %c8_i32_206 : i32
    %495 = tpu.assume_multiple %494, 8 : i32
    %496 = arith.index_cast %495 : i32 to index
    %c0_207 = arith.constant 0 : index
    %497 = vector.load %arg12[%496, %c0_207] : memref<56x32xf32, #tpu.memory_space<vmem>>, vector<8x32xf32>
    tpu.vector_store %arg12[%496, %c0_207], %493 {strides = array<i32>} : memref<56x32xf32, #tpu.memory_space<vmem>>, vector<8x32xf32>,
    %c3_i32_208 = arith.constant 3 : i32
    %498 = arith.index_cast %c3_i32_208 : i32 to index
    %c0_209 = arith.constant 0 : index
    %c0_210 = arith.constant 0 : index
    %499 = vector.load %arg2[%498, %c0_209, %c0_210] : memref<7x8x32xf32, #tpu.memory_space<vmem>>, vector<1x8x32xf32>
    %500 = vector.shape_cast %499 : vector<1x8x32xf32> to vector<8x32xf32>
    %cst_211 = arith.constant dense<0.000000e+00> : vector<8x32xf32>
    %501 = tpu.matmul %500, %29, %cst_211 {dimension_numbers = #tpu.dot_dimension_numbers<[1], [0], [0], [1], [0, 0, 1, 1], [], []>} : vector<8x32xf32>, vector<32x32xf32>, vector<8x32xf32> -> vector<8x32xf32>
    %cst_212 = arith.constant dense<0.000000e+00> : vector<8x32xf32>
    %502 = tpu.matmul %493, %35, %cst_212 {dimension_numbers = #tpu.dot_dimension_numbers<[1], [0], [0], [1], [0, 0, 1, 1], [], []>} : vector<8x32xf32>, vector<32x32xf32>, vector<8x32xf32> -> vector<8x32xf32>
    %503 = arith.addf %501, %502 : vector<8x32xf32>
    %504 = arith.addf %503, %43 : vector<8x32xf32>
    %505 = arith.negf %504 : vector<8x32xf32>
    %506 = math.exp %505 : vector<8x32xf32>
    %cst_213 = arith.constant 1.000000e+00 : f32
    %507 = vector.broadcast %cst_213 : f32 to vector<8x32xf32>
    %508 = arith.addf %507, %506 : vector<8x32xf32>
    %509 = arith.divf %507, %508 : vector<8x32xf32>
    %cst_214 = arith.constant dense<0.000000e+00> : vector<8x32xf32>
    %510 = tpu.matmul %500, %31, %cst_214 {dimension_numbers = #tpu.dot_dimension_numbers<[1], [0], [0], [1], [0, 0, 1, 1], [], []>} : vector<8x32xf32>, vector<32x32xf32>, vector<8x32xf32> -> vector<8x32xf32>
    %cst_215 = arith.constant dense<0.000000e+00> : vector<8x32xf32>
    %511 = tpu.matmul %493, %37, %cst_215 {dimension_numbers = #tpu.dot_dimension_numbers<[1], [0], [0], [1], [0, 0, 1, 1], [], []>} : vector<8x32xf32>, vector<32x32xf32>, vector<8x32xf32> -> vector<8x32xf32>
    %512 = arith.addf %510, %511 : vector<8x32xf32>
    %513 = arith.addf %512, %47 : vector<8x32xf32>
    %514 = arith.negf %513 : vector<8x32xf32>
    %515 = math.exp %514 : vector<8x32xf32>
    %cst_216 = arith.constant 1.000000e+00 : f32
    %516 = vector.broadcast %cst_216 : f32 to vector<8x32xf32>
    %517 = arith.addf %516, %515 : vector<8x32xf32>
    %518 = arith.divf %516, %517 : vector<8x32xf32>
    %cst_217 = arith.constant dense<0.000000e+00> : vector<8x32xf32>
    %519 = tpu.matmul %500, %33, %cst_217 {dimension_numbers = #tpu.dot_dimension_numbers<[1], [0], [0], [1], [0, 0, 1, 1], [], []>} : vector<8x32xf32>, vector<32x32xf32>, vector<8x32xf32> -> vector<8x32xf32>
    %520 = arith.addf %519, %51 : vector<8x32xf32>
    %cst_218 = arith.constant dense<0.000000e+00> : vector<8x32xf32>
    %521 = tpu.matmul %493, %39, %cst_218 {dimension_numbers = #tpu.dot_dimension_numbers<[1], [0], [0], [1], [0, 0, 1, 1], [], []>} : vector<8x32xf32>, vector<32x32xf32>, vector<8x32xf32> -> vector<8x32xf32>
    %522 = arith.addf %521, %55 : vector<8x32xf32>
    %523 = arith.mulf %509, %522 : vector<8x32xf32>
    %524 = arith.addf %520, %523 : vector<8x32xf32>
    %525 = math.tanh %524 : vector<8x32xf32>
    %cst_219 = arith.constant 1.000000e+00 : f32
    %526 = vector.broadcast %cst_219 : f32 to vector<8x32xf32>
    %527 = arith.subf %526, %518 : vector<8x32xf32>
    %528 = arith.mulf %527, %525 : vector<8x32xf32>
    %529 = arith.mulf %518, %493 : vector<8x32xf32>
    %530 = arith.addf %528, %529 : vector<8x32xf32>
    %c8_i32_220 = arith.constant 8 : i32
    %531 = arith.muli %c3_i32_208, %c8_i32_220 : i32
    %532 = tpu.assume_multiple %531, 8 : i32
    %533 = arith.index_cast %532 : i32 to index
    %c0_221 = arith.constant 0 : index
    %534 = vector.load %arg12[%533, %c0_221] : memref<56x32xf32, #tpu.memory_space<vmem>>, vector<8x32xf32>
    tpu.vector_store %arg12[%533, %c0_221], %530 {strides = array<i32>} : memref<56x32xf32, #tpu.memory_space<vmem>>, vector<8x32xf32>,
    %c4_i32_222 = arith.constant 4 : i32
    %535 = arith.index_cast %c4_i32_222 : i32 to index
    %c0_223 = arith.constant 0 : index
    %c0_224 = arith.constant 0 : index
    %536 = vector.load %arg2[%535, %c0_223, %c0_224] : memref<7x8x32xf32, #tpu.memory_space<vmem>>, vector<1x8x32xf32>
    %537 = vector.shape_cast %536 : vector<1x8x32xf32> to vector<8x32xf32>
    %cst_225 = arith.constant dense<0.000000e+00> : vector<8x32xf32>
    %538 = tpu.matmul %537, %29, %cst_225 {dimension_numbers = #tpu.dot_dimension_numbers<[1], [0], [0], [1], [0, 0, 1, 1], [], []>} : vector<8x32xf32>, vector<32x32xf32>, vector<8x32xf32> -> vector<8x32xf32>
    %cst_226 = arith.constant dense<0.000000e+00> : vector<8x32xf32>
    %539 = tpu.matmul %530, %35, %cst_226 {dimension_numbers = #tpu.dot_dimension_numbers<[1], [0], [0], [1], [0, 0, 1, 1], [], []>} : vector<8x32xf32>, vector<32x32xf32>, vector<8x32xf32> -> vector<8x32xf32>
    %540 = arith.addf %538, %539 : vector<8x32xf32>
    %541 = arith.addf %540, %43 : vector<8x32xf32>
    %542 = arith.negf %541 : vector<8x32xf32>
    %543 = math.exp %542 : vector<8x32xf32>
    %cst_227 = arith.constant 1.000000e+00 : f32
    %544 = vector.broadcast %cst_227 : f32 to vector<8x32xf32>
    %545 = arith.addf %544, %543 : vector<8x32xf32>
    %546 = arith.divf %544, %545 : vector<8x32xf32>
    %cst_228 = arith.constant dense<0.000000e+00> : vector<8x32xf32>
    %547 = tpu.matmul %537, %31, %cst_228 {dimension_numbers = #tpu.dot_dimension_numbers<[1], [0], [0], [1], [0, 0, 1, 1], [], []>} : vector<8x32xf32>, vector<32x32xf32>, vector<8x32xf32> -> vector<8x32xf32>
    %cst_229 = arith.constant dense<0.000000e+00> : vector<8x32xf32>
    %548 = tpu.matmul %530, %37, %cst_229 {dimension_numbers = #tpu.dot_dimension_numbers<[1], [0], [0], [1], [0, 0, 1, 1], [], []>} : vector<8x32xf32>, vector<32x32xf32>, vector<8x32xf32> -> vector<8x32xf32>
    %549 = arith.addf %547, %548 : vector<8x32xf32>
    %550 = arith.addf %549, %47 : vector<8x32xf32>
    %551 = arith.negf %550 : vector<8x32xf32>
    %552 = math.exp %551 : vector<8x32xf32>
    %cst_230 = arith.constant 1.000000e+00 : f32
    %553 = vector.broadcast %cst_230 : f32 to vector<8x32xf32>
    %554 = arith.addf %553, %552 : vector<8x32xf32>
    %555 = arith.divf %553, %554 : vector<8x32xf32>
    %cst_231 = arith.constant dense<0.000000e+00> : vector<8x32xf32>
    %556 = tpu.matmul %537, %33, %cst_231 {dimension_numbers = #tpu.dot_dimension_numbers<[1], [0], [0], [1], [0, 0, 1, 1], [], []>} : vector<8x32xf32>, vector<32x32xf32>, vector<8x32xf32> -> vector<8x32xf32>
    %557 = arith.addf %556, %51 : vector<8x32xf32>
    %cst_232 = arith.constant dense<0.000000e+00> : vector<8x32xf32>
    %558 = tpu.matmul %530, %39, %cst_232 {dimension_numbers = #tpu.dot_dimension_numbers<[1], [0], [0], [1], [0, 0, 1, 1], [], []>} : vector<8x32xf32>, vector<32x32xf32>, vector<8x32xf32> -> vector<8x32xf32>
    %559 = arith.addf %558, %55 : vector<8x32xf32>
    %560 = arith.mulf %546, %559 : vector<8x32xf32>
    %561 = arith.addf %557, %560 : vector<8x32xf32>
    %562 = math.tanh %561 : vector<8x32xf32>
    %cst_233 = arith.constant 1.000000e+00 : f32
    %563 = vector.broadcast %cst_233 : f32 to vector<8x32xf32>
    %564 = arith.subf %563, %555 : vector<8x32xf32>
    %565 = arith.mulf %564, %562 : vector<8x32xf32>
    %566 = arith.mulf %555, %530 : vector<8x32xf32>
    %567 = arith.addf %565, %566 : vector<8x32xf32>
    %c8_i32_234 = arith.constant 8 : i32
    %568 = arith.muli %c4_i32_222, %c8_i32_234 : i32
    %569 = tpu.assume_multiple %568, 8 : i32
    %570 = arith.index_cast %569 : i32 to index
    %c0_235 = arith.constant 0 : index
    %571 = vector.load %arg12[%570, %c0_235] : memref<56x32xf32, #tpu.memory_space<vmem>>, vector<8x32xf32>
    tpu.vector_store %arg12[%570, %c0_235], %567 {strides = array<i32>} : memref<56x32xf32, #tpu.memory_space<vmem>>, vector<8x32xf32>,
    %c5_i32_236 = arith.constant 5 : i32
    %572 = arith.index_cast %c5_i32_236 : i32 to index
    %c0_237 = arith.constant 0 : index
    %c0_238 = arith.constant 0 : index
    %573 = vector.load %arg2[%572, %c0_237, %c0_238] : memref<7x8x32xf32, #tpu.memory_space<vmem>>, vector<1x8x32xf32>
    %574 = vector.shape_cast %573 : vector<1x8x32xf32> to vector<8x32xf32>
    %cst_239 = arith.constant dense<0.000000e+00> : vector<8x32xf32>
    %575 = tpu.matmul %574, %29, %cst_239 {dimension_numbers = #tpu.dot_dimension_numbers<[1], [0], [0], [1], [0, 0, 1, 1], [], []>} : vector<8x32xf32>, vector<32x32xf32>, vector<8x32xf32> -> vector<8x32xf32>
    %cst_240 = arith.constant dense<0.000000e+00> : vector<8x32xf32>
    %576 = tpu.matmul %567, %35, %cst_240 {dimension_numbers = #tpu.dot_dimension_numbers<[1], [0], [0], [1], [0, 0, 1, 1], [], []>} : vector<8x32xf32>, vector<32x32xf32>, vector<8x32xf32> -> vector<8x32xf32>
    %577 = arith.addf %575, %576 : vector<8x32xf32>
    %578 = arith.addf %577, %43 : vector<8x32xf32>
    %579 = arith.negf %578 : vector<8x32xf32>
    %580 = math.exp %579 : vector<8x32xf32>
    %cst_241 = arith.constant 1.000000e+00 : f32
    %581 = vector.broadcast %cst_241 : f32 to vector<8x32xf32>
    %582 = arith.addf %581, %580 : vector<8x32xf32>
    %583 = arith.divf %581, %582 : vector<8x32xf32>
    %cst_242 = arith.constant dense<0.000000e+00> : vector<8x32xf32>
    %584 = tpu.matmul %574, %31, %cst_242 {dimension_numbers = #tpu.dot_dimension_numbers<[1], [0], [0], [1], [0, 0, 1, 1], [], []>} : vector<8x32xf32>, vector<32x32xf32>, vector<8x32xf32> -> vector<8x32xf32>
    %cst_243 = arith.constant dense<0.000000e+00> : vector<8x32xf32>
    %585 = tpu.matmul %567, %37, %cst_243 {dimension_numbers = #tpu.dot_dimension_numbers<[1], [0], [0], [1], [0, 0, 1, 1], [], []>} : vector<8x32xf32>, vector<32x32xf32>, vector<8x32xf32> -> vector<8x32xf32>
    %586 = arith.addf %584, %585 : vector<8x32xf32>
    %587 = arith.addf %586, %47 : vector<8x32xf32>
    %588 = arith.negf %587 : vector<8x32xf32>
    %589 = math.exp %588 : vector<8x32xf32>
    %cst_244 = arith.constant 1.000000e+00 : f32
    %590 = vector.broadcast %cst_244 : f32 to vector<8x32xf32>
    %591 = arith.addf %590, %589 : vector<8x32xf32>
    %592 = arith.divf %590, %591 : vector<8x32xf32>
    %cst_245 = arith.constant dense<0.000000e+00> : vector<8x32xf32>
    %593 = tpu.matmul %574, %33, %cst_245 {dimension_numbers = #tpu.dot_dimension_numbers<[1], [0], [0], [1], [0, 0, 1, 1], [], []>} : vector<8x32xf32>, vector<32x32xf32>, vector<8x32xf32> -> vector<8x32xf32>
    %594 = arith.addf %593, %51 : vector<8x32xf32>
    %cst_246 = arith.constant dense<0.000000e+00> : vector<8x32xf32>
    %595 = tpu.matmul %567, %39, %cst_246 {dimension_numbers = #tpu.dot_dimension_numbers<[1], [0], [0], [1], [0, 0, 1, 1], [], []>} : vector<8x32xf32>, vector<32x32xf32>, vector<8x32xf32> -> vector<8x32xf32>
    %596 = arith.addf %595, %55 : vector<8x32xf32>
    %597 = arith.mulf %583, %596 : vector<8x32xf32>
    %598 = arith.addf %594, %597 : vector<8x32xf32>
    %599 = math.tanh %598 : vector<8x32xf32>
    %cst_247 = arith.constant 1.000000e+00 : f32
    %600 = vector.broadcast %cst_247 : f32 to vector<8x32xf32>
    %601 = arith.subf %600, %592 : vector<8x32xf32>
    %602 = arith.mulf %601, %599 : vector<8x32xf32>
    %603 = arith.mulf %592, %567 : vector<8x32xf32>
    %604 = arith.addf %602, %603 : vector<8x32xf32>
    %c8_i32_248 = arith.constant 8 : i32
    %605 = arith.muli %c5_i32_236, %c8_i32_248 : i32
    %606 = tpu.assume_multiple %605, 8 : i32
    %607 = arith.index_cast %606 : i32 to index
    %c0_249 = arith.constant 0 : index
    %608 = vector.load %arg12[%607, %c0_249] : memref<56x32xf32, #tpu.memory_space<vmem>>, vector<8x32xf32>
    tpu.vector_store %arg12[%607, %c0_249], %604 {strides = array<i32>} : memref<56x32xf32, #tpu.memory_space<vmem>>, vector<8x32xf32>,
    %c6_i32_250 = arith.constant 6 : i32
    %609 = arith.index_cast %c6_i32_250 : i32 to index
    %c0_251 = arith.constant 0 : index
    %c0_252 = arith.constant 0 : index
    %610 = vector.load %arg2[%609, %c0_251, %c0_252] : memref<7x8x32xf32, #tpu.memory_space<vmem>>, vector<1x8x32xf32>
    %611 = vector.shape_cast %610 : vector<1x8x32xf32> to vector<8x32xf32>
    %cst_253 = arith.constant dense<0.000000e+00> : vector<8x32xf32>
    %612 = tpu.matmul %611, %29, %cst_253 {dimension_numbers = #tpu.dot_dimension_numbers<[1], [0], [0], [1], [0, 0, 1, 1], [], []>} : vector<8x32xf32>, vector<32x32xf32>, vector<8x32xf32> -> vector<8x32xf32>
    %cst_254 = arith.constant dense<0.000000e+00> : vector<8x32xf32>
    %613 = tpu.matmul %604, %35, %cst_254 {dimension_numbers = #tpu.dot_dimension_numbers<[1], [0], [0], [1], [0, 0, 1, 1], [], []>} : vector<8x32xf32>, vector<32x32xf32>, vector<8x32xf32> -> vector<8x32xf32>
    %614 = arith.addf %612, %613 : vector<8x32xf32>
    %615 = arith.addf %614, %43 : vector<8x32xf32>
    %616 = arith.negf %615 : vector<8x32xf32>
    %617 = math.exp %616 : vector<8x32xf32>
    %cst_255 = arith.constant 1.000000e+00 : f32
    %618 = vector.broadcast %cst_255 : f32 to vector<8x32xf32>
    %619 = arith.addf %618, %617 : vector<8x32xf32>
    %620 = arith.divf %618, %619 : vector<8x32xf32>
    %cst_256 = arith.constant dense<0.000000e+00> : vector<8x32xf32>
    %621 = tpu.matmul %611, %31, %cst_256 {dimension_numbers = #tpu.dot_dimension_numbers<[1], [0], [0], [1], [0, 0, 1, 1], [], []>} : vector<8x32xf32>, vector<32x32xf32>, vector<8x32xf32> -> vector<8x32xf32>
    %cst_257 = arith.constant dense<0.000000e+00> : vector<8x32xf32>
    %622 = tpu.matmul %604, %37, %cst_257 {dimension_numbers = #tpu.dot_dimension_numbers<[1], [0], [0], [1], [0, 0, 1, 1], [], []>} : vector<8x32xf32>, vector<32x32xf32>, vector<8x32xf32> -> vector<8x32xf32>
    %623 = arith.addf %621, %622 : vector<8x32xf32>
    %624 = arith.addf %623, %47 : vector<8x32xf32>
    %625 = arith.negf %624 : vector<8x32xf32>
    %626 = math.exp %625 : vector<8x32xf32>
    %cst_258 = arith.constant 1.000000e+00 : f32
    %627 = vector.broadcast %cst_258 : f32 to vector<8x32xf32>
    %628 = arith.addf %627, %626 : vector<8x32xf32>
    %629 = arith.divf %627, %628 : vector<8x32xf32>
    %cst_259 = arith.constant dense<0.000000e+00> : vector<8x32xf32>
    %630 = tpu.matmul %611, %33, %cst_259 {dimension_numbers = #tpu.dot_dimension_numbers<[1], [0], [0], [1], [0, 0, 1, 1], [], []>} : vector<8x32xf32>, vector<32x32xf32>, vector<8x32xf32> -> vector<8x32xf32>
    %631 = arith.addf %630, %51 : vector<8x32xf32>
    %cst_260 = arith.constant dense<0.000000e+00> : vector<8x32xf32>
    %632 = tpu.matmul %604, %39, %cst_260 {dimension_numbers = #tpu.dot_dimension_numbers<[1], [0], [0], [1], [0, 0, 1, 1], [], []>} : vector<8x32xf32>, vector<32x32xf32>, vector<8x32xf32> -> vector<8x32xf32>
    %633 = arith.addf %632, %55 : vector<8x32xf32>
    %634 = arith.mulf %620, %633 : vector<8x32xf32>
    %635 = arith.addf %631, %634 : vector<8x32xf32>
    %636 = math.tanh %635 : vector<8x32xf32>
    %cst_261 = arith.constant 1.000000e+00 : f32
    %637 = vector.broadcast %cst_261 : f32 to vector<8x32xf32>
    %638 = arith.subf %637, %629 : vector<8x32xf32>
    %639 = arith.mulf %638, %636 : vector<8x32xf32>
    %640 = arith.mulf %629, %604 : vector<8x32xf32>
    %641 = arith.addf %639, %640 : vector<8x32xf32>
    %c8_i32_262 = arith.constant 8 : i32
    %642 = arith.muli %c6_i32_250, %c8_i32_262 : i32
    %643 = tpu.assume_multiple %642, 8 : i32
    %644 = arith.index_cast %643 : i32 to index
    %c0_263 = arith.constant 0 : index
    %645 = vector.load %arg12[%644, %c0_263] : memref<56x32xf32, #tpu.memory_space<vmem>>, vector<8x32xf32>
    tpu.vector_store %arg12[%644, %c0_263], %641 {strides = array<i32>} : memref<56x32xf32, #tpu.memory_space<vmem>>, vector<8x32xf32>,
    %c7_i32_264 = arith.constant 7 : i32
    %c0_265 = arith.constant 0 : index
    %c0_266 = arith.constant 0 : index
    %646 = vector.load %arg12[%c0_265, %c0_266] : memref<56x32xf32, #tpu.memory_space<vmem>>, vector<56x32xf32>
    %c0_267 = arith.constant 0 : index
    %c0_268 = arith.constant 0 : index
    %647 = vector.load %arg9[%c0_267, %c0_268] : memref<32x128xf32, #tpu.memory_space<vmem>>, vector<32x128xf32>
    %cst_269 = arith.constant dense<0.000000e+00> : vector<56x128xf32>
    %648 = tpu.matmul %646, %647, %cst_269 {dimension_numbers = #tpu.dot_dimension_numbers<[1], [0], [0], [1], [0, 0, 1, 1], [], []>} : vector<56x32xf32>, vector<32x128xf32>, vector<56x128xf32> -> vector<56x128xf32>
    %c0_270 = arith.constant 0 : index
    %c0_271 = arith.constant 0 : index
    %649 = vector.load %arg10[%c0_270, %c0_271] : memref<1x128xf32, #tpu.memory_space<vmem>>, vector<1x128xf32>
    %650 = vector.broadcast %649 : vector<1x128xf32> to vector<56x128xf32>
    %651 = arith.addf %648, %650 : vector<56x128xf32>
    %cst_272 = arith.constant 0.000000e+00 : f32
    %652 = vector.broadcast %cst_272 : f32 to vector<8x128xf32>
    %c0_273 = arith.constant 0 : index
    %c0_274 = arith.constant 0 : index
    %653 = vector.load %arg11[%c0_273, %c0_274] : memref<64x128xf32, #tpu.memory_space<vmem>>, vector<8x128xf32>
    tpu.vector_store %arg11[%c0_273, %c0_274], %652 {strides = array<i32>} : memref<64x128xf32, #tpu.memory_space<vmem>>, vector<8x128xf32>,
    %c8 = arith.constant 8 : index
    %c0_275 = arith.constant 0 : index
    %654 = vector.load %arg11[%c8, %c0_275] : memref<64x128xf32, #tpu.memory_space<vmem>>, vector<56x128xf32>
    tpu.vector_store %arg11[%c8, %c0_275], %651 {strides = array<i32>} : memref<64x128xf32, #tpu.memory_space<vmem>>, vector<56x128xf32>,
    return
  }
  func.func @transform_0(%arg0: i32) -> (i32, i32, i32) {
    %c0_i32 = arith.constant 0 : i32
    %c0_i32_0 = arith.constant 0 : i32
    %c0_i32_1 = arith.constant 0 : i32
    %c0_i32_2 = arith.constant 0 : i32
    return %c0_i32, %c0_i32_0, %c0_i32_1 : i32, i32, i32
  }
  func.func @transform_1(%arg0: i32) -> (i32, i32, i32) {
    %c0_i32 = arith.constant 0 : i32
    %c0_i32_0 = arith.constant 0 : i32
    %c0_i32_1 = arith.constant 0 : i32
    %c0_i32_2 = arith.constant 0 : i32
    return %c0_i32, %c0_i32_0, %c0_i32_1 : i32, i32, i32
  }
  func.func @transform_2(%arg0: i32) -> (i32, i32, i32) {
    %c0_i32 = arith.constant 0 : i32
    %c0_i32_0 = arith.constant 0 : i32
    %c0_i32_1 = arith.constant 0 : i32
    %c0_i32_2 = arith.constant 0 : i32
    return %c0_i32, %c0_i32_0, %c0_i32_1 : i32, i32, i32
  }
  func.func @transform_3(%arg0: i32) -> (i32, i32, i32) {
    %c0_i32 = arith.constant 0 : i32
    %c0_i32_0 = arith.constant 0 : i32
    %c0_i32_1 = arith.constant 0 : i32
    %c0_i32_2 = arith.constant 0 : i32
    return %c0_i32, %c0_i32_0, %c0_i32_1 : i32, i32, i32
  }
  func.func @transform_4(%arg0: i32) -> (i32, i32, i32) {
    %c0_i32 = arith.constant 0 : i32
    %c0_i32_0 = arith.constant 0 : i32
    %c0_i32_1 = arith.constant 0 : i32
    %c0_i32_2 = arith.constant 0 : i32
    return %c0_i32, %c0_i32_0, %c0_i32_1 : i32, i32, i32
  }
  func.func @transform_5(%arg0: i32) -> (i32, i32, i32) {
    %c0_i32 = arith.constant 0 : i32
    %c0_i32_0 = arith.constant 0 : i32
    %c0_i32_1 = arith.constant 0 : i32
    %c0_i32_2 = arith.constant 0 : i32
    return %c0_i32, %c0_i32_0, %c0_i32_1 : i32, i32, i32
  }
  func.func @transform_6(%arg0: i32) -> (i32, i32, i32) {
    %c0_i32 = arith.constant 0 : i32
    %c0_i32_0 = arith.constant 0 : i32
    %c0_i32_1 = arith.constant 0 : i32
    %c0_i32_2 = arith.constant 0 : i32
    return %c0_i32, %c0_i32_0, %c0_i32_1 : i32, i32, i32
  }
  func.func @transform_7(%arg0: i32) -> (i32, i32, i32) {
    %c0_i32 = arith.constant 0 : i32
    %c0_i32_0 = arith.constant 0 : i32
    %c0_i32_1 = arith.constant 0 : i32
    %c0_i32_2 = arith.constant 0 : i32
    return %c0_i32, %c0_i32_0, %c0_i32_1 : i32, i32, i32
  }
  func.func @transform_8(%arg0: i32) -> (i32, i32) {
    %c0_i32 = arith.constant 0 : i32
    %c0_i32_0 = arith.constant 0 : i32
    %c0_i32_1 = arith.constant 0 : i32
    return %c0_i32, %c0_i32_0 : i32, i32
  }
  func.func @transform_9(%arg0: i32) -> (i32, i32) {
    %c0_i32 = arith.constant 0 : i32
    %c0_i32_0 = arith.constant 0 : i32
    %c0_i32_1 = arith.constant 0 : i32
    return %c0_i32, %c0_i32_0 : i32, i32
  }
  func.func @transform_10(%arg0: i32) -> (i32, i32) {
    %c0_i32 = arith.constant 0 : i32
    %c0_i32_0 = arith.constant 0 : i32
    %c0_i32_1 = arith.constant 0 : i32
    return %c0_i32, %c0_i32_0 : i32, i32
  }
}

</mosaic_0001>

<bundles_post_ra>
// kernel: tpu_custom_call.1
= control target key start
LH: loop header
LB: loop body
LE: loop exit
PB: predicated region body
PF: predicated region fallthrough
CT: control target
= control target key end

     0   :  { %15 = vsyncpa [#allocation4], 0  ;;  %s12084_s0 = inlined_call_operand.hbm [shape: f32[10,8,32], index: 0, kind: input, shape index: {}]   ;;  %s12085_s1 = inlined_call_operand.hbm [shape: f32[7,8,32], index: 1, kind: input, shape index: {}]   ;;  %s12086_s2 = inlined_call_operand.hbm [shape: f32[3,32,32], index: 2, kind: input, shape index: {}]   ;;  %s12087_s3 = inlined_call_operand.hbm [shape: f32[3,32,32], index: 3, kind: input, shape index: {}]   ;;  %s12088_s4 = inlined_call_operand.vmem [shape: f32[4,1,32], index: 4, kind: input, shape index: {}]   ;;  %s12089_s5 = inlined_call_operand.hbm [shape: f32[3,32,32], index: 5, kind: input, shape index: {}]   ;;  %s12090_s6 = inlined_call_operand.hbm [shape: f32[3,32,32], index: 6, kind: input, shape index: {}]   ;;  %s12091_s7 = inlined_call_operand.vmem [shape: f32[4,1,32], index: 7, kind: input, shape index: {}]   ;;  %s12092_s8 = inlined_call_operand.hbm [shape: f32[32,128], index: 8, kind: input, shape index: {}]   ;;  %s12093_s9 = inlined_call_operand.vmem [shape: f32[1,128], index: 9, kind: input, shape index: {}]   ;;  %s12094_s10 = inlined_call_operand.hbm [shape: f32[64,128], index: 10, kind: output, shape index: {}]  }
   0x1   :  { %16 = vsyncpa [#allocation7], 0 }
   0x2   :  { %17 = vsyncpa [#allocation10], 0 }
   0x3   :  { %18 = vsyncpa [#allocation13], 0 }
   0x4   :  { %19 = vsyncpa [#allocation5], 0  ;;  %s10307_s13 = smov [#allocation6]   ;;  %s10308_s15 = smov [#allocation9]  }
   0x5   :  { %s37_s14 = sshll.u32 %s10307_s13, 4  ;;  %s61_s16 = sshll.u32 %s10308_s15, 4  ;;  %s38_s14 = int_to_ptr.vmem [resolvable:$true] %s37_s14  ;;  %s62_s16 = int_to_ptr.vmem [resolvable:$true] %s61_s16 }
   0x6   :  { %s10145_s17 = scalar_lea.vmem %s38_s14, 896  ;;  %p10150_p1 = scmp.lt.s32.totalorder %s38_s14, %s38_s14 }
   0x7   :  { %p10146_p0 = scmp.ne.s32.totalorder %s38_s14, %s10145_s17  ;;  %p10151_p2 = scmp.lt.s32.totalorder %s10145_s17, %s10145_s17 }
   0x9   :  { %p10152_p3 = por %p10151_p2, %p10150_p1 }
   0xb   :  { %p10153_p4 = pnand %p10152_p3, %p10146_p0 }
   0xd   :  { %10156 = shalt.err (!%p10153_p4)
}
   0xe   :  { %s10309_s18 = smov 128   ;;  %s10310_s19 = smov 8  }
   0xf   :  { %43 = dma.hbm_to_vmem [thread:$0]  %s12085_s1, 896, %s38_s14, [#allocation7], %s10309_s18, %s10309_s18, %s10310_s19  }
  0x10   :  { %s10165_s22 = scalar_lea.vmem %s62_s16, 1536  ;;  %p10170_p6 = scmp.lt.s32.totalorder %s62_s16, %s62_s16 }
  0x11   :  { %p10166_p5 = scmp.ne.s32.totalorder %s62_s16, %s10165_s22  ;;  %p10171_p7 = scmp.lt.s32.totalorder %s10165_s22, %s10165_s22 }
  0x13   :  { %p10172_p8 = por %p10171_p7, %p10170_p6 }
  0x15   :  { %p10173_p9 = pnand %p10172_p8, %p10166_p5 }
  0x17   :  { %10176 = shalt.err (!%p10173_p9)
}
  0x18   :  { %67 = dma.hbm_to_vmem [thread:$0]  %s12087_s3, 1536, %s62_s16, [#allocation10], %s10309_s18, %s10309_s18, %s10310_s19  }
  0x19   :  { %s10311_s25 = smov [#allocation12]   ;;  %s10312_s27 = smov [#allocation3]  }
  0x1a   :  { %s87_s26 = sshll.u32 %s10311_s25, 4  ;;  %s25_s28 = sshll.u32 %s10312_s27, 4  ;;  %s88_s26 = int_to_ptr.vmem [resolvable:$true] %s87_s26  ;;  %s26_s28 = int_to_ptr.vmem [resolvable:$true] %s25_s28 }
  0x1b   :  { %s10185_s1 = scalar_lea.vmem %s88_s26, 1536  ;;  %p10190_p11 = scmp.lt.s32.totalorder %s88_s26, %s88_s26 }
  0x1c   :  { %p10186_p10 = scmp.ne.s32.totalorder %s88_s26, %s10185_s1  ;;  %p10191_p12 = scmp.lt.s32.totalorder %s10185_s1, %s10185_s1 }
  0x1e   :  { %p10192_p13 = por %p10191_p12, %p10190_p11 }
  0x20   :  { %p10193_p0 = pnand %p10192_p13, %p10186_p10 }
  0x22   :  { %10196 = shalt.err (!%p10193_p0)
}
  0x23   :  { %93 = dma.hbm_to_vmem [thread:$0]  %s12090_s6, 1536, %s88_s26, [#allocation13], %s10309_s18, %s10309_s18, %s10310_s19  }
  0x24   :  { %s10205_s3 = scalar_lea.vmem %s26_s28, 1280  ;;  %p10210_p2 = scmp.lt.s32.totalorder %s26_s28, %s26_s28 }
  0x25   :  { %p10206_p1 = scmp.ne.s32.totalorder %s26_s28, %s10205_s3  ;;  %p10211_p3 = scmp.lt.s32.totalorder %s10205_s3, %s10205_s3 }
  0x27   :  { %p10212_p4 = por %p10211_p3, %p10210_p2 }
  0x29   :  { %p10213_p5 = pnand %p10212_p4, %p10206_p1 }
  0x2b   :  { %10216 = shalt.err (!%p10213_p5)
}
  0x2c   :  { %31 = dma.hbm_to_vmem [thread:$0]  %s12084_s0, 1280, %s26_s28, [#allocation4], %s10309_s18, %s10309_s18, %s10310_s19  }
  0x2d   :  { %s10313_s13 = smov [#allocation8]   ;;  %s10314_s15 = smov [#allocation11]  }
  0x2e   :  { %s49_s14 = sshll.u32 %s10313_s13, 4  ;;  %s75_s16 = sshll.u32 %s10314_s15, 4  ;;  %s50_s14 = int_to_ptr.vmem [resolvable:$true] %s49_s14  ;;  %s76_s16 = int_to_ptr.vmem [resolvable:$true] %s75_s16 }
  0x2f   :  { %s10225_s6 = scalar_lea.vmem %s50_s14, 1536  ;;  %p10230_p7 = scmp.lt.s32.totalorder %s50_s14, %s50_s14 }
  0x30   :  { %p10226_p6 = scmp.ne.s32.totalorder %s50_s14, %s10225_s6  ;;  %p10231_p8 = scmp.lt.s32.totalorder %s10225_s6, %s10225_s6 }
  0x32   :  { %p10232_p9 = por %p10231_p8, %p10230_p7 }
  0x34   :  { %p10233_p10 = pnand %p10232_p9, %p10226_p6 }
  0x36   :  { %10236 = shalt.err (!%p10233_p10)
}
  0x37   :  { %55 = dma.hbm_to_vmem [thread:$0]  %s12086_s2, 1536, %s50_s14, [#allocation7], %s10309_s18, %s10309_s18, %s10310_s19  }
  0x38   :  { %s10245_s0 = scalar_lea.vmem %s76_s16, 1536  ;;  %p10250_p12 = scmp.lt.s32.totalorder %s76_s16, %s76_s16 }
  0x39   :  { %p10246_p11 = scmp.ne.s32.totalorder %s76_s16, %s10245_s0  ;;  %p10251_p13 = scmp.lt.s32.totalorder %s10245_s0, %s10245_s0 }
  0x3b   :  { %p10252_p0 = por %p10251_p13, %p10250_p12 }
  0x3d   :  { %p10253_p1 = pnand %p10252_p0, %p10246_p11 }
  0x3f   :  { %10256 = shalt.err (!%p10253_p1)
}
  0x40   :  { %81 = dma.hbm_to_vmem [thread:$0]  %s12089_s5, 1536, %s76_s16, [#allocation10], %s10309_s18, %s10309_s18, %s10310_s19  }
  0x41   :  { %s10315_s23 = smov [#allocation14]  }
  0x42   :  { %s101_s24 = sshll.u32 %s10315_s23, 4  ;;  %s102_s24 = int_to_ptr.vmem [resolvable:$true] %s101_s24 }
  0x43   :  { %s10265_s25 = scalar_lea.vmem %s102_s24, 512  ;;  %p10270_p3 = scmp.lt.s32.totalorder %s102_s24, %s102_s24 }
  0x44   :  { %p10266_p2 = scmp.ne.s32.totalorder %s102_s24, %s10265_s25  ;;  %p10271_p4 = scmp.lt.s32.totalorder %s10265_s25, %s10265_s25 }
  0x46   :  { %p10272_p5 = por %p10271_p4, %p10270_p3 }
  0x48   :  { %p10273_p6 = pnand %p10272_p5, %p10266_p2 }
  0x4a   :  { %10276 = shalt.err (!%p10273_p6)
}
  0x4b   :  { %107 = dma.hbm_to_vmem [thread:$0]  %s12092_s8, 512, %s102_s24, [#allocation13], %s10309_s18, %s10309_s18, %s10310_s19  }
  0x4c   :  { %10297 = dma.done.wait [#allocation4], 1280  }
  0x4d   :  { %10298 = vsyncadd [#allocation4], 4294966016 }
  0x4e   :  { %10299 = dma.done.wait [#allocation7], 2432  }
  0x4f   :  { %10300 = vsyncadd [#allocation7], 4294964864 }
  0x50   :  { %10301 = dma.done.wait [#allocation10], 3072  }
  0x51   :  { %10302 = vsyncadd [#allocation10], 4294964224 }
  0x52   :  { %10303 = dma.done.wait [#allocation13], 2048  }
  0x53   :  { %10304 = vsyncadd [#allocation13], 4294965248  ;;  %v10316_v0 = vmov 0.0   ;;  %vm10317_vm0 = vmmov 0   ;;  %v10423_v1 = vld [vmem:[#allocation9 + $0x18] sm:$0xff]  ;;  %v10427_v3 = vld [vmem:[#allocation9 + $0x10] sm:$0xff] }
  0x54   :  { %8737 = vmatprep.subr.mxu0 %v10316_v0  ;;  %8033 = vst [vmem:[#allocation15] sm:$0xff] %v10316_v0  ;;  %8748 = vmatprep.subr.mxu1 %v10316_v0  ;;  %v10425_v2 = vld [vmem:[#allocation8 + $0x18] sm:$0xff]  ;;  %v10431_v4 = vld [vmem:[#allocation8 + $0x10] sm:$0xff]  ;;  %v10435_v5 = vld [vmem:[#allocation9 + $0x8] sm:$0xff]  ;;  %vm250_vm1 = vcmask 261120  }
  0x55   :  { %8745 = vmatprep.mubr.msk.f32.mxu0 %vm10317_vm0, %v10316_v0  ;;  %8756 = vmatprep.mubr.msk.f32.mxu1 %vm10317_vm0, %v10316_v0  ;;  %v10437_v6 = vld [vmem:[#allocation8 + $0x8] sm:$0xff]  ;;  %v10443_v7 = vld [vmem:[#allocation9] sm:$0xff]  ;;  %v10449_v9 = vld [vmem:[#allocation3] sm:$0xff] }
  0x56   :  { %8738 = vmatpush3.msra.mxu0 %v10423_v1  ;;  %8749 = vmatpush3.msra.mxu1 %v10425_v2  ;;  %v10445_v8 = vld [vmem:[#allocation8] sm:$0xff]  ;;  %v10455_v10 = vld [vmem:[#allocation9 + $0x38] sm:$0xff]  ;;  %v10464_v12 = vld [vmem:[#allocation9 + $0x30] sm:$0xff] }
  0x57   :  { %8739 = vmatprep.subr.mxu0 %v10316_v0  ;;  %8750 = vmatprep.subr.mxu1 %v10316_v0  ;;  %v10457_v11 = vld [vmem:[#allocation8 + $0x38] sm:$0xff]  ;;  %v10466_v13 = vld [vmem:[#allocation8 + $0x30] sm:$0xff]  ;;  %v10472_v14 = vld [vmem:[#allocation9 + $0x28] sm:$0xff] }
  0x58   :  { %8740 = vmatpush3.msra.mxu0 %v10427_v3  ;;  %8751 = vmatpush3.msra.mxu1 %v10431_v4  ;;  %v10474_v15 = vld [vmem:[#allocation8 + $0x28] sm:$0xff]  ;;  %v10480_v16 = vld [vmem:[#allocation9 + $0x20] sm:$0xff]  ;;  %v10494_v18 = vld [vmem:[#allocation9 + $0x58] sm:$0xff] }
  0x59   :  { %8741 = vmatprep.subr.mxu0 %v10316_v0  ;;  %8752 = vmatprep.subr.mxu1 %v10316_v0  ;;  %v10484_v17 = vld [vmem:[#allocation8 + $0x20] sm:$0xff]  ;;  %v10496_v19 = vld [vmem:[#allocation8 + $0x58] sm:$0xff]  ;;  %v10503_v20 = vld [vmem:[#allocation9 + $0x50] sm:$0xff] }
  0x5a   :  { %8742 = vmatpush3.msra.mxu0 %v10435_v5  ;;  %8753 = vmatpush3.msra.mxu1 %v10437_v6  ;;  %v10505_v21 = vld [vmem:[#allocation8 + $0x50] sm:$0xff]  ;;  %v10511_v22 = vld [vmem:[#allocation9 + $0x48] sm:$0xff]  ;;  %v10519_v24 = vld [vmem:[#allocation9 + $0x40] sm:$0xff] }
  0x5b   :  { %8743 = vmatprep.subr.mxu0 %v10316_v0  ;;  %8754 = vmatprep.subr.mxu1 %v10316_v0  ;;  %v10513_v23 = vld [vmem:[#allocation8 + $0x48] sm:$0xff]  ;;  %v10523_v25 = vld [vmem:[#allocation8 + $0x40] sm:$0xff] }
  0x5c   :  { %8744 = vmatpush3.msra.mxu0 %v10443_v7  ;;  %8755 = vmatpush3.msra.mxu1 %v10445_v8  ;;  %v10558_v26 = vld [vmem:[#allocation3 + $0x8] sm:$0xff] }
  0x5d   :  { %8746 = vmatmul.mubr.f32.vlgmr.msra.gmra.mxu0 %v10316_v0  ;;  %8757 = vmatmul.mubr.msk.f32.vlgmr.msra.gmra.mxu1 %vm250_vm1, %v10449_v9  ;;  %v10587_v28 = vld [vmem:[%s12088_s4] ss:$0 sm:$0xff]  ;;  %v10593_v36 = vld [vmem:[%s12088_s4 + $0x1] ss:$0 sm:$0xff]  ;;  %v10599_v50 = vld [vmem:[%s12088_s4 + $0x3] ss:$0 sm:$0xff] }
  0x5e   :  { %8759 = vmatprep.subr.mxu0 %v10316_v0  ;;  %8770 = vmatprep.subr.mxu1 %v10316_v0  ;;  %v10604_v52 = vld [vmem:[%s12088_s4 + $0x2] ss:$0 sm:$0xff] }
  0x5f   :  { %8760 = vmatpush3.msra.mxu0 %v10455_v10  ;;  %8771 = vmatpush3.msra.mxu1 %v10457_v11 }
  0x60   :  { %8761 = vmatprep.subr.mxu0 %v10316_v0  ;;  %8772 = vmatprep.subr.mxu1 %v10316_v0 }
  0x61   :  { %8762 = vmatpush3.msra.mxu0 %v10464_v12  ;;  %8773 = vmatpush3.msra.mxu1 %v10466_v13 }
  0x62   :  { %8763 = vmatprep.subr.mxu0 %v10316_v0  ;;  %8774 = vmatprep.subr.mxu1 %v10316_v0 }
  0x63   :  { %8764 = vmatpush3.msra.mxu0 %v10472_v14  ;;  %8775 = vmatpush3.msra.mxu1 %v10474_v15 }
  0x64   :  { %8765 = vmatprep.subr.mxu0 %v10316_v0  ;;  %8776 = vmatprep.subr.mxu1 %v10316_v0 }
  0x65   :  { %8766 = vmatpush3.msra.mxu0 %v10480_v16  ;;  %8767 = vmatprep.mubr.msk.f32.mxu0 %vm10317_vm0, %v10316_v0 }
  0x66   :  { %8777 = vmatpush3.msra.mxu1 %v10484_v17  ;;  %8778 = vmatprep.mubr.msk.f32.mxu1 %vm10317_vm0, %v10316_v0 }
  0x67   :  { %8768 = vmatmul.mubr.f32.vlgmr.msra.gmra.mxu0 %v10316_v0  ;;  %8779 = vmatmul.mubr.msk.f32.vlgmr.msra.gmra.mxu1 %vm250_vm1, %v10449_v9 }
  0x68   :  { %8792 = vmatprep.subr.mxu1 %v10316_v0  ;;  %8781 = vmatprep.subr.mxu0 %v10316_v0 }
  0x69   :  { %8793 = vmatpush3.msra.mxu1 %v10494_v18  ;;  %8782 = vmatpush3.msra.mxu0 %v10496_v19 }
  0x6a   :  { %8794 = vmatprep.subr.mxu1 %v10316_v0  ;;  %8783 = vmatprep.subr.mxu0 %v10316_v0 }
  0x6b   :  { %8795 = vmatpush3.msra.mxu1 %v10503_v20  ;;  %8784 = vmatpush3.msra.mxu0 %v10505_v21 }
  0x6c   :  { %8796 = vmatprep.subr.mxu1 %v10316_v0  ;;  %8785 = vmatprep.subr.mxu0 %v10316_v0 }
  0x6d   :  { %8797 = vmatpush3.msra.mxu1 %v10511_v22  ;;  %8786 = vmatpush3.msra.mxu0 %v10513_v23 }
  0x6e   :  { %8798 = vmatprep.subr.mxu1 %v10316_v0  ;;  %8800 = vmatprep.mubr.msk.f32.mxu1 %vm10317_vm0, %v10316_v0 }
  0x6f   :  { %8799 = vmatpush3.msra.mxu1 %v10519_v24  ;;  %8787 = vmatprep.subr.mxu0 %v10316_v0 }
  0x70   :  { %8801 = vmatmul.mubr.f32.vlgmr.msra.gmra.mxu1 %v10316_v0  ;;  %8788 = vmatpush3.msra.mxu0 %v10523_v25 }
  0x71   :  { %8789 = vmatprep.mubr.msk.f32.mxu0 %vm10317_vm0, %v10316_v0  ;;  %8814 = vmatprep.subr.mxu1 %v10316_v0 }
  0x72   :  { %8790 = vmatmul.mubr.msk.f32.vlgmr.msra.gmra.mxu0 %vm250_vm1, %v10449_v9  ;;  %8815 = vmatpush3.msra.mxu1 %v10425_v2 }
  0x73   :  { %8816 = vmatprep.subr.mxu1 %v10316_v0  ;;  %8822 = vmatprep.mubr.msk.f32.mxu1 %vm10317_vm0, %v10316_v0 }
  0x74   :  { %8817 = vmatpush3.msra.mxu1 %v10431_v4  ;;  %8803 = vmatprep.subr.mxu0 %v10316_v0 }
  0x75   :  { %8818 = vmatprep.subr.mxu1 %v10316_v0  ;;  %8804 = vmatpush3.msra.mxu0 %v10423_v1 }
  0x76   :  { %8819 = vmatpush3.msra.mxu1 %v10437_v6  ;;  %8805 = vmatprep.subr.mxu0 %v10316_v0 }
  0x77   :  { %8820 = vmatprep.subr.mxu1 %v10316_v0  ;;  %8806 = vmatpush3.msra.mxu0 %v10427_v3 }
  0x78   :  { %8821 = vmatpush3.msra.mxu1 %v10445_v8  ;;  %8807 = vmatprep.subr.mxu0 %v10316_v0 }
  0x79   :  { %8836 = vmatprep.subr.mxu1 %v10316_v0  ;;  %8808 = vmatpush3.msra.mxu0 %v10435_v5 }
  0x7a   :  { %8809 = vmatprep.subr.mxu0 %v10316_v0  ;;  %8811 = vmatprep.mubr.msk.f32.mxu0 %vm10317_vm0, %v10316_v0 }
  0x7b   :  { %8810 = vmatpush3.msra.mxu0 %v10443_v7  ;;  %8823 = vmatmul.mubr.msk.f32.vlgmr.msra.gmra.mxu1 %vm250_vm1, %v10558_v26 }
  0x7c   :  { %8825 = vmatprep.subr.mxu0 %v10316_v0  ;;  %8837 = vmatpush3.msra.mxu1 %v10457_v11 }
  0x7d   :  { %8844 = vmatprep.mubr.msk.f32.mxu1 %vm10317_vm0, %v10316_v0  ;;  %8838 = vmatprep.subr.mxu1 %v10316_v0 }
  0x7e   :  { %8839 = vmatpush3.msra.mxu1 %v10466_v13 }
  0x7f   :  { %8840 = vmatprep.subr.mxu1 %v10316_v0 }
  0x80   :  { %8841 = vmatpush3.msra.mxu1 %v10474_v15 }
  0x81   :  { %8842 = vmatprep.subr.mxu1 %v10316_v0 }
  0x82   :  { %8843 = vmatpush3.msra.mxu1 %v10484_v17 }
  0x83   :  { %8858 = vmatprep.subr.mxu1 %v10316_v0  ;;  %8845 = vmatmul.mubr.msk.f32.vlgmr.msra.gmra.mxu1 %vm250_vm1, %v10558_v26 }
  0x84   :  { %8859 = vmatpush3.msra.mxu1 %v10494_v18  ;;  %8866 = vmatprep.mubr.msk.f32.mxu1 %vm10317_vm0, %v10316_v0 }
  0x85   :  { %8860 = vmatprep.subr.mxu1 %v10316_v0 }
  0x86   :  { %8861 = vmatpush3.msra.mxu1 %v10503_v20 }
  0x87   :  { %8862 = vmatprep.subr.mxu1 %v10316_v0 }
  0x88   :  { %8863 = vmatpush3.msra.mxu1 %v10511_v22 }
  0x89   :  { %8864 = vmatprep.subr.mxu1 %v10316_v0 }
  0x8a   :  { %8865 = vmatpush3.msra.mxu1 %v10519_v24 }
  0x8b   :  { %8880 = vmatprep.subr.mxu1 %v10316_v0 }
 0x11d   :  { %v320_v27 = vpop.f32.mrf.mxu0  ;;  %v393_v29 = vpop.f32.mrf.mxu1 }
 0x11e   :  { %v394_v30 = vadd.f32 %v393_v29, %v320_v27 }
 0x11f   :  { %v8747_v31 = vpop.f32.mrf.mxu0  ;;  %v8758_v32 = vpop.f32.mrf.mxu1 }
 0x120   :  { %v397_v33 = vadd.f32 %v10587_v28, %v394_v30  ;;  %v10658_v30 = vld [vmem:[#allocation3 + $0x10] sm:$0xff] }
 0x122   :  { %v8076_v34 = vmul.f32 -1.442695, %v397_v33 }
 0x124   :  { %9908 = vpow2.f32 %v8076_v34 }
 0x127   :  { %v470_v35 = vpop.f32.mrf.mxu0  ;;  %v540_v37 = vpop.f32.mrf.mxu1 }
 0x128   :  { %v541_v38 = vadd.f32 %v540_v37, %v470_v35 }
 0x129   :  { %v8769_v39 = vpop.f32.mrf.mxu0  ;;  %v8780_v40 = vpop.f32.mrf.mxu1 }
 0x12a   :  { %v544_v41 = vadd.f32 %v10593_v36, %v541_v38 }
 0x12c   :  { %v8078_v42 = vmul.f32 -1.442695, %v544_v41 }
 0x12e   :  { %9910 = vpow2.f32 %v8078_v42 }
 0x130   :  { %v687_v43 = vpop.f32.mrf.mxu1 }
 0x131   :  { %v9909_v44 = vpop.eup %9908  ;;  %v688_v53 = vadd.f32 %v10599_v50, %v687_v43 }
 0x132   :  { %v401_v45 = vadd.f32 1.0, %v9909_v44  ;;  %v617_v46 = vpop.f32.mrf.mxu0  ;;  %v8802_v47 = vpop.f32.mrf.mxu1 }
 0x133   :  { %v618_v54 = vadd.f32 %v10604_v52, %v617_v46 }
 0x134   :  { %9912 = vrcp.f32 %v401_v45  ;;  %v8791_v48 = vpop.f32.mrf.mxu0 }
 0x13b   :  { %v9911_v49 = vpop.eup %9910  ;;  %v842_v9 = vpop.f32.mrf.mxu1 }
 0x13c   :  { %v548_v51 = vadd.f32 1.0, %v9911_v49 }
 0x13e   :  { %9914 = vrcp.f32 %v548_v51 }
 0x141   :  { %v9913_v55 = vpop.eup %9912 }
 0x142   :  { %v691_v56 = vmul.f32 %v9913_v55, %v688_v53 }
 0x144   :  { %v692_v57 = vadd.f32 %v691_v56, %v618_v54 }
 0x146   :  { %9916 = vtanh.f32 %v692_v57 }
 0x14b   :  { %v9915_v58 = vpop.eup %9914 }
 0x14c   :  { %v694_v59 = vsub.f32 1.0, %v9915_v58  ;;  %v696_v62 = vmul.f32 0.0, %v9915_v58 }
 0x153   :  { %v9917_v60 = vpop.eup %9916 }
 0x154   :  { %v695_v61 = vmul.f32 %v9917_v60, %v694_v59 }
 0x156   :  { %v10608_v63 = vadd.f32 %v696_v62, %v695_v61 }
 0x158   :  { %8812 = vmatmul.mubr.msk.f32.vlgmr.msra.gmra.mxu0 %vm250_vm1, %v10608_v63  ;;  %8867 = vmatmul.mubr.msk.f32.vlgmr.msra.gmra.mxu1 %vm250_vm1, %v10608_v63 }
 0x159   :  { %8826 = vmatpush3.msra.mxu0 %v10455_v10  ;;  %8833 = vmatprep.mubr.msk.f32.mxu0 %vm10317_vm0, %v10316_v0 }
 0x15a   :  { %8827 = vmatprep.subr.mxu0 %v10316_v0  ;;  %8881 = vmatpush3.msra.mxu1 %v10425_v2 }
 0x15b   :  { %8828 = vmatpush3.msra.mxu0 %v10464_v12  ;;  %8882 = vmatprep.subr.mxu1 %v10316_v0 }
 0x15c   :  { %8829 = vmatprep.subr.mxu0 %v10316_v0  ;;  %8883 = vmatpush3.msra.mxu1 %v10431_v4 }
 0x15d   :  { %8830 = vmatpush3.msra.mxu0 %v10472_v14  ;;  %8884 = vmatprep.subr.mxu1 %v10316_v0 }
 0x15e   :  { %8831 = vmatprep.subr.mxu0 %v10316_v0  ;;  %8885 = vmatpush3.msra.mxu1 %v10437_v6 }
 0x15f   :  { %8832 = vmatpush3.msra.mxu0 %v10480_v16  ;;  %8886 = vmatprep.subr.mxu1 %v10316_v0 }
 0x160   :  { %8834 = vmatmul.mubr.msk.f32.vlgmr.msra.gmra.mxu0 %vm250_vm1, %v10608_v63  ;;  %8847 = vmatprep.subr.mxu0 %v10316_v0 }
 0x161   :  { %8848 = vmatpush3.msra.mxu0 %v10496_v19  ;;  %8855 = vmatprep.mubr.msk.f32.mxu0 %vm10317_vm0, %v10316_v0 }
 0x162   :  { %8849 = vmatprep.subr.mxu0 %v10316_v0  ;;  %8887 = vmatpush3.msra.mxu1 %v10445_v8 }
 0x163   :  { %8850 = vmatpush3.msra.mxu0 %v10505_v21  ;;  %8888 = vmatprep.mubr.msk.f32.mxu1 %vm10317_vm0, %v10316_v0 }
 0x164   :  { %8851 = vmatprep.subr.mxu0 %v10316_v0  ;;  %8902 = vmatprep.subr.mxu1 %v10316_v0 }
 0x165   :  { %8852 = vmatpush3.msra.mxu0 %v10513_v23  ;;  %8889 = vmatmul.mubr.msk.f32.vlgmr.msra.gmra.mxu1 %vm250_vm1, %v10658_v30 }
 0x166   :  { %8853 = vmatprep.subr.mxu0 %v10316_v0  ;;  %8903 = vmatpush3.msra.mxu1 %v10457_v11 }
 0x167   :  { %8854 = vmatpush3.msra.mxu0 %v10523_v25  ;;  %8910 = vmatprep.mubr.msk.f32.mxu1 %vm10317_vm0, %v10316_v0 }
 0x168   :  { %8856 = vmatmul.mubr.msk.f32.vlgmr.msra.gmra.mxu0 %vm250_vm1, %v10558_v26  ;;  %8869 = vmatprep.subr.mxu0 %v10316_v0  ;;  %v8824_v26 = vpop.f32.mrf.mxu1 }
 0x169   :  { %8870 = vmatpush3.msra.mxu0 %v10423_v1  ;;  %8877 = vmatprep.mubr.msk.f32.mxu0 %vm10317_vm0, %v10316_v0 }
 0x16a   :  { %8871 = vmatprep.subr.mxu0 %v10316_v0  ;;  %v989_v27 = vpop.f32.mrf.mxu1  ;;  %8904 = vmatprep.subr.mxu1 %v10316_v0 }
 0x16b   :  { %8872 = vmatpush3.msra.mxu0 %v10427_v3  ;;  %8905 = vmatpush3.msra.mxu1 %v10466_v13 }
 0x16c   :  { %8873 = vmatprep.subr.mxu0 %v10316_v0  ;;  %v8846_v29 = vpop.f32.mrf.mxu1  ;;  %8906 = vmatprep.subr.mxu1 %v10316_v0 }
 0x16d   :  { %8874 = vmatpush3.msra.mxu0 %v10435_v5  ;;  %8907 = vmatpush3.msra.mxu1 %v10474_v15  ;;  %v10739_v29 = vld [vmem:[#allocation3 + $0x18] sm:$0xff] }
 0x16e   :  { %8875 = vmatprep.subr.mxu0 %v10316_v0  ;;  %8908 = vmatprep.subr.mxu1 %v10316_v0 }
 0x16f   :  { %8876 = vmatpush3.msra.mxu0 %v10443_v7  ;;  %8909 = vmatpush3.msra.mxu1 %v10484_v17 }
 0x170   :  { %8891 = vmatprep.subr.mxu0 %v10316_v0  ;;  %8924 = vmatprep.subr.mxu1 %v10316_v0 }
 0x171   :  { %8911 = vmatmul.mubr.msk.f32.vlgmr.msra.gmra.mxu1 %vm250_vm1, %v10658_v30 }
 0x172   :  { %8925 = vmatpush3.msra.mxu1 %v10494_v18  ;;  %8932 = vmatprep.mubr.msk.f32.mxu1 %vm10317_vm0, %v10316_v0 }
 0x173   :  { %8926 = vmatprep.subr.mxu1 %v10316_v0 }
 0x174   :  { %8927 = vmatpush3.msra.mxu1 %v10503_v20 }
 0x175   :  { %8928 = vmatprep.subr.mxu1 %v10316_v0 }
 0x176   :  { %8929 = vmatpush3.msra.mxu1 %v10511_v22 }
 0x177   :  { %8930 = vmatprep.subr.mxu1 %v10316_v0 }
 0x178   :  { %8931 = vmatpush3.msra.mxu1 %v10519_v24 }
 0x179   :  { %8946 = vmatprep.subr.mxu1 %v10316_v0 }
 0x218   :  { %v769_v31 = vpop.f32.mrf.mxu0  ;;  %v1136_v32 = vpop.f32.mrf.mxu1 }
 0x219   :  { %v843_v33 = vadd.f32 %v842_v9, %v769_v31  ;;  %v1137_v51 = vadd.f32 %v10599_v50, %v1136_v32 }
 0x21a   :  { %v8813_v34 = vpop.f32.mrf.mxu0  ;;  %v8868_v35 = vpop.f32.mrf.mxu1 }
 0x21b   :  { %v846_v37 = vadd.f32 %v10587_v28, %v843_v33 }
 0x21d   :  { %v8082_v38 = vmul.f32 -1.442695, %v846_v37 }
 0x21f   :  { %9918 = vpow2.f32 %v8082_v38 }
 0x220   :  { %v919_v39 = vpop.f32.mrf.mxu0 }
 0x221   :  { %v990_v40 = vadd.f32 %v989_v27, %v919_v39 }
 0x222   :  { %v8835_v41 = vpop.f32.mrf.mxu0 }
 0x223   :  { %v993_v42 = vadd.f32 %v10593_v36, %v990_v40 }
 0x225   :  { %v8085_v43 = vmul.f32 -1.442695, %v993_v42 }
 0x227   :  { %9920 = vpow2.f32 %v8085_v43 }
 0x228   :  { %v1066_v44 = vpop.f32.mrf.mxu0 }
 0x229   :  { %v1067_v53 = vadd.f32 %v10604_v52, %v1066_v44 }
 0x22a   :  { %v8857_v45 = vpop.f32.mrf.mxu0 }
 0x22c   :  { %v9919_v46 = vpop.eup %9918 }
 0x22d   :  { %v850_v47 = vadd.f32 1.0, %v9919_v46 }
 0x22f   :  { %9922 = vrcp.f32 %v850_v47 }
 0x234   :  { %v9921_v48 = vpop.eup %9920 }
 0x235   :  { %v997_v49 = vadd.f32 1.0, %v9921_v48 }
 0x237   :  { %9924 = vrcp.f32 %v997_v49 }
 0x23c   :  { %v9923_v54 = vpop.eup %9922 }
 0x23d   :  { %v1140_v55 = vmul.f32 %v9923_v54, %v1137_v51 }
 0x23f   :  { %v1141_v56 = vadd.f32 %v1140_v55, %v1067_v53 }
 0x241   :  { %9926 = vtanh.f32 %v1141_v56 }
 0x244   :  { %v9925_v57 = vpop.eup %9924 }
 0x245   :  { %v1143_v58 = vsub.f32 1.0, %v9925_v57  ;;  %v1145_v61 = vmul.f32 %v9925_v57, %v10608_v63  ;;  %v1291_v63 = vpop.f32.mrf.mxu1 }
 0x247   :  { %v8890_v9 = vpop.f32.mrf.mxu1 }
 0x249   :  { %v1438_v26 = vpop.f32.mrf.mxu1 }
 0x24b   :  { %v8912_v27 = vpop.f32.mrf.mxu1 }
 0x24c   :  { %v10820_v27 = vld [vmem:[#allocation3 + $0x20] sm:$0xff] }
 0x24e   :  { %v9927_v59 = vpop.eup %9926 }
 0x24f   :  { %v1144_v60 = vmul.f32 %v9927_v59, %v1143_v58 }
 0x251   :  { %v10689_v62 = vadd.f32 %v1145_v61, %v1144_v60 }
 0x253   :  { %8878 = vmatmul.mubr.msk.f32.vlgmr.msra.gmra.mxu0 %vm250_vm1, %v10689_v62  ;;  %8933 = vmatmul.mubr.msk.f32.vlgmr.msra.gmra.mxu1 %vm250_vm1, %v10689_v62 }
 0x254   :  { %8892 = vmatpush3.msra.mxu0 %v10455_v10  ;;  %8899 = vmatprep.mubr.msk.f32.mxu0 %vm10317_vm0, %v10316_v0 }
 0x255   :  { %8893 = vmatprep.subr.mxu0 %v10316_v0  ;;  %8947 = vmatpush3.msra.mxu1 %v10425_v2 }
 0x256   :  { %8894 = vmatpush3.msra.mxu0 %v10464_v12  ;;  %8948 = vmatprep.subr.mxu1 %v10316_v0 }
 0x257   :  { %8895 = vmatprep.subr.mxu0 %v10316_v0  ;;  %8949 = vmatpush3.msra.mxu1 %v10431_v4 }
 0x258   :  { %8896 = vmatpush3.msra.mxu0 %v10472_v14  ;;  %8950 = vmatprep.subr.mxu1 %v10316_v0 }
 0x259   :  { %8897 = vmatprep.subr.mxu0 %v10316_v0  ;;  %8951 = vmatpush3.msra.mxu1 %v10437_v6 }
 0x25a   :  { %8898 = vmatpush3.msra.mxu0 %v10480_v16  ;;  %8952 = vmatprep.subr.mxu1 %v10316_v0 }
 0x25b   :  { %8900 = vmatmul.mubr.msk.f32.vlgmr.msra.gmra.mxu0 %vm250_vm1, %v10689_v62  ;;  %8913 = vmatprep.subr.mxu0 %v10316_v0 }
 0x25c   :  { %8914 = vmatpush3.msra.mxu0 %v10496_v19  ;;  %8921 = vmatprep.mubr.msk.f32.mxu0 %vm10317_vm0, %v10316_v0 }
 0x25d   :  { %8915 = vmatprep.subr.mxu0 %v10316_v0  ;;  %8953 = vmatpush3.msra.mxu1 %v10445_v8 }
 0x25e   :  { %8916 = vmatpush3.msra.mxu0 %v10505_v21  ;;  %8954 = vmatprep.mubr.msk.f32.mxu1 %vm10317_vm0, %v10316_v0 }
 0x25f   :  { %8917 = vmatprep.subr.mxu0 %v10316_v0  ;;  %8968 = vmatprep.subr.mxu1 %v10316_v0 }
 0x260   :  { %8918 = vmatpush3.msra.mxu0 %v10513_v23  ;;  %8955 = vmatmul.mubr.msk.f32.vlgmr.msra.gmra.mxu1 %vm250_vm1, %v10739_v29 }
 0x261   :  { %8919 = vmatprep.subr.mxu0 %v10316_v0  ;;  %8969 = vmatpush3.msra.mxu1 %v10457_v11 }
 0x262   :  { %8920 = vmatpush3.msra.mxu0 %v10523_v25  ;;  %8976 = vmatprep.mubr.msk.f32.mxu1 %vm10317_vm0, %v10316_v0 }
 0x263   :  { %8922 = vmatmul.mubr.msk.f32.vlgmr.msra.gmra.mxu0 %vm250_vm1, %v10658_v30  ;;  %8935 = vmatprep.subr.mxu0 %v10316_v0 }
 0x264   :  { %8936 = vmatpush3.msra.mxu0 %v10423_v1  ;;  %8943 = vmatprep.mubr.msk.f32.mxu0 %vm10317_vm0, %v10316_v0 }
 0x265   :  { %8937 = vmatprep.subr.mxu0 %v10316_v0  ;;  %8970 = vmatprep.subr.mxu1 %v10316_v0 }
 0x266   :  { %8938 = vmatpush3.msra.mxu0 %v10427_v3  ;;  %8971 = vmatpush3.msra.mxu1 %v10466_v13 }
 0x267   :  { %8939 = vmatprep.subr.mxu0 %v10316_v0  ;;  %8972 = vmatprep.subr.mxu1 %v10316_v0 }
 0x268   :  { %8940 = vmatpush3.msra.mxu0 %v10435_v5  ;;  %8973 = vmatpush3.msra.mxu1 %v10474_v15 }
 0x269   :  { %8941 = vmatprep.subr.mxu0 %v10316_v0  ;;  %8974 = vmatprep.subr.mxu1 %v10316_v0 }
 0x26a   :  { %8942 = vmatpush3.msra.mxu0 %v10443_v7  ;;  %8975 = vmatpush3.msra.mxu1 %v10484_v17 }
 0x26b   :  { %8957 = vmatprep.subr.mxu0 %v10316_v0  ;;  %8990 = vmatprep.subr.mxu1 %v10316_v0 }
 0x26c   :  { %8977 = vmatmul.mubr.msk.f32.vlgmr.msra.gmra.mxu1 %vm250_vm1, %v10739_v29 }
 0x26d   :  { %8991 = vmatpush3.msra.mxu1 %v10494_v18  ;;  %8998 = vmatprep.mubr.msk.f32.mxu1 %vm10317_vm0, %v10316_v0 }
 0x26e   :  { %8992 = vmatprep.subr.mxu1 %v10316_v0 }
 0x26f   :  { %8993 = vmatpush3.msra.mxu1 %v10503_v20 }
 0x270   :  { %8994 = vmatprep.subr.mxu1 %v10316_v0 }
 0x271   :  { %8995 = vmatpush3.msra.mxu1 %v10511_v22 }
 0x272   :  { %8996 = vmatprep.subr.mxu1 %v10316_v0 }
 0x273   :  { %8997 = vmatpush3.msra.mxu1 %v10519_v24 }
 0x274   :  { %9012 = vmatprep.subr.mxu1 %v10316_v0 }
 0x313   :  { %v1218_v30 = vpop.f32.mrf.mxu0  ;;  %v1585_v31 = vpop.f32.mrf.mxu1 }
 0x314   :  { %v1292_v32 = vadd.f32 %v1291_v63, %v1218_v30  ;;  %v1586_v49 = vadd.f32 %v10599_v50, %v1585_v31 }
 0x315   :  { %v8879_v33 = vpop.f32.mrf.mxu0  ;;  %v8934_v34 = vpop.f32.mrf.mxu1 }
 0x316   :  { %v1295_v35 = vadd.f32 %v10587_v28, %v1292_v32 }
 0x318   :  { %v8090_v37 = vmul.f32 -1.442695, %v1295_v35 }
 0x31a   :  { %9928 = vpow2.f32 %v8090_v37 }
 0x31b   :  { %v1368_v38 = vpop.f32.mrf.mxu0 }
 0x31c   :  { %v1439_v39 = vadd.f32 %v1438_v26, %v1368_v38 }
 0x31d   :  { %v8901_v40 = vpop.f32.mrf.mxu0 }
 0x31e   :  { %v1442_v41 = vadd.f32 %v10593_v36, %v1439_v39 }
 0x320   :  { %v8093_v42 = vmul.f32 -1.442695, %v1442_v41 }
 0x322   :  { %9930 = vpow2.f32 %v8093_v42 }
 0x323   :  { %v1515_v43 = vpop.f32.mrf.mxu0 }
 0x324   :  { %v1516_v51 = vadd.f32 %v10604_v52, %v1515_v43 }
 0x325   :  { %v8923_v44 = vpop.f32.mrf.mxu0 }
 0x327   :  { %v9929_v45 = vpop.eup %9928 }
 0x328   :  { %v1299_v46 = vadd.f32 1.0, %v9929_v45 }
 0x32a   :  { %9932 = vrcp.f32 %v1299_v46 }
 0x32f   :  { %v9931_v47 = vpop.eup %9930 }
 0x330   :  { %v1446_v48 = vadd.f32 1.0, %v9931_v47 }
 0x332   :  { %9934 = vrcp.f32 %v1446_v48 }
 0x337   :  { %v9933_v53 = vpop.eup %9932 }
 0x338   :  { %v1589_v54 = vmul.f32 %v9933_v53, %v1586_v49 }
 0x33a   :  { %v1590_v55 = vadd.f32 %v1589_v54, %v1516_v51 }
 0x33c   :  { %9936 = vtanh.f32 %v1590_v55 }
 0x33f   :  { %v9935_v56 = vpop.eup %9934 }
 0x340   :  { %v1592_v57 = vsub.f32 1.0, %v9935_v56  ;;  %v1594_v60 = vmul.f32 %v9935_v56, %v10689_v62  ;;  %v1740_v62 = vpop.f32.mrf.mxu1 }
 0x342   :  { %v8956_v63 = vpop.f32.mrf.mxu1 }
 0x344   :  { %v1887_v9 = vpop.f32.mrf.mxu1 }
 0x346   :  { %v8978_v26 = vpop.f32.mrf.mxu1 }
 0x349   :  { %v9937_v58 = vpop.eup %9936 }
 0x34a   :  { %v1593_v59 = vmul.f32 %v9937_v58, %v1592_v57 }
 0x34c   :  { %v10770_v61 = vadd.f32 %v1594_v60, %v1593_v59 }
 0x34e   :  { %8944 = vmatmul.mubr.msk.f32.vlgmr.msra.gmra.mxu0 %vm250_vm1, %v10770_v61  ;;  %8999 = vmatmul.mubr.msk.f32.vlgmr.msra.gmra.mxu1 %vm250_vm1, %v10770_v61 }
 0x34f   :  { %8958 = vmatpush3.msra.mxu0 %v10455_v10  ;;  %8965 = vmatprep.mubr.msk.f32.mxu0 %vm10317_vm0, %v10316_v0 }
 0x350   :  { %8959 = vmatprep.subr.mxu0 %v10316_v0  ;;  %9013 = vmatpush3.msra.mxu1 %v10425_v2 }
 0x351   :  { %8960 = vmatpush3.msra.mxu0 %v10464_v12  ;;  %9014 = vmatprep.subr.mxu1 %v10316_v0 }
 0x352   :  { %8961 = vmatprep.subr.mxu0 %v10316_v0  ;;  %9015 = vmatpush3.msra.mxu1 %v10431_v4 }
 0x353   :  { %8962 = vmatpush3.msra.mxu0 %v10472_v14  ;;  %9016 = vmatprep.subr.mxu1 %v10316_v0 }
 0x354   :  { %8963 = vmatprep.subr.mxu0 %v10316_v0  ;;  %9017 = vmatpush3.msra.mxu1 %v10437_v6 }
 0x355   :  { %8964 = vmatpush3.msra.mxu0 %v10480_v16  ;;  %9018 = vmatprep.subr.mxu1 %v10316_v0 }
 0x356   :  { %8966 = vmatmul.mubr.msk.f32.vlgmr.msra.gmra.mxu0 %vm250_vm1, %v10770_v61  ;;  %8979 = vmatprep.subr.mxu0 %v10316_v0 }
 0x357   :  { %8980 = vmatpush3.msra.mxu0 %v10496_v19  ;;  %8987 = vmatprep.mubr.msk.f32.mxu0 %vm10317_vm0, %v10316_v0 }
 0x358   :  { %8981 = vmatprep.subr.mxu0 %v10316_v0  ;;  %9019 = vmatpush3.msra.mxu1 %v10445_v8 }
 0x359   :  { %8982 = vmatpush3.msra.mxu0 %v10505_v21  ;;  %9020 = vmatprep.mubr.msk.f32.mxu1 %vm10317_vm0, %v10316_v0 }
 0x35a   :  { %8983 = vmatprep.subr.mxu0 %v10316_v0  ;;  %9034 = vmatprep.subr.mxu1 %v10316_v0 }
 0x35b   :  { %8984 = vmatpush3.msra.mxu0 %v10513_v23  ;;  %9021 = vmatmul.mubr.msk.f32.vlgmr.msra.gmra.mxu1 %vm250_vm1, %v10820_v27 }
 0x35c   :  { %8985 = vmatprep.subr.mxu0 %v10316_v0  ;;  %9035 = vmatpush3.msra.mxu1 %v10457_v11 }
 0x35d   :  { %8986 = vmatpush3.msra.mxu0 %v10523_v25  ;;  %9042 = vmatprep.mubr.msk.f32.mxu1 %vm10317_vm0, %v10316_v0 }
 0x35e   :  { %8988 = vmatmul.mubr.msk.f32.vlgmr.msra.gmra.mxu0 %vm250_vm1, %v10739_v29  ;;  %9001 = vmatprep.subr.mxu0 %v10316_v0 }
 0x35f   :  { %9002 = vmatpush3.msra.mxu0 %v10423_v1  ;;  %9009 = vmatprep.mubr.msk.f32.mxu0 %vm10317_vm0, %v10316_v0 }
 0x360   :  { %9003 = vmatprep.subr.mxu0 %v10316_v0  ;;  %9036 = vmatprep.subr.mxu1 %v10316_v0 }
 0x361   :  { %9004 = vmatpush3.msra.mxu0 %v10427_v3  ;;  %9037 = vmatpush3.msra.mxu1 %v10466_v13 }
 0x362   :  { %9005 = vmatprep.subr.mxu0 %v10316_v0  ;;  %9038 = vmatprep.subr.mxu1 %v10316_v0 }
 0x363   :  { %9006 = vmatpush3.msra.mxu0 %v10435_v5  ;;  %9039 = vmatpush3.msra.mxu1 %v10474_v15 }
 0x364   :  { %9007 = vmatprep.subr.mxu0 %v10316_v0  ;;  %9040 = vmatprep.subr.mxu1 %v10316_v0 }
 0x365   :  { %9008 = vmatpush3.msra.mxu0 %v10443_v7  ;;  %9041 = vmatpush3.msra.mxu1 %v10484_v17 }
 0x366   :  { %9023 = vmatprep.subr.mxu0 %v10316_v0  ;;  %9056 = vmatprep.subr.mxu1 %v10316_v0 }
 0x367   :  { %9043 = vmatmul.mubr.msk.f32.vlgmr.msra.gmra.mxu1 %vm250_vm1, %v10820_v27 }
 0x368   :  { %9057 = vmatpush3.msra.mxu1 %v10494_v18  ;;  %9064 = vmatprep.mubr.msk.f32.mxu1 %vm10317_vm0, %v10316_v0 }
 0x369   :  { %9058 = vmatprep.subr.mxu1 %v10316_v0 }
 0x36a   :  { %9059 = vmatpush3.msra.mxu1 %v10503_v20 }
 0x36b   :  { %9060 = vmatprep.subr.mxu1 %v10316_v0 }
 0x36c   :  { %9061 = vmatpush3.msra.mxu1 %v10511_v22 }
 0x36d   :  { %9062 = vmatprep.subr.mxu1 %v10316_v0 }
 0x36e   :  { %9063 = vmatpush3.msra.mxu1 %v10519_v24 }
 0x36f   :  { %9078 = vmatprep.subr.mxu1 %v10316_v0 }
 0x40e   :  { %v1667_v29 = vpop.f32.mrf.mxu0  ;;  %v2034_v30 = vpop.f32.mrf.mxu1 }
 0x40f   :  { %v1741_v31 = vadd.f32 %v1740_v62, %v1667_v29  ;;  %v2035_v48 = vadd.f32 %v10599_v50, %v2034_v30 }
 0x410   :  { %v8945_v32 = vpop.f32.mrf.mxu0  ;;  %v9000_v33 = vpop.f32.mrf.mxu1 }
 0x411   :  { %v1744_v34 = vadd.f32 %v10587_v28, %v1741_v31  ;;  %v10940_v33 = vld [vmem:[#allocation9 + $0x38] sm:$0xff] }
 0x413   :  { %v8098_v35 = vmul.f32 -1.442695, %v1744_v34  ;;  %v10946_v34 = vld [vmem:[#allocation8 + $0x18] sm:$0xff] }
 0x415   :  { %9938 = vpow2.f32 %v8098_v35  ;;  %v10949_v35 = vld [vmem:[#allocation9 + $0x30] sm:$0xff] }
 0x416   :  { %v1817_v37 = vpop.f32.mrf.mxu0 }
 0x417   :  { %v1888_v38 = vadd.f32 %v1887_v9, %v1817_v37  ;;  %v10954_v37 = vld [vmem:[#allocation8 + $0x10] sm:$0xff] }
 0x418   :  { %v8967_v39 = vpop.f32.mrf.mxu0 }
 0x419   :  { %v1891_v40 = vadd.f32 %v10593_v36, %v1888_v38  ;;  %v10957_v38 = vld [vmem:[#allocation9 + $0x28] sm:$0xff] }
 0x41a   :  { %v10962_v39 = vld [vmem:[#allocation8 + $0x8] sm:$0xff] }
 0x41b   :  { %v8101_v41 = vmul.f32 -1.442695, %v1891_v40  ;;  %v10965_v40 = vld [vmem:[#allocation9 + $0x20] sm:$0xff] }
 0x41d   :  { %9940 = vpow2.f32 %v8101_v41  ;;  %v10972_v41 = vld [vmem:[#allocation8 + $0x58] sm:$0xff] }
 0x41e   :  { %v1964_v42 = vpop.f32.mrf.mxu0 }
 0x41f   :  { %v1965_v49 = vadd.f32 %v10604_v52, %v1964_v42  ;;  %v10978_v42 = vld [vmem:[#allocation8] sm:$0xff] }
 0x420   :  { %v8989_v43 = vpop.f32.mrf.mxu0 }
 0x421   :  { %v10981_v43 = vld [vmem:[#allocation8 + $0x50] sm:$0xff] }
 0x422   :  { %v9939_v44 = vpop.eup %9938 }
 0x423   :  { %v1748_v45 = vadd.f32 1.0, %v9939_v44  ;;  %v10988_v44 = vld [vmem:[#allocation8 + $0x48] sm:$0xff] }
 0x425   :  { %9942 = vrcp.f32 %v1748_v45  ;;  %v10992_v45 = vld [vmem:[#allocation8 + $0x40] sm:$0xff] }
 0x42a   :  { %v9941_v46 = vpop.eup %9940 }
 0x42b   :  { %v1895_v47 = vadd.f32 1.0, %v9941_v46  ;;  %v10998_v46 = vld [vmem:[#allocation9 + $0x18] sm:$0xff] }
 0x42d   :  { %9944 = vrcp.f32 %v1895_v47  ;;  %v11004_v47 = vld [vmem:[#allocation9 + $0x10] sm:$0xff] }
 0x432   :  { %v9943_v51 = vpop.eup %9942 }
 0x433   :  { %v2038_v53 = vmul.f32 %v9943_v51, %v2035_v48  ;;  %v11008_v48 = vld [vmem:[#allocation9 + $0x8] sm:$0xff] }
 0x435   :  { %v2039_v54 = vadd.f32 %v2038_v53, %v1965_v49  ;;  %v11012_v49 = vld [vmem:[#allocation9] sm:$0xff] }
 0x437   :  { %9946 = vtanh.f32 %v2039_v54 }
 0x43a   :  { %v9945_v55 = vpop.eup %9944 }
 0x43b   :  { %v2041_v56 = vsub.f32 1.0, %v9945_v55  ;;  %v2043_v59 = vmul.f32 %v9945_v55, %v10770_v61 }
 0x444   :  { %v9947_v57 = vpop.eup %9946 }
 0x445   :  { %v2042_v58 = vmul.f32 %v9947_v57, %v2041_v56  ;;  %v11016_v56 = vld [vmem:[#allocation3 + $0x30] sm:$0xff]  ;;  %v11020_v57 = vld [vmem:[#allocation8 + $0x38] sm:$0xff] }
 0x447   :  { %v10851_v60 = vadd.f32 %v2043_v59, %v2042_v58  ;;  %v11026_v58 = vld [vmem:[#allocation8 + $0x30] sm:$0xff]  ;;  %v11030_v59 = vld [vmem:[#allocation8 + $0x28] sm:$0xff] }
 0x449   :  { %9010 = vmatmul.mubr.msk.f32.vlgmr.msra.gmra.mxu0 %vm250_vm1, %v10851_v60  ;;  %9065 = vmatmul.mubr.msk.f32.vlgmr.msra.gmra.mxu1 %vm250_vm1, %v10851_v60 }
 0x44a   :  { %9024 = vmatpush3.msra.mxu0 %v10455_v10  ;;  %9031 = vmatprep.mubr.msk.f32.mxu0 %vm10317_vm0, %v10316_v0 }
 0x44b   :  { %9025 = vmatprep.subr.mxu0 %v10316_v0  ;;  %9079 = vmatpush3.msra.mxu1 %v10425_v2  ;;  %v2189_v2 = vpop.f32.mrf.mxu1 }
 0x44c   :  { %9026 = vmatpush3.msra.mxu0 %v10464_v12  ;;  %9080 = vmatprep.subr.mxu1 %v10316_v0 }
 0x44d   :  { %9027 = vmatprep.subr.mxu0 %v10316_v0  ;;  %9081 = vmatpush3.msra.mxu1 %v10431_v4  ;;  %v9022_v4 = vpop.f32.mrf.mxu1 }
 0x44e   :  { %9028 = vmatpush3.msra.mxu0 %v10472_v14  ;;  %9082 = vmatprep.subr.mxu1 %v10316_v0  ;;  %v11046_v4 = vld [vmem:[#allocation9 + $0x50] sm:$0xff] }
 0x44f   :  { %9029 = vmatprep.subr.mxu0 %v10316_v0  ;;  %9083 = vmatpush3.msra.mxu1 %v10437_v6 }
 0x450   :  { %9030 = vmatpush3.msra.mxu0 %v10480_v16  ;;  %9084 = vmatprep.subr.mxu1 %v10316_v0 }
 0x451   :  { %9032 = vmatmul.mubr.msk.f32.vlgmr.msra.gmra.mxu0 %vm250_vm1, %v10851_v60  ;;  %9045 = vmatprep.subr.mxu0 %v10316_v0 }
 0x452   :  { %9046 = vmatpush3.msra.mxu0 %v10496_v19  ;;  %9053 = vmatprep.mubr.msk.f32.mxu0 %vm10317_vm0, %v10316_v0 }
 0x453   :  { %9047 = vmatprep.subr.mxu0 %v10316_v0  ;;  %9085 = vmatpush3.msra.mxu1 %v10445_v8  ;;  %v10901_v8 = vld [vmem:[#allocation3 + $0x28] sm:$0xff] }
 0x454   :  { %9048 = vmatpush3.msra.mxu0 %v10505_v21  ;;  %9086 = vmatprep.mubr.msk.f32.mxu1 %vm10317_vm0, %v10316_v0 }
 0x455   :  { %9049 = vmatprep.subr.mxu0 %v10316_v0  ;;  %9100 = vmatprep.subr.mxu1 %v10316_v0 }
 0x456   :  { %9050 = vmatpush3.msra.mxu0 %v10513_v23  ;;  %9087 = vmatmul.mubr.msk.f32.vlgmr.msra.gmra.mxu1 %vm250_vm1, %v10901_v8 }
 0x457   :  { %9051 = vmatprep.subr.mxu0 %v10316_v0  ;;  %9101 = vmatpush3.msra.mxu1 %v10457_v11 }
 0x458   :  { %9052 = vmatpush3.msra.mxu0 %v10523_v25 }
 0x459   :  { %9054 = vmatmul.mubr.msk.f32.vlgmr.msra.gmra.mxu0 %vm250_vm1, %v10820_v27  ;;  %9067 = vmatprep.subr.mxu0 %v10316_v0 }
 0x45a   :  { %9068 = vmatpush3.msra.mxu0 %v10423_v1  ;;  %9075 = vmatprep.mubr.msk.f32.mxu0 %vm10317_vm0, %v10316_v0  ;;  %v2336_v1 = vpop.f32.mrf.mxu1 }
 0x45b   :  { %9069 = vmatprep.subr.mxu0 %v10316_v0 }
 0x45c   :  { %9070 = vmatpush3.msra.mxu0 %v10427_v3  ;;  %v9044_v6 = vpop.f32.mrf.mxu1  ;;  %v10906_v3 = vld [vmem:[#allocation15] sm:$0xff] }
 0x45d   :  { %9071 = vmatprep.subr.mxu0 %v10316_v0  ;;  %9108 = vmatprep.mubr.msk.f32.mxu1 %vm10317_vm0, %v10906_v3  ;;  %v11054_v6 = vld [vmem:[#allocation9 + $0x40] sm:$0xff] }
 0x45e   :  { %9072 = vmatpush3.msra.mxu0 %v10435_v5  ;;  %9102 = vmatprep.subr.mxu1 %v10906_v3 }
 0x45f   :  { %9073 = vmatprep.subr.mxu0 %v10316_v0  ;;  %9103 = vmatpush3.msra.mxu1 %v10466_v13 }
 0x460   :  { %9074 = vmatpush3.msra.mxu0 %v10443_v7  ;;  %9104 = vmatprep.subr.mxu1 %v10906_v3 }
 0x461   :  { %9089 = vmatprep.subr.mxu0 %v10316_v0  ;;  %9105 = vmatpush3.msra.mxu1 %v10474_v15 }
 0x462   :  { %9106 = vmatprep.subr.mxu1 %v10906_v3 }
 0x463   :  { %9107 = vmatpush3.msra.mxu1 %v10484_v17 }
 0x464   :  { %9122 = vmatprep.subr.mxu1 %v10906_v3  ;;  %9109 = vmatmul.mubr.msk.f32.vlgmr.msra.gmra.mxu1 %vm250_vm1, %v10901_v8 }
 0x465   :  { %9123 = vmatpush3.msra.mxu1 %v10494_v18  ;;  %9130 = vmatprep.mubr.msk.f32.mxu1 %vm10317_vm0, %v10906_v3 }
 0x466   :  { %9124 = vmatprep.subr.mxu1 %v10906_v3 }
 0x467   :  { %9125 = vmatpush3.msra.mxu1 %v10503_v20 }
 0x468   :  { %9126 = vmatprep.subr.mxu1 %v10906_v3 }
 0x469   :  { %9127 = vmatpush3.msra.mxu1 %v10511_v22 }
 0x46a   :  { %9128 = vmatprep.subr.mxu1 %v10906_v3 }
 0x46b   :  { %9129 = vmatpush3.msra.mxu1 %v10519_v24 }
 0x46c   :  { %9144 = vmatprep.subr.mxu1 %v10906_v3 }
 0x509   :  { %v2116_v0 = vpop.f32.mrf.mxu0  ;;  %v2483_v5 = vpop.f32.mrf.mxu1 }
 0x50a   :  { %v2190_v7 = vadd.f32 %v2189_v2, %v2116_v0  ;;  %v2484_v25 = vadd.f32 %v10599_v50, %v2483_v5  ;;  %v11040_v2 = vld [vmem:[#allocation9 + $0x58] sm:$0xff] }
 0x50b   :  { %v9011_v10 = vpop.f32.mrf.mxu0  ;;  %v9066_v11 = vpop.f32.mrf.mxu1 }
 0x50c   :  { %v2193_v12 = vadd.f32 %v10587_v28, %v2190_v7 }
 0x50e   :  { %v8106_v13 = vmul.f32 -1.442695, %v2193_v12 }
 0x510   :  { %9948 = vpow2.f32 %v8106_v13 }
 0x511   :  { %v2266_v14 = vpop.f32.mrf.mxu0 }
 0x512   :  { %v2337_v15 = vadd.f32 %v2336_v1, %v2266_v14  ;;  %v11050_v1 = vld [vmem:[#allocation9 + $0x48] sm:$0xff] }
 0x513   :  { %v9033_v16 = vpop.f32.mrf.mxu0 }
 0x514   :  { %v2340_v17 = vadd.f32 %v10593_v36, %v2337_v15 }
 0x516   :  { %v8109_v18 = vmul.f32 -1.442695, %v2340_v17  ;;  %v2638_v51 = vpop.f32.mrf.mxu1 }
 0x518   :  { %9950 = vpow2.f32 %v8109_v18  ;;  %v9088_v53 = vpop.f32.mrf.mxu1 }
 0x519   :  { %v2413_v19 = vpop.f32.mrf.mxu0 }
 0x51a   :  { %v2414_v61 = vadd.f32 %v10604_v52, %v2413_v19 }
 0x51b   :  { %v9055_v20 = vpop.f32.mrf.mxu0 }
 0x51d   :  { %v9949_v21 = vpop.eup %9948 }
 0x51e   :  { %v2197_v22 = vadd.f32 1.0, %v9949_v21 }
 0x520   :  { %9952 = vrcp.f32 %v2197_v22 }
 0x524   :  { %v2785_v54 = vpop.f32.mrf.mxu1 }
 0x525   :  { %v9951_v23 = vpop.eup %9950 }
 0x526   :  { %v2344_v24 = vadd.f32 1.0, %v9951_v23  ;;  %v9110_v55 = vpop.f32.mrf.mxu1 }
 0x528   :  { %9954 = vrcp.f32 %v2344_v24 }
 0x52d   :  { %v9953_v62 = vpop.eup %9952 }
 0x52e   :  { %v2487_v63 = vmul.f32 %v9953_v62, %v2484_v25 }
 0x530   :  { %v2488_v9 = vadd.f32 %v2487_v63, %v2414_v61 }
 0x532   :  { %9956 = vtanh.f32 %v2488_v9 }
 0x535   :  { %v9955_v26 = vpop.eup %9954 }
 0x536   :  { %v2490_v27 = vsub.f32 1.0, %v9955_v26  ;;  %v2492_v31 = vmul.f32 %v9955_v26, %v10851_v60  ;;  %v11034_v60 = vld [vmem:[#allocation8 + $0x20] sm:$0xff] }
 0x53f   :  { %v9957_v29 = vpop.eup %9956 }
 0x540   :  { %v2491_v30 = vmul.f32 %v9957_v29, %v2490_v27 }
 0x542   :  { %v10934_v32 = vadd.f32 %v2492_v31, %v2491_v30 }
 0x544   :  { %9076 = vmatmul.mubr.msk.f32.vlgmr.msra.gmra.mxu0 %vm250_vm1, %v10934_v32  ;;  %9131 = vmatmul.mubr.msk.f32.vlgmr.msra.gmra.mxu1 %vm250_vm1, %v10934_v32 }
 0x545   :  { %9090 = vmatpush3.msra.mxu0 %v10940_v33  ;;  %9097 = vmatprep.mubr.msk.f32.mxu0 %vm10317_vm0, %v10906_v3 }
 0x546   :  { %9091 = vmatprep.subr.mxu0 %v10906_v3  ;;  %9145 = vmatpush3.msra.mxu1 %v10946_v34 }
 0x547   :  { %9092 = vmatpush3.msra.mxu0 %v10949_v35  ;;  %9146 = vmatprep.subr.mxu1 %v10906_v3 }
 0x548   :  { %9093 = vmatprep.subr.mxu0 %v10906_v3  ;;  %9147 = vmatpush3.msra.mxu1 %v10954_v37 }
 0x549   :  { %9094 = vmatpush3.msra.mxu0 %v10957_v38  ;;  %9148 = vmatprep.subr.mxu1 %v10906_v3 }
 0x54a   :  { %9095 = vmatprep.subr.mxu0 %v10906_v3  ;;  %9149 = vmatpush3.msra.mxu1 %v10962_v39 }
 0x54b   :  { %9096 = vmatpush3.msra.mxu0 %v10965_v40  ;;  %9150 = vmatprep.subr.mxu1 %v10906_v3 }
 0x54c   :  { %9098 = vmatmul.mubr.msk.f32.vlgmr.msra.gmra.mxu0 %vm250_vm1, %v10934_v32  ;;  %9111 = vmatprep.subr.mxu0 %v10906_v3 }
 0x54d   :  { %9112 = vmatpush3.msra.mxu0 %v10972_v41  ;;  %9119 = vmatprep.mubr.msk.f32.mxu0 %vm10317_vm0, %v10906_v3 }
 0x54e   :  { %9113 = vmatprep.subr.mxu0 %v10906_v3  ;;  %9151 = vmatpush3.msra.mxu1 %v10978_v42 }
 0x54f   :  { %9114 = vmatpush3.msra.mxu0 %v10981_v43  ;;  %9152 = vmatprep.mubr.msk.f32.mxu1 %vm10317_vm0, %v10906_v3 }
 0x550   :  { %9115 = vmatprep.subr.mxu0 %v10906_v3  ;;  %9166 = vmatprep.subr.mxu1 %v10906_v3 }
 0x551   :  { %9116 = vmatpush3.msra.mxu0 %v10988_v44  ;;  %9153 = vmatmul.mubr.msk.f32.vlgmr.msra.gmra.mxu1 %vm250_vm1, %v11016_v56 }
 0x552   :  { %9117 = vmatprep.subr.mxu0 %v10906_v3  ;;  %9167 = vmatpush3.msra.mxu1 %v11020_v57 }
 0x553   :  { %9118 = vmatpush3.msra.mxu0 %v10992_v45  ;;  %9174 = vmatprep.mubr.msk.f32.mxu1 %vm10317_vm0, %v10906_v3 }
 0x554   :  { %9120 = vmatmul.mubr.msk.f32.vlgmr.msra.gmra.mxu0 %vm250_vm1, %v10901_v8  ;;  %9133 = vmatprep.subr.mxu0 %v10906_v3 }
 0x555   :  { %9134 = vmatpush3.msra.mxu0 %v10998_v46  ;;  %9141 = vmatprep.mubr.msk.f32.mxu0 %vm10317_vm0, %v10906_v3 }
 0x556   :  { %9135 = vmatprep.subr.mxu0 %v10906_v3  ;;  %9168 = vmatprep.subr.mxu1 %v10906_v3 }
 0x557   :  { %9136 = vmatpush3.msra.mxu0 %v11004_v47  ;;  %9169 = vmatpush3.msra.mxu1 %v11026_v58 }
 0x558   :  { %9137 = vmatprep.subr.mxu0 %v10906_v3  ;;  %9170 = vmatprep.subr.mxu1 %v10906_v3 }
 0x559   :  { %9138 = vmatpush3.msra.mxu0 %v11008_v48  ;;  %9171 = vmatpush3.msra.mxu1 %v11030_v59 }
 0x55a   :  { %9139 = vmatprep.subr.mxu0 %v10906_v3  ;;  %9172 = vmatprep.subr.mxu1 %v10906_v3 }
 0x55b   :  { %9140 = vmatpush3.msra.mxu0 %v11012_v49  ;;  %9173 = vmatpush3.msra.mxu1 %v11034_v60 }
 0x55c   :  { %9155 = vmatprep.subr.mxu0 %v10906_v3  ;;  %9188 = vmatprep.subr.mxu1 %v10906_v3 }
 0x55d   :  { %9175 = vmatmul.mubr.msk.f32.vlgmr.msra.gmra.mxu1 %vm250_vm1, %v11016_v56 }
 0x55e   :  { %9189 = vmatpush3.msra.mxu1 %v11040_v2  ;;  %9196 = vmatprep.mubr.msk.f32.mxu1 %vm10317_vm0, %v10906_v3 }
 0x55f   :  { %9190 = vmatprep.subr.mxu1 %v10906_v3 }
 0x560   :  { %9191 = vmatpush3.msra.mxu1 %v11046_v4 }
 0x561   :  { %9192 = vmatprep.subr.mxu1 %v10906_v3 }
 0x562   :  { %9193 = vmatpush3.msra.mxu1 %v11050_v1 }
 0x563   :  { %9194 = vmatprep.subr.mxu1 %v10906_v3 }
 0x564   :  { %9195 = vmatpush3.msra.mxu1 %v11054_v6 }
 0x565   :  { %9210 = vmatprep.subr.mxu1 %v10906_v3 }
 0x604   :  { %v2565_v8 = vpop.f32.mrf.mxu0  ;;  %v2932_v0 = vpop.f32.mrf.mxu1 }
 0x605   :  { %v2639_v5 = vadd.f32 %v2638_v51, %v2565_v8  ;;  %v2933_v24 = vadd.f32 %v10599_v50, %v2932_v0  ;;  %v11142_v8 = vld [vmem:[%s12088_s4] ss:$0 sm:$0xff] }
 0x606   :  { %v9077_v7 = vpop.f32.mrf.mxu0  ;;  %v9132_v10 = vpop.f32.mrf.mxu1 }
 0x607   :  { %v2642_v11 = vadd.f32 %v10587_v28, %v2639_v5 }
 0x609   :  { %v8114_v12 = vmul.f32 -1.442695, %v2642_v11 }
 0x60b   :  { %9958 = vpow2.f32 %v8114_v12  ;;  %v11148_v12 = vld [vmem:[%s12088_s4 + $0x1] ss:$0 sm:$0xff] }
 0x60c   :  { %v2715_v13 = vpop.f32.mrf.mxu0 }
 0x60d   :  { %v2786_v14 = vadd.f32 %v2785_v54, %v2715_v13 }
 0x60e   :  { %v9099_v15 = vpop.f32.mrf.mxu0 }
 0x60f   :  { %v2789_v16 = vadd.f32 %v10593_v36, %v2786_v14 }
 0x611   :  { %v8117_v17 = vmul.f32 -1.442695, %v2789_v16  ;;  %v3087_v50 = vpop.f32.mrf.mxu1 }
 0x613   :  { %9960 = vpow2.f32 %v8117_v17 }
 0x614   :  { %v2862_v18 = vpop.f32.mrf.mxu0 }
 0x615   :  { %v2863_v28 = vadd.f32 %v10604_v52, %v2862_v18  ;;  %v9154_v52 = vpop.f32.mrf.mxu1 }
 0x616   :  { %v9121_v19 = vpop.f32.mrf.mxu0 }
 0x618   :  { %v9959_v20 = vpop.eup %9958 }
 0x619   :  { %v2646_v21 = vadd.f32 1.0, %v9959_v20 }
 0x61b   :  { %9962 = vrcp.f32 %v2646_v21  ;;  %v11154_v21 = vld [vmem:[%s12088_s4 + $0x3] ss:$0 sm:$0xff] }
 0x61d   :  { %v3234_v30 = vpop.f32.mrf.mxu1 }
 0x61f   :  { %v9176_v31 = vpop.f32.mrf.mxu1 }
 0x620   :  { %v9961_v22 = vpop.eup %9960  ;;  %v11214_v31 = vld [vmem:[#allocation3 + $0x40] sm:$0xff] }
 0x621   :  { %v2793_v23 = vadd.f32 1.0, %v9961_v22 }
 0x623   :  { %9964 = vrcp.f32 %v2793_v23  ;;  %v11160_v23 = vld [vmem:[%s12088_s4 + $0x2] ss:$0 sm:$0xff] }
 0x628   :  { %v9963_v25 = vpop.eup %9962 }
 0x629   :  { %v2936_v61 = vmul.f32 %v9963_v25, %v2933_v24 }
 0x62b   :  { %v2937_v62 = vadd.f32 %v2936_v61, %v2863_v28 }
 0x62d   :  { %9966 = vtanh.f32 %v2937_v62 }
 0x630   :  { %v9965_v63 = vpop.eup %9964 }
 0x631   :  { %v2939_v36 = vsub.f32 1.0, %v9965_v63  ;;  %v2941_v27 = vmul.f32 %v9965_v63, %v10934_v32  ;;  %v11113_v32 = vld [vmem:[#allocation3 + $0x38] sm:$0xff] }
 0x63a   :  { %v9967_v9 = vpop.eup %9966 }
 0x63b   :  { %v2940_v26 = vmul.f32 %v9967_v9, %v2939_v36 }
 0x63d   :  { %v11063_v29 = vadd.f32 %v2941_v27, %v2940_v26 }
 0x63f   :  { %9142 = vmatmul.mubr.msk.f32.vlgmr.msra.gmra.mxu0 %vm250_vm1, %v11063_v29  ;;  %9197 = vmatmul.mubr.msk.f32.vlgmr.msra.gmra.mxu1 %vm250_vm1, %v11063_v29 }
 0x640   :  { %9156 = vmatpush3.msra.mxu0 %v10940_v33  ;;  %9163 = vmatprep.mubr.msk.f32.mxu0 %vm10317_vm0, %v10906_v3 }
 0x641   :  { %9157 = vmatprep.subr.mxu0 %v10906_v3  ;;  %9211 = vmatpush3.msra.mxu1 %v10946_v34 }
 0x642   :  { %9158 = vmatpush3.msra.mxu0 %v10949_v35  ;;  %9212 = vmatprep.subr.mxu1 %v10906_v3 }
 0x643   :  { %9159 = vmatprep.subr.mxu0 %v10906_v3  ;;  %9213 = vmatpush3.msra.mxu1 %v10954_v37 }
 0x644   :  { %9160 = vmatpush3.msra.mxu0 %v10957_v38  ;;  %9214 = vmatprep.subr.mxu1 %v10906_v3 }
 0x645   :  { %9161 = vmatprep.subr.mxu0 %v10906_v3  ;;  %9215 = vmatpush3.msra.mxu1 %v10962_v39 }
 0x646   :  { %9162 = vmatpush3.msra.mxu0 %v10965_v40  ;;  %9216 = vmatprep.subr.mxu1 %v10906_v3 }
 0x647   :  { %9164 = vmatmul.mubr.msk.f32.vlgmr.msra.gmra.mxu0 %vm250_vm1, %v11063_v29  ;;  %9177 = vmatprep.subr.mxu0 %v10906_v3 }
 0x648   :  { %9178 = vmatpush3.msra.mxu0 %v10972_v41  ;;  %9185 = vmatprep.mubr.msk.f32.mxu0 %vm10317_vm0, %v10906_v3 }
 0x649   :  { %9179 = vmatprep.subr.mxu0 %v10906_v3  ;;  %9217 = vmatpush3.msra.mxu1 %v10978_v42 }
 0x64a   :  { %9180 = vmatpush3.msra.mxu0 %v10981_v43  ;;  %9218 = vmatprep.mubr.msk.f32.mxu1 %vm10317_vm0, %v10906_v3 }
 0x64b   :  { %9181 = vmatprep.subr.mxu0 %v10906_v3  ;;  %9232 = vmatprep.subr.mxu1 %v10906_v3 }
 0x64c   :  { %9182 = vmatpush3.msra.mxu0 %v10988_v44  ;;  %9219 = vmatmul.mubr.msk.f32.vlgmr.msra.gmra.mxu1 %vm250_vm1, %v11113_v32 }
 0x64d   :  { %9183 = vmatprep.subr.mxu0 %v10906_v3  ;;  %9233 = vmatpush3.msra.mxu1 %v11020_v57 }
 0x64e   :  { %9184 = vmatpush3.msra.mxu0 %v10992_v45  ;;  %9240 = vmatprep.mubr.msk.f32.mxu1 %vm10317_vm0, %v10906_v3 }
 0x64f   :  { %9186 = vmatmul.mubr.msk.f32.vlgmr.msra.gmra.mxu0 %vm250_vm1, %v11016_v56  ;;  %9199 = vmatprep.subr.mxu0 %v10906_v3 }
 0x650   :  { %9200 = vmatpush3.msra.mxu0 %v10998_v46  ;;  %9207 = vmatprep.mubr.msk.f32.mxu0 %vm10317_vm0, %v10906_v3 }
 0x651   :  { %9201 = vmatprep.subr.mxu0 %v10906_v3  ;;  %9234 = vmatprep.subr.mxu1 %v10906_v3 }
 0x652   :  { %9202 = vmatpush3.msra.mxu0 %v11004_v47  ;;  %9235 = vmatpush3.msra.mxu1 %v11026_v58 }
 0x653   :  { %9203 = vmatprep.subr.mxu0 %v10906_v3  ;;  %9236 = vmatprep.subr.mxu1 %v10906_v3 }
 0x654   :  { %9204 = vmatpush3.msra.mxu0 %v11008_v48  ;;  %9237 = vmatpush3.msra.mxu1 %v11030_v59 }
 0x655   :  { %9205 = vmatprep.subr.mxu0 %v10906_v3  ;;  %9238 = vmatprep.subr.mxu1 %v10906_v3 }
 0x656   :  { %9206 = vmatpush3.msra.mxu0 %v11012_v49  ;;  %9239 = vmatpush3.msra.mxu1 %v11034_v60 }
 0x657   :  { %9221 = vmatprep.subr.mxu0 %v10906_v3  ;;  %9254 = vmatprep.subr.mxu1 %v10906_v3 }
 0x658   :  { %9241 = vmatmul.mubr.msk.f32.vlgmr.msra.gmra.mxu1 %vm250_vm1, %v11113_v32 }
 0x659   :  { %9255 = vmatpush3.msra.mxu1 %v11040_v2  ;;  %9262 = vmatprep.mubr.msk.f32.mxu1 %vm10317_vm0, %v10906_v3 }
 0x65a   :  { %9256 = vmatprep.subr.mxu1 %v10906_v3 }
 0x65b   :  { %9257 = vmatpush3.msra.mxu1 %v11046_v4 }
 0x65c   :  { %9258 = vmatprep.subr.mxu1 %v10906_v3 }
 0x65d   :  { %9259 = vmatpush3.msra.mxu1 %v11050_v1 }
 0x65e   :  { %9260 = vmatprep.subr.mxu1 %v10906_v3 }
 0x65f   :  { %9261 = vmatpush3.msra.mxu1 %v11054_v6 }
 0x660   :  { %9276 = vmatprep.subr.mxu1 %v10906_v3 }
 0x6ff   :  { %v3014_v51 = vpop.f32.mrf.mxu0  ;;  %v3381_v53 = vpop.f32.mrf.mxu1 }
 0x700   :  { %v3088_v54 = vadd.f32 %v3087_v50, %v3014_v51  ;;  %v3382_v22 = vadd.f32 %v11154_v21, %v3381_v53 }
 0x701   :  { %v9143_v55 = vpop.f32.mrf.mxu0  ;;  %v9198_v56 = vpop.f32.mrf.mxu1 }
 0x702   :  { %v3091_v0 = vadd.f32 %v11142_v8, %v3088_v54 }
 0x704   :  { %v8122_v5 = vmul.f32 -1.442695, %v3091_v0 }
 0x706   :  { %9968 = vpow2.f32 %v8122_v5 }
 0x707   :  { %v3164_v7 = vpop.f32.mrf.mxu0 }
 0x708   :  { %v3235_v10 = vadd.f32 %v3234_v30, %v3164_v7 }
 0x709   :  { %v9165_v11 = vpop.f32.mrf.mxu0 }
 0x70a   :  { %v3238_v13 = vadd.f32 %v11148_v12, %v3235_v10 }
 0x70c   :  { %v8125_v14 = vmul.f32 -1.442695, %v3238_v13 }
 0x70e   :  { %9970 = vpow2.f32 %v8125_v14 }
 0x70f   :  { %v3311_v15 = vpop.f32.mrf.mxu0 }
 0x710   :  { %v3312_v24 = vadd.f32 %v11160_v23, %v3311_v15 }
 0x711   :  { %v9187_v16 = vpop.f32.mrf.mxu0 }
 0x713   :  { %v9969_v17 = vpop.eup %9968 }
 0x714   :  { %v3095_v18 = vadd.f32 1.0, %v9969_v17 }
 0x716   :  { %9972 = vrcp.f32 %v3095_v18 }
 0x71b   :  { %v9971_v19 = vpop.eup %9970 }
 0x71c   :  { %v3242_v20 = vadd.f32 1.0, %v9971_v19 }
 0x71e   :  { %9974 = vrcp.f32 %v3242_v20 }
 0x723   :  { %v9973_v28 = vpop.eup %9972 }
 0x724   :  { %v3385_v25 = vmul.f32 %v9973_v28, %v3382_v22 }
 0x726   :  { %v3386_v61 = vadd.f32 %v3385_v25, %v3312_v24 }
 0x728   :  { %9976 = vtanh.f32 %v3386_v61 }
 0x72b   :  { %v9975_v62 = vpop.eup %9974 }
 0x72c   :  { %v3388_v63 = vsub.f32 1.0, %v9975_v62  ;;  %v3390_v26 = vmul.f32 %v9975_v62, %v11063_v29  ;;  %v3536_v29 = vpop.f32.mrf.mxu1 }
 0x72e   :  { %v9220_v50 = vpop.f32.mrf.mxu1 }
 0x730   :  { %v3683_v52 = vpop.f32.mrf.mxu1 }
 0x732   :  { %v9242_v30 = vpop.f32.mrf.mxu1 }
 0x735   :  { %v9977_v36 = vpop.eup %9976 }
 0x736   :  { %v3389_v9 = vmul.f32 %v9977_v36, %v3388_v63 }
 0x738   :  { %v11164_v27 = vadd.f32 %v3390_v26, %v3389_v9 }
 0x73a   :  { %9208 = vmatmul.mubr.msk.f32.vlgmr.msra.gmra.mxu0 %vm250_vm1, %v11164_v27  ;;  %9263 = vmatmul.mubr.msk.f32.vlgmr.msra.gmra.mxu1 %vm250_vm1, %v11164_v27 }
 0x73b   :  { %9222 = vmatpush3.msra.mxu0 %v10940_v33  ;;  %9229 = vmatprep.mubr.msk.f32.mxu0 %vm10317_vm0, %v10906_v3 }
 0x73c   :  { %9223 = vmatprep.subr.mxu0 %v10906_v3  ;;  %9277 = vmatpush3.msra.mxu1 %v10946_v34 }
 0x73d   :  { %9224 = vmatpush3.msra.mxu0 %v10949_v35  ;;  %9278 = vmatprep.subr.mxu1 %v10906_v3 }
 0x73e   :  { %9225 = vmatprep.subr.mxu0 %v10906_v3  ;;  %9279 = vmatpush3.msra.mxu1 %v10954_v37 }
 0x73f   :  { %9226 = vmatpush3.msra.mxu0 %v10957_v38  ;;  %9280 = vmatprep.subr.mxu1 %v10906_v3 }
 0x740   :  { %9227 = vmatprep.subr.mxu0 %v10906_v3  ;;  %9281 = vmatpush3.msra.mxu1 %v10962_v39 }
 0x741   :  { %9228 = vmatpush3.msra.mxu0 %v10965_v40  ;;  %9282 = vmatprep.subr.mxu1 %v10906_v3 }
 0x742   :  { %9230 = vmatmul.mubr.msk.f32.vlgmr.msra.gmra.mxu0 %vm250_vm1, %v11164_v27  ;;  %9243 = vmatprep.subr.mxu0 %v10906_v3 }
 0x743   :  { %9244 = vmatpush3.msra.mxu0 %v10972_v41  ;;  %9251 = vmatprep.mubr.msk.f32.mxu0 %vm10317_vm0, %v10906_v3 }
 0x744   :  { %9245 = vmatprep.subr.mxu0 %v10906_v3  ;;  %9283 = vmatpush3.msra.mxu1 %v10978_v42 }
 0x745   :  { %9246 = vmatpush3.msra.mxu0 %v10981_v43  ;;  %9284 = vmatprep.mubr.msk.f32.mxu1 %vm10317_vm0, %v10906_v3 }
 0x746   :  { %9247 = vmatprep.subr.mxu0 %v10906_v3  ;;  %9298 = vmatprep.subr.mxu1 %v10906_v3 }
 0x747   :  { %9248 = vmatpush3.msra.mxu0 %v10988_v44  ;;  %9285 = vmatmul.mubr.msk.f32.vlgmr.msra.gmra.mxu1 %vm250_vm1, %v11214_v31 }
 0x748   :  { %9249 = vmatprep.subr.mxu0 %v10906_v3  ;;  %9299 = vmatpush3.msra.mxu1 %v11020_v57 }
 0x749   :  { %9250 = vmatpush3.msra.mxu0 %v10992_v45  ;;  %9306 = vmatprep.mubr.msk.f32.mxu1 %vm10317_vm0, %v10906_v3 }
 0x74a   :  { %9252 = vmatmul.mubr.msk.f32.vlgmr.msra.gmra.mxu0 %vm250_vm1, %v11113_v32  ;;  %9265 = vmatprep.subr.mxu0 %v10906_v3 }
 0x74b   :  { %9266 = vmatpush3.msra.mxu0 %v10998_v46  ;;  %9273 = vmatprep.mubr.msk.f32.mxu0 %vm10317_vm0, %v10906_v3 }
 0x74c   :  { %9267 = vmatprep.subr.mxu0 %v10906_v3  ;;  %9300 = vmatprep.subr.mxu1 %v10906_v3 }
 0x74d   :  { %9268 = vmatpush3.msra.mxu0 %v11004_v47  ;;  %9301 = vmatpush3.msra.mxu1 %v11026_v58 }
 0x74e   :  { %9269 = vmatprep.subr.mxu0 %v10906_v3  ;;  %9302 = vmatprep.subr.mxu1 %v10906_v3 }
 0x74f   :  { %9270 = vmatpush3.msra.mxu0 %v11008_v48  ;;  %9303 = vmatpush3.msra.mxu1 %v11030_v59 }
 0x750   :  { %9271 = vmatprep.subr.mxu0 %v10906_v3  ;;  %9304 = vmatprep.subr.mxu1 %v10906_v3 }
 0x751   :  { %9272 = vmatpush3.msra.mxu0 %v11012_v49  ;;  %9305 = vmatpush3.msra.mxu1 %v11034_v60 }
 0x752   :  { %9287 = vmatprep.subr.mxu0 %v10906_v3  ;;  %9320 = vmatprep.subr.mxu1 %v10906_v3 }
 0x753   :  { %9307 = vmatmul.mubr.msk.f32.vlgmr.msra.gmra.mxu1 %vm250_vm1, %v11214_v31 }
 0x754   :  { %9321 = vmatpush3.msra.mxu1 %v11040_v2  ;;  %9328 = vmatprep.mubr.msk.f32.mxu1 %vm10317_vm0, %v10906_v3 }
 0x755   :  { %9322 = vmatprep.subr.mxu1 %v10906_v3 }
 0x756   :  { %9323 = vmatpush3.msra.mxu1 %v11046_v4 }
 0x757   :  { %9324 = vmatprep.subr.mxu1 %v10906_v3 }
 0x758   :  { %9325 = vmatpush3.msra.mxu1 %v11050_v1 }
 0x759   :  { %9326 = vmatprep.subr.mxu1 %v10906_v3 }
 0x75a   :  { %9327 = vmatpush3.msra.mxu1 %v11054_v6 }
 0x75b   :  { %9342 = vmatprep.subr.mxu1 %v10906_v3 }
 0x7fa   :  { %v3463_v32 = vpop.f32.mrf.mxu0  ;;  %v3830_v51 = vpop.f32.mrf.mxu1 }
 0x7fb   :  { %v3537_v53 = vadd.f32 %v3536_v29, %v3463_v32  ;;  %v3831_v20 = vadd.f32 %v11154_v21, %v3830_v51 }
 0x7fc   :  { %v9209_v54 = vpop.f32.mrf.mxu0  ;;  %v9264_v55 = vpop.f32.mrf.mxu1 }
 0x7fd   :  { %v3540_v56 = vadd.f32 %v11142_v8, %v3537_v53 }
 0x7ff   :  { %v8130_v0 = vmul.f32 -1.442695, %v3540_v56 }
 0x801   :  { %9978 = vpow2.f32 %v8130_v0 }
 0x802   :  { %v3613_v5 = vpop.f32.mrf.mxu0 }
 0x803   :  { %v3684_v7 = vadd.f32 %v3683_v52, %v3613_v5 }
 0x804   :  { %v9231_v10 = vpop.f32.mrf.mxu0 }
 0x805   :  { %v3687_v11 = vadd.f32 %v11148_v12, %v3684_v7 }
 0x807   :  { %v8133_v13 = vmul.f32 -1.442695, %v3687_v11 }
 0x809   :  { %9980 = vpow2.f32 %v8133_v13 }
 0x80a   :  { %v3760_v14 = vpop.f32.mrf.mxu0 }
 0x80b   :  { %v3761_v22 = vadd.f32 %v11160_v23, %v3760_v14  ;;  %v11375_v14 = vld [vmem:[#allocation6] sm:$0xff] }
 0x80c   :  { %v9253_v15 = vpop.f32.mrf.mxu0 }
 0x80d   :  { %v11378_v15 = vld [vmem:[#allocation11 + $0x38] sm:$0xff] }
 0x80e   :  { %v9979_v16 = vpop.eup %9978 }
 0x80f   :  { %v3544_v17 = vadd.f32 1.0, %v9979_v16  ;;  %v11381_v16 = vld [vmem:[#allocation12 + $0x18] sm:$0xff] }
 0x811   :  { %9982 = vrcp.f32 %v3544_v17  ;;  %v11386_v17 = vld [vmem:[#allocation11 + $0x30] sm:$0xff] }
 0x816   :  { %v9981_v18 = vpop.eup %9980 }
 0x817   :  { %v3691_v19 = vadd.f32 1.0, %v9981_v18  ;;  %v11390_v18 = vld [vmem:[#allocation12 + $0x10] sm:$0xff] }
 0x819   :  { %9984 = vrcp.f32 %v3691_v19  ;;  %v11393_v19 = vld [vmem:[#allocation11 + $0x28] sm:$0xff] }
 0x81e   :  { %v9983_v24 = vpop.eup %9982 }
 0x81f   :  { %v3834_v28 = vmul.f32 %v9983_v24, %v3831_v20  ;;  %v11399_v20 = vld [vmem:[#allocation12 + $0x8] sm:$0xff]  ;;  %v11408_v24 = vld [vmem:[#allocation12 + $0x58] sm:$0xff] }
 0x821   :  { %v3835_v25 = vadd.f32 %v3834_v28, %v3761_v22  ;;  %v11402_v22 = vld [vmem:[#allocation11 + $0x20] sm:$0xff] }
 0x822   :  { %v11411_v28 = vld [vmem:[#allocation12] sm:$0xff] }
 0x823   :  { %9986 = vtanh.f32 %v3835_v25  ;;  %v11414_v25 = vld [vmem:[#allocation15] sm:$0xff] }
 0x826   :  { %v9985_v61 = vpop.eup %9984 }
 0x827   :  { %v3837_v62 = vsub.f32 1.0, %v9985_v61  ;;  %v3839_v9 = vmul.f32 %v9985_v61, %v11164_v27  ;;  %v11420_v61 = vld [vmem:[#allocation12 + $0x50] sm:$0xff] }
 0x830   :  { %v9987_v63 = vpop.eup %9986 }
 0x831   :  { %v3838_v36 = vmul.f32 %v9987_v63, %v3837_v62  ;;  %v11432_v62 = vld [vmem:[#allocation12 + $0x40] sm:$0xff] }
 0x833   :  { %v11245_v26 = vadd.f32 %v3839_v9, %v3838_v36 }
 0x835   :  { %9274 = vmatmul.mubr.msk.f32.vlgmr.msra.gmra.mxu0 %vm250_vm1, %v11245_v26  ;;  %9329 = vmatmul.mubr.msk.f32.vlgmr.msra.gmra.mxu1 %vm250_vm1, %v11245_v26 }
 0x836   :  { %9288 = vmatpush3.msra.mxu0 %v10940_v33  ;;  %9295 = vmatprep.mubr.msk.f32.mxu0 %vm10317_vm0, %v10906_v3 }
 0x837   :  { %9289 = vmatprep.subr.mxu0 %v10906_v3  ;;  %9343 = vmatpush3.msra.mxu1 %v10946_v34  ;;  %v3985_v34 = vpop.f32.mrf.mxu1 }
 0x838   :  { %9290 = vmatpush3.msra.mxu0 %v10949_v35  ;;  %9344 = vmatprep.subr.mxu1 %v10906_v3 }
 0x839   :  { %9291 = vmatprep.subr.mxu0 %v10906_v3  ;;  %9345 = vmatpush3.msra.mxu1 %v10954_v37  ;;  %v9286_v37 = vpop.f32.mrf.mxu1 }
 0x83a   :  { %9292 = vmatpush3.msra.mxu0 %v10957_v38  ;;  %9346 = vmatprep.subr.mxu1 %v10906_v3 }
 0x83b   :  { %9293 = vmatprep.subr.mxu0 %v10906_v3  ;;  %9347 = vmatpush3.msra.mxu1 %v10962_v39  ;;  %v4132_v39 = vpop.f32.mrf.mxu1 }
 0x83c   :  { %9294 = vmatpush3.msra.mxu0 %v10965_v40  ;;  %9348 = vmatprep.subr.mxu1 %v10906_v3 }
 0x83d   :  { %9296 = vmatmul.mubr.msk.f32.vlgmr.msra.gmra.mxu0 %vm250_vm1, %v11245_v26  ;;  %9309 = vmatprep.subr.mxu0 %v10906_v3 }
 0x83e   :  { %9310 = vmatpush3.msra.mxu0 %v10972_v41  ;;  %9317 = vmatprep.mubr.msk.f32.mxu0 %vm10317_vm0, %v10906_v3 }
 0x83f   :  { %9311 = vmatprep.subr.mxu0 %v10906_v3  ;;  %9349 = vmatpush3.msra.mxu1 %v10978_v42  ;;  %v9308_v42 = vpop.f32.mrf.mxu1 }
 0x840   :  { %9312 = vmatpush3.msra.mxu0 %v10981_v43  ;;  %9350 = vmatprep.mubr.msk.f32.mxu1 %vm10317_vm0, %v10906_v3 }
 0x841   :  { %9313 = vmatprep.subr.mxu0 %v10906_v3  ;;  %9364 = vmatprep.subr.mxu1 %v10906_v3 }
 0x842   :  { %9314 = vmatpush3.msra.mxu0 %v10988_v44 }
 0x843   :  { %9315 = vmatprep.subr.mxu0 %v10906_v3 }
 0x844   :  { %9316 = vmatpush3.msra.mxu0 %v10992_v45 }
 0x845   :  { %9318 = vmatmul.mubr.msk.f32.vlgmr.msra.gmra.mxu0 %vm250_vm1, %v11214_v31  ;;  %9331 = vmatprep.subr.mxu0 %v10906_v3 }
 0x846   :  { %9332 = vmatpush3.msra.mxu0 %v10998_v46  ;;  %9339 = vmatprep.mubr.msk.f32.mxu0 %vm10317_vm0, %v10906_v3  ;;  %v11295_v46 = vld [vmem:[#allocation3 + $0x48] sm:$0xff] }
 0x847   :  { %9333 = vmatprep.subr.mxu0 %v10906_v3  ;;  %9351 = vmatmul.mubr.msk.f32.vlgmr.msra.gmra.mxu1 %vm250_vm1, %v11295_v46 }
 0x848   :  { %9334 = vmatpush3.msra.mxu0 %v11004_v47  ;;  %9365 = vmatpush3.msra.mxu1 %v11020_v57 }
 0x849   :  { %9335 = vmatprep.subr.mxu0 %v10906_v3  ;;  %9372 = vmatprep.mubr.msk.f32.mxu1 %vm10317_vm0, %v10906_v3 }
 0x84a   :  { %9336 = vmatpush3.msra.mxu0 %v11008_v48  ;;  %9366 = vmatprep.subr.mxu1 %v10906_v3 }
 0x84b   :  { %9337 = vmatprep.subr.mxu0 %v10906_v3  ;;  %9367 = vmatpush3.msra.mxu1 %v11026_v58 }
 0x84c   :  { %9338 = vmatpush3.msra.mxu0 %v11012_v49  ;;  %9368 = vmatprep.subr.mxu1 %v10906_v3 }
 0x84d   :  { %9353 = vmatprep.subr.mxu0 %v10906_v3  ;;  %9369 = vmatpush3.msra.mxu1 %v11030_v59 }
 0x84e   :  { %9370 = vmatprep.subr.mxu1 %v10906_v3 }
 0x84f   :  { %9371 = vmatpush3.msra.mxu1 %v11034_v60 }
 0x850   :  { %9386 = vmatprep.subr.mxu1 %v10906_v3  ;;  %9373 = vmatmul.mubr.msk.f32.vlgmr.msra.gmra.mxu1 %vm250_vm1, %v11295_v46 }
 0x851   :  { %9387 = vmatpush3.msra.mxu1 %v11040_v2  ;;  %9394 = vmatprep.mubr.msk.f32.mxu1 %vm10317_vm0, %v10906_v3 }
 0x852   :  { %9388 = vmatprep.subr.mxu1 %v10906_v3 }
 0x853   :  { %9389 = vmatpush3.msra.mxu1 %v11046_v4 }
 0x854   :  { %9390 = vmatprep.subr.mxu1 %v10906_v3 }
 0x855   :  { %9391 = vmatpush3.msra.mxu1 %v11050_v1 }
 0x856   :  { %9392 = vmatprep.subr.mxu1 %v10906_v3 }
 0x857   :  { %9393 = vmatpush3.msra.mxu1 %v11054_v6 }
 0x858   :  { %9408 = vmatprep.subr.mxu1 %v10906_v3 }
 0x8f5   :  { %v3912_v47 = vpop.f32.mrf.mxu0  ;;  %v4279_v48 = vpop.f32.mrf.mxu1 }
 0x8f6   :  { %v3986_v49 = vadd.f32 %v3985_v34, %v3912_v47  ;;  %v4280_v51 = vadd.f32 %v11154_v21, %v4279_v48 }
 0x8f7   :  { %v9275_v57 = vpop.f32.mrf.mxu0  ;;  %v9330_v58 = vpop.f32.mrf.mxu1 }
 0x8f8   :  { %v3989_v59 = vadd.f32 %v11142_v8, %v3986_v49 }
 0x8fa   :  { %v8138_v60 = vmul.f32 -1.442695, %v3989_v59 }
 0x8fc   :  { %9988 = vpow2.f32 %v8138_v60 }
 0x8fd   :  { %v4062_v2 = vpop.f32.mrf.mxu0 }
 0x8fe   :  { %v4133_v4 = vadd.f32 %v4132_v39, %v4062_v2 }
 0x8ff   :  { %v9297_v27 = vpop.f32.mrf.mxu0 }
 0x900   :  { %v4136_v1 = vadd.f32 %v11148_v12, %v4133_v4 }
 0x902   :  { %v8141_v29 = vmul.f32 -1.442695, %v4136_v1 }
 0x904   :  { %9990 = vpow2.f32 %v8141_v29 }
 0x905   :  { %v4209_v50 = vpop.f32.mrf.mxu0 }
 0x906   :  { %v4210_v53 = vadd.f32 %v11160_v23, %v4209_v50 }
 0x907   :  { %v9319_v6 = vpop.f32.mrf.mxu0 }
 0x909   :  { %v9989_v52 = vpop.eup %9988 }
 0x90a   :  { %v3993_v30 = vadd.f32 1.0, %v9989_v52 }
 0x90c   :  { %9992 = vrcp.f32 %v3993_v30 }
 0x911   :  { %v9991_v31 = vpop.eup %9990 }
 0x912   :  { %v4140_v32 = vadd.f32 1.0, %v9991_v31 }
 0x914   :  { %9994 = vrcp.f32 %v4140_v32 }
 0x919   :  { %v9993_v54 = vpop.eup %9992 }
 0x91a   :  { %v4283_v55 = vmul.f32 %v9993_v54, %v4280_v51  ;;  %v11446_v51 = vld [vmem:[#allocation12 + $0x38] sm:$0xff] }
 0x91b   :  { %v11470_v54 = vld [vmem:[#allocation11 + $0x58] sm:$0xff] }
 0x91c   :  { %v4284_v56 = vadd.f32 %v4283_v55, %v4210_v53  ;;  %v11464_v53 = vld [vmem:[#allocation12 + $0x20] sm:$0xff]  ;;  %v11478_v55 = vld [vmem:[#allocation11 + $0x50] sm:$0xff] }
 0x91e   :  { %9996 = vtanh.f32 %v4284_v56  ;;  %v11484_v56 = vld [vmem:[#allocation11 + $0x48] sm:$0xff] }
 0x921   :  { %v9995_v0 = vpop.eup %9994 }
 0x922   :  { %v4286_v5 = vsub.f32 1.0, %v9995_v0  ;;  %v4288_v11 = vmul.f32 %v9995_v0, %v11245_v26  ;;  %v11491_v0 = vld [vmem:[#allocation11 + $0x40] sm:$0xff] }
 0x92b   :  { %v9997_v7 = vpop.eup %9996 }
 0x92c   :  { %v4287_v10 = vmul.f32 %v9997_v7, %v4286_v5 }
 0x92e   :  { %v11326_v13 = vadd.f32 %v4288_v11, %v4287_v10 }
 0x930   :  { %9340 = vmatmul.mubr.msk.f32.vlgmr.msra.gmra.mxu0 %vm250_vm1, %v11326_v13  ;;  %9395 = vmatmul.mubr.msk.f32.vlgmr.msra.gmra.mxu1 %vm250_vm1, %v11326_v13 }
 0x931   :  { %9354 = vmatpush3.msra.mxu0 %v10940_v33  ;;  %9361 = vmatprep.mubr.msk.f32.mxu0 %vm10317_vm0, %v10906_v3  ;;  %v4434_v33 = vpop.f32.mrf.mxu1 }
 0x932   :  { %9355 = vmatprep.subr.mxu0 %v10906_v3  ;;  %9416 = vmatprep.mubr.msk.f32.mxu1 %vm10317_vm0, %v10906_v3 }
 0x933   :  { %9356 = vmatpush3.msra.mxu0 %v10949_v35  ;;  %v9352_v35 = vpop.f32.mrf.mxu1 }
 0x934   :  { %9357 = vmatprep.subr.mxu0 %v10906_v3 }
 0x935   :  { %9358 = vmatpush3.msra.mxu0 %v10957_v38  ;;  %v11360_v38 = vpop.f32.mrf.mxu1 }
 0x936   :  { %9359 = vmatprep.subr.mxu0 %v10906_v3 }
 0x937   :  { %9360 = vmatpush3.msra.mxu0 %v10965_v40  ;;  %v9374_v40 = vpop.f32.mrf.mxu1 }
 0x938   :  { %9362 = vmatmul.mubr.msk.f32.vlgmr.msra.gmra.mxu0 %vm250_vm1, %v11326_v13  ;;  %9375 = vmatprep.subr.mxu0 %v10906_v3 }
 0x939   :  { %9376 = vmatpush3.msra.mxu0 %v10972_v41  ;;  %9383 = vmatprep.mubr.msk.f32.mxu0 %vm10317_vm0, %v10906_v3  ;;  %v11362_v41 = vld [vmem:[#allocation11 + $0x18] sm:$0xff] }
 0x93a   :  { %9377 = vmatprep.subr.mxu0 %v10906_v3  ;;  %9409 = vmatpush3.msra.mxu1 %v11362_v41 }
 0x93b   :  { %9378 = vmatpush3.msra.mxu0 %v10981_v43  ;;  %9410 = vmatprep.subr.mxu1 %v10906_v3  ;;  %v11366_v43 = vld [vmem:[#allocation11 + $0x10] sm:$0xff] }
 0x93c   :  { %9379 = vmatprep.subr.mxu0 %v10906_v3  ;;  %9411 = vmatpush3.msra.mxu1 %v11366_v43 }
 0x93d   :  { %9380 = vmatpush3.msra.mxu0 %v10988_v44  ;;  %9412 = vmatprep.subr.mxu1 %v10906_v3  ;;  %v11370_v44 = vld [vmem:[#allocation11 + $0x8] sm:$0xff] }
 0x93e   :  { %9381 = vmatprep.subr.mxu0 %v10906_v3  ;;  %9413 = vmatpush3.msra.mxu1 %v11370_v44 }
 0x93f   :  { %9382 = vmatpush3.msra.mxu0 %v10992_v45  ;;  %v11373_v45 = vld [vmem:[#allocation11] sm:$0xff]  ;;  %9414 = vmatprep.subr.mxu1 %v10906_v3 }
 0x940   :  { %9384 = vmatmul.mubr.msk.f32.vlgmr.msra.gmra.mxu0 %vm250_vm1, %v11295_v46  ;;  %9397 = vmatprep.subr.mxu0 %v10906_v3 }
 0x941   :  { %9405 = vmatprep.mubr.msk.f32.mxu0 %vm10317_vm0, %v10906_v3  ;;  %9415 = vmatpush3.msra.mxu1 %v11373_v45 }
 0x942   :  { %9430 = vmatprep.subr.mxu1 %v10906_v3  ;;  %9417 = vmatmul.mubr.msk.f32.vlgmr.msra.gmra.mxu1 %vm250_vm1, %v11375_v14 }
 0x943   :  { %9431 = vmatpush3.msra.mxu1 %v11378_v15  ;;  %9398 = vmatpush3.msra.mxu0 %v11381_v16 }
 0x944   :  { %9432 = vmatprep.subr.mxu1 %v10906_v3  ;;  %9438 = vmatprep.mubr.msk.f32.mxu1 %vm10317_vm0, %v10906_v3 }
 0x945   :  { %9433 = vmatpush3.msra.mxu1 %v11386_v17  ;;  %9399 = vmatprep.subr.mxu0 %v10906_v3 }
 0x946   :  { %9434 = vmatprep.subr.mxu1 %v10906_v3  ;;  %9400 = vmatpush3.msra.mxu0 %v11390_v18 }
 0x947   :  { %9435 = vmatpush3.msra.mxu1 %v11393_v19  ;;  %9401 = vmatprep.subr.mxu0 %v10906_v3 }
 0x948   :  { %9436 = vmatprep.subr.mxu1 %v10906_v3  ;;  %9402 = vmatpush3.msra.mxu0 %v11399_v20  ;;  %v11425_v3 = vld [vmem:[#allocation12 + $0x48] sm:$0xff] }
 0x949   :  { %9437 = vmatpush3.msra.mxu1 %v11402_v22  ;;  %9403 = vmatprep.subr.mxu0 %v11414_v25 }
 0x94a   :  { %9452 = vmatprep.subr.mxu1 %v11414_v25  ;;  %9439 = vmatmul.mubr.msk.f32.vlgmr.msra.gmra.mxu1 %vm250_vm1, %v11375_v14 }
 0x94b   :  { %9453 = vmatpush3.msra.mxu1 %v11408_v24  ;;  %9404 = vmatpush3.msra.mxu0 %v11411_v28 }
 0x94c   :  { %9454 = vmatprep.subr.mxu1 %v11414_v25  ;;  %9419 = vmatprep.subr.mxu0 %v11414_v25 }
 0x94d   :  { %9455 = vmatpush3.msra.mxu1 %v11420_v61  ;;  %9460 = vmatprep.mubr.msk.f32.mxu1 %vm10317_vm0, %v11414_v25 }
 0x94e   :  { %9456 = vmatprep.subr.mxu1 %v11414_v25 }
 0x94f   :  { %9457 = vmatpush3.msra.mxu1 %v11425_v3 }
 0x950   :  { %9458 = vmatprep.subr.mxu1 %v11414_v25 }
 0x951   :  { %9459 = vmatpush3.msra.mxu1 %v11432_v62 }
 0x952   :  { %9474 = vmatprep.subr.mxu1 %v11414_v25 }
 0x9f0   :  { %v4361_v63 = vpop.f32.mrf.mxu0  ;;  %v4728_v36 = vpop.f32.mrf.mxu1 }
 0x9f1   :  { %v4435_v9 = vadd.f32 %v4434_v33, %v4361_v63  ;;  %v4729_v27 = vadd.f32 %v11154_v21, %v4728_v36  ;;  %v11452_v21 = vld [vmem:[#allocation12 + $0x30] sm:$0xff]  ;;  %v11539_v33 = vld [vmem:[%s12091_s7] ss:$0 sm:$0xff] }
 0x9f2   :  { %v9341_v26 = vpop.f32.mrf.mxu0  ;;  %v9396_v34 = vpop.f32.mrf.mxu1 }
 0x9f3   :  { %v4438_v37 = vadd.f32 %v11142_v8, %v4435_v9  ;;  %v11545_v26 = vld [vmem:[%s12091_s7 + $0x1] ss:$0 sm:$0xff] }
 0x9f5   :  { %v8146_v39 = vmul.f32 -1.442695, %v4438_v37 }
 0x9f7   :  { %9998 = vpow2.f32 %v8146_v39 }
 0x9f8   :  { %v4511_v42 = vpop.f32.mrf.mxu0 }
 0x9f9   :  { %v4582_v46 = vadd.f32 %v11360_v38, %v4511_v42 }
 0x9fa   :  { %v9363_v47 = vpop.f32.mrf.mxu0 }
 0x9fb   :  { %v4585_v48 = vadd.f32 %v11148_v12, %v4582_v46 }
 0x9fd   :  { %v8149_v49 = vmul.f32 -1.442695, %v4585_v48 }
 0x9ff   :  { %10000 = vpow2.f32 %v8149_v49 }
 0xa00   :  { %v4658_v57 = vpop.f32.mrf.mxu0 }
 0xa01   :  { %v4659_v8 = vadd.f32 %v11160_v23, %v4658_v57  ;;  %v11458_v23 = vld [vmem:[#allocation12 + $0x28] sm:$0xff] }
 0xa02   :  { %v9385_v58 = vpop.f32.mrf.mxu0  ;;  %v4882_v5 = vpop.f32.mrf.mxu1 }
 0xa04   :  { %v9999_v59 = vpop.eup %9998  ;;  %v9418_v7 = vpop.f32.mrf.mxu1 }
 0xa05   :  { %v4442_v60 = vadd.f32 1.0, %v9999_v59  ;;  %v11551_v59 = vld [vmem:[%s12091_s7 + $0x3] ss:$0 sm:$0xff] }
 0xa07   :  { %10002 = vrcp.f32 %v4442_v60  ;;  %v11556_v60 = vld [vmem:[%s12091_s7 + $0x2] ss:$0 sm:$0xff] }
 0xa0a   :  { %v5029_v10 = vpop.f32.mrf.mxu1 }
 0xa0c   :  { %v10001_v2 = vpop.eup %10000  ;;  %v9440_v11 = vpop.f32.mrf.mxu1 }
 0xa0d   :  { %v4589_v4 = vadd.f32 1.0, %v10001_v2  ;;  %v11613_v11 = vld [vmem:[#allocation6 + $0x10] sm:$0xff] }
 0xa0f   :  { %10004 = vrcp.f32 %v4589_v4 }
 0xa14   :  { %v10003_v1 = vpop.eup %10002 }
 0xa15   :  { %v4732_v29 = vmul.f32 %v10003_v1, %v4729_v27 }
 0xa17   :  { %v4733_v50 = vadd.f32 %v4732_v29, %v4659_v8 }
 0xa19   :  { %10006 = vtanh.f32 %v4733_v50 }
 0xa1c   :  { %v10005_v6 = vpop.eup %10004 }
 0xa1d   :  { %v4735_v12 = vsub.f32 1.0, %v10005_v6  ;;  %v4737_v31 = vmul.f32 %v10005_v6, %v11326_v13  ;;  %v11510_v13 = vld [vmem:[#allocation6 + $0x8] sm:$0xff] }
 0xa26   :  { %v10007_v52 = vpop.eup %10006 }
 0xa27   :  { %v4736_v30 = vmul.f32 %v10007_v52, %v4735_v12 }
 0xa29   :  { %v11444_v32 = vadd.f32 %v4737_v31, %v4736_v30 }
 0xa2b   :  { %9406 = vmatmul.mubr.msk.f32.vlgmr.msra.gmra.mxu0 %vm250_vm1, %v11444_v32  ;;  %9461 = vmatmul.mubr.msk.f32.vlgmr.msra.gmra.mxu1 %vm250_vm1, %v11444_v32 }
 0xa2c   :  { %9420 = vmatpush3.msra.mxu0 %v11446_v51  ;;  %9427 = vmatprep.mubr.msk.f32.mxu0 %vm10317_vm0, %v11414_v25 }
 0xa2d   :  { %9421 = vmatprep.subr.mxu0 %v11414_v25  ;;  %9475 = vmatpush3.msra.mxu1 %v11362_v41 }
 0xa2e   :  { %9422 = vmatpush3.msra.mxu0 %v11452_v21  ;;  %9476 = vmatprep.subr.mxu1 %v11414_v25 }
 0xa2f   :  { %9423 = vmatprep.subr.mxu0 %v11414_v25  ;;  %9477 = vmatpush3.msra.mxu1 %v11366_v43 }
 0xa30   :  { %9424 = vmatpush3.msra.mxu0 %v11458_v23  ;;  %9478 = vmatprep.subr.mxu1 %v11414_v25 }
 0xa31   :  { %9425 = vmatprep.subr.mxu0 %v11414_v25  ;;  %9479 = vmatpush3.msra.mxu1 %v11370_v44 }
 0xa32   :  { %9426 = vmatpush3.msra.mxu0 %v11464_v53  ;;  %9480 = vmatprep.subr.mxu1 %v11414_v25 }
 0xa33   :  { %9428 = vmatmul.mubr.msk.f32.vlgmr.msra.gmra.mxu0 %vm250_vm1, %v11444_v32  ;;  %9441 = vmatprep.subr.mxu0 %v11414_v25 }
 0xa34   :  { %9442 = vmatpush3.msra.mxu0 %v11470_v54  ;;  %9449 = vmatprep.mubr.msk.f32.mxu0 %vm10317_vm0, %v11414_v25 }
 0xa35   :  { %9443 = vmatprep.subr.mxu0 %v11414_v25  ;;  %9481 = vmatpush3.msra.mxu1 %v11373_v45 }
 0xa36   :  { %9444 = vmatpush3.msra.mxu0 %v11478_v55  ;;  %9482 = vmatprep.mubr.msk.f32.mxu1 %vm10317_vm0, %v11414_v25 }
 0xa37   :  { %9445 = vmatprep.subr.mxu0 %v11414_v25  ;;  %9496 = vmatprep.subr.mxu1 %v11414_v25 }
 0xa38   :  { %9446 = vmatpush3.msra.mxu0 %v11484_v56  ;;  %9483 = vmatmul.mubr.msk.f32.vlgmr.msra.gmra.mxu1 %vm250_vm1, %v11510_v13 }
 0xa39   :  { %9447 = vmatprep.subr.mxu0 %v11414_v25  ;;  %9497 = vmatpush3.msra.mxu1 %v11378_v15 }
 0xa3a   :  { %9448 = vmatpush3.msra.mxu0 %v11491_v0  ;;  %9504 = vmatprep.mubr.msk.f32.mxu1 %vm10317_vm0, %v11414_v25 }
 0xa3b   :  { %9450 = vmatmul.mubr.msk.f32.vlgmr.msra.gmra.mxu0 %vm250_vm1, %v11375_v14  ;;  %9463 = vmatprep.subr.mxu0 %v11414_v25 }
 0xa3c   :  { %9464 = vmatpush3.msra.mxu0 %v11381_v16  ;;  %9471 = vmatprep.mubr.msk.f32.mxu0 %vm10317_vm0, %v11414_v25 }
 0xa3d   :  { %9465 = vmatprep.subr.mxu0 %v11414_v25  ;;  %9498 = vmatprep.subr.mxu1 %v11414_v25 }
 0xa3e   :  { %9466 = vmatpush3.msra.mxu0 %v11390_v18  ;;  %9499 = vmatpush3.msra.mxu1 %v11386_v17 }
 0xa3f   :  { %9467 = vmatprep.subr.mxu0 %v11414_v25  ;;  %9500 = vmatprep.subr.mxu1 %v11414_v25 }
 0xa40   :  { %9468 = vmatpush3.msra.mxu0 %v11399_v20  ;;  %9501 = vmatpush3.msra.mxu1 %v11393_v19 }
 0xa41   :  { %9469 = vmatprep.subr.mxu0 %v11414_v25  ;;  %9502 = vmatprep.subr.mxu1 %v11414_v25 }
 0xa42   :  { %9470 = vmatpush3.msra.mxu0 %v11411_v28  ;;  %9503 = vmatpush3.msra.mxu1 %v11402_v22 }
 0xa43   :  { %9485 = vmatprep.subr.mxu0 %v11414_v25  ;;  %9518 = vmatprep.subr.mxu1 %v11414_v25 }
 0xa44   :  { %9505 = vmatmul.mubr.msk.f32.vlgmr.msra.gmra.mxu1 %vm250_vm1, %v11510_v13 }
 0xa45   :  { %9519 = vmatpush3.msra.mxu1 %v11408_v24  ;;  %9526 = vmatprep.mubr.msk.f32.mxu1 %vm10317_vm0, %v11414_v25 }
 0xa46   :  { %9520 = vmatprep.subr.mxu1 %v11414_v25 }
 0xa47   :  { %9521 = vmatpush3.msra.mxu1 %v11420_v61 }
 0xa48   :  { %9522 = vmatprep.subr.mxu1 %v11414_v25 }
 0xa49   :  { %9523 = vmatpush3.msra.mxu1 %v11425_v3 }
 0xa4a   :  { %9524 = vmatprep.subr.mxu1 %v11414_v25 }
 0xa4b   :  { %9525 = vmatpush3.msra.mxu1 %v11432_v62 }
 0xa4c   :  { %9540 = vmatprep.subr.mxu1 %v11414_v25 }
 0xaeb   :  { %v4809_v35 = vpop.f32.mrf.mxu0  ;;  %v5176_v38 = vpop.f32.mrf.mxu1 }
 0xaec   :  { %v4883_v40 = vadd.f32 %v4882_v5, %v4809_v35  ;;  %v5177_v4 = vadd.f32 %v11551_v59, %v5176_v38 }
 0xaed   :  { %v9407_v14 = vpop.f32.mrf.mxu0  ;;  %v9462_v63 = vpop.f32.mrf.mxu1 }
 0xaee   :  { %v4886_v36 = vadd.f32 %v11539_v33, %v4883_v40 }
 0xaf0   :  { %v8154_v9 = vmul.f32 -1.442695, %v4886_v36 }
 0xaf2   :  { %10008 = vpow2.f32 %v8154_v9 }
 0xaf3   :  { %v4959_v34 = vpop.f32.mrf.mxu0 }
 0xaf4   :  { %v5030_v37 = vadd.f32 %v5029_v10, %v4959_v34 }
 0xaf5   :  { %v9429_v39 = vpop.f32.mrf.mxu0 }
 0xaf6   :  { %v5033_v42 = vadd.f32 %v11545_v26, %v5030_v37 }
 0xaf8   :  { %v8157_v46 = vmul.f32 -1.442695, %v5033_v42 }
 0xafa   :  { %10010 = vpow2.f32 %v8157_v46 }
 0xafb   :  { %v5106_v47 = vpop.f32.mrf.mxu0 }
 0xafc   :  { %v5107_v27 = vadd.f32 %v11556_v60, %v5106_v47 }
 0xafd   :  { %v9451_v48 = vpop.f32.mrf.mxu0 }
 0xaff   :  { %v10009_v49 = vpop.eup %10008 }
 0xb00   :  { %v4890_v57 = vadd.f32 1.0, %v10009_v49 }
 0xb02   :  { %10012 = vrcp.f32 %v4890_v57 }
 0xb07   :  { %v10011_v58 = vpop.eup %10010 }
 0xb08   :  { %v5037_v2 = vadd.f32 1.0, %v10011_v58 }
 0xb0a   :  { %10014 = vrcp.f32 %v5037_v2 }
 0xb0f   :  { %v10013_v8 = vpop.eup %10012 }
 0xb10   :  { %v5180_v1 = vmul.f32 %v10013_v8, %v5177_v4 }
 0xb12   :  { %v5181_v29 = vadd.f32 %v5180_v1, %v5107_v27 }
 0xb14   :  { %10016 = vtanh.f32 %v5181_v29 }
 0xb17   :  { %v10015_v50 = vpop.eup %10014 }
 0xb18   :  { %v5183_v6 = vsub.f32 1.0, %v10015_v50  ;;  %v5185_v30 = vmul.f32 %v10015_v50, %v11444_v32  ;;  %v5332_v32 = vpop.f32.mrf.mxu1 }
 0xb1a   :  { %v9484_v5 = vpop.f32.mrf.mxu1 }
 0xb1c   :  { %v5479_v7 = vpop.f32.mrf.mxu1 }
 0xb1e   :  { %v9506_v10 = vpop.f32.mrf.mxu1 }
 0xb1f   :  { %v11696_v10 = vld [vmem:[#allocation6 + $0x18] sm:$0xff] }
 0xb21   :  { %v10017_v12 = vpop.eup %10016 }
 0xb22   :  { %v5184_v52 = vmul.f32 %v10017_v12, %v5183_v6 }
 0xb24   :  { %v11561_v31 = vadd.f32 %v5185_v30, %v5184_v52 }
 0xb26   :  { %5187 = vst.msk [vmem:[#allocation2] sm:$0xff] %vm250_vm1, %v11561_v31  ;;  %9472 = vmatmul.mubr.msk.f32.vlgmr.msra.gmra.mxu0 %vm250_vm1, %v11561_v31  ;;  %9527 = vmatmul.mubr.msk.f32.vlgmr.msra.gmra.mxu1 %vm250_vm1, %v11561_v31 }
 0xb27   :  { %9486 = vmatpush3.msra.mxu0 %v11446_v51  ;;  %9493 = vmatprep.mubr.msk.f32.mxu0 %vm10317_vm0, %v11414_v25 }
 0xb28   :  { %9487 = vmatprep.subr.mxu0 %v11414_v25  ;;  %9541 = vmatpush3.msra.mxu1 %v11362_v41 }
 0xb29   :  { %9488 = vmatpush3.msra.mxu0 %v11452_v21  ;;  %9542 = vmatprep.subr.mxu1 %v11414_v25 }
 0xb2a   :  { %9489 = vmatprep.subr.mxu0 %v11414_v25  ;;  %9543 = vmatpush3.msra.mxu1 %v11366_v43 }
 0xb2b   :  { %9490 = vmatpush3.msra.mxu0 %v11458_v23  ;;  %9544 = vmatprep.subr.mxu1 %v11414_v25 }
 0xb2c   :  { %9491 = vmatprep.subr.mxu0 %v11414_v25  ;;  %9545 = vmatpush3.msra.mxu1 %v11370_v44 }
 0xb2d   :  { %9492 = vmatpush3.msra.mxu0 %v11464_v53  ;;  %9546 = vmatprep.subr.mxu1 %v11414_v25 }
 0xb2e   :  { %9494 = vmatmul.mubr.msk.f32.vlgmr.msra.gmra.mxu0 %vm250_vm1, %v11561_v31  ;;  %9507 = vmatprep.subr.mxu0 %v11414_v25 }
 0xb2f   :  { %9508 = vmatpush3.msra.mxu0 %v11470_v54  ;;  %9515 = vmatprep.mubr.msk.f32.mxu0 %vm10317_vm0, %v11414_v25 }
 0xb30   :  { %9509 = vmatprep.subr.mxu0 %v11414_v25  ;;  %9547 = vmatpush3.msra.mxu1 %v11373_v45 }
 0xb31   :  { %9510 = vmatpush3.msra.mxu0 %v11478_v55  ;;  %9548 = vmatprep.mubr.msk.f32.mxu1 %vm10317_vm0, %v11414_v25 }
 0xb32   :  { %9511 = vmatprep.subr.mxu0 %v11414_v25  ;;  %9562 = vmatprep.subr.mxu1 %v11414_v25 }
 0xb33   :  { %9512 = vmatpush3.msra.mxu0 %v11484_v56  ;;  %9549 = vmatmul.mubr.msk.f32.vlgmr.msra.gmra.mxu1 %vm250_vm1, %v11613_v11 }
 0xb34   :  { %9513 = vmatprep.subr.mxu0 %v11414_v25  ;;  %9563 = vmatpush3.msra.mxu1 %v11378_v15 }
 0xb35   :  { %9514 = vmatpush3.msra.mxu0 %v11491_v0  ;;  %9570 = vmatprep.mubr.msk.f32.mxu1 %vm10317_vm0, %v11414_v25 }
 0xb36   :  { %9516 = vmatmul.mubr.msk.f32.vlgmr.msra.gmra.mxu0 %vm250_vm1, %v11510_v13  ;;  %9529 = vmatprep.subr.mxu0 %v11414_v25 }
 0xb37   :  { %9530 = vmatpush3.msra.mxu0 %v11381_v16  ;;  %9537 = vmatprep.mubr.msk.f32.mxu0 %vm10317_vm0, %v11414_v25 }
 0xb38   :  { %9531 = vmatprep.subr.mxu0 %v11414_v25  ;;  %9564 = vmatprep.subr.mxu1 %v11414_v25 }
 0xb39   :  { %9532 = vmatpush3.msra.mxu0 %v11390_v18  ;;  %9565 = vmatpush3.msra.mxu1 %v11386_v17 }
 0xb3a   :  { %9533 = vmatprep.subr.mxu0 %v11414_v25  ;;  %9566 = vmatprep.subr.mxu1 %v11414_v25 }
 0xb3b   :  { %9534 = vmatpush3.msra.mxu0 %v11399_v20  ;;  %9567 = vmatpush3.msra.mxu1 %v11393_v19 }
 0xb3c   :  { %9535 = vmatprep.subr.mxu0 %v11414_v25  ;;  %9568 = vmatprep.subr.mxu1 %v11414_v25 }
 0xb3d   :  { %9536 = vmatpush3.msra.mxu0 %v11411_v28  ;;  %9569 = vmatpush3.msra.mxu1 %v11402_v22 }
 0xb3e   :  { %9551 = vmatprep.subr.mxu0 %v11414_v25  ;;  %9584 = vmatprep.subr.mxu1 %v11414_v25 }
 0xb3f   :  { %9571 = vmatmul.mubr.msk.f32.vlgmr.msra.gmra.mxu1 %vm250_vm1, %v11613_v11 }
 0xb40   :  { %9585 = vmatpush3.msra.mxu1 %v11408_v24  ;;  %9592 = vmatprep.mubr.msk.f32.mxu1 %vm10317_vm0, %v11414_v25 }
 0xb41   :  { %9586 = vmatprep.subr.mxu1 %v11414_v25 }
 0xb42   :  { %9587 = vmatpush3.msra.mxu1 %v11420_v61 }
 0xb43   :  { %9588 = vmatprep.subr.mxu1 %v11414_v25 }
 0xb44   :  { %9589 = vmatpush3.msra.mxu1 %v11425_v3 }
 0xb45   :  { %9590 = vmatprep.subr.mxu1 %v11414_v25 }
 0xb46   :  { %9591 = vmatpush3.msra.mxu1 %v11432_v62 }
 0xb47   :  { %9606 = vmatprep.subr.mxu1 %v11414_v25 }
 0xbe6   :  { %v5259_v13 = vpop.f32.mrf.mxu0  ;;  %v5626_v35 = vpop.f32.mrf.mxu1 }
 0xbe7   :  { %v5333_v38 = vadd.f32 %v5332_v32, %v5259_v13  ;;  %v5627_v2 = vadd.f32 %v11551_v59, %v5626_v35 }
 0xbe8   :  { %v9473_v40 = vpop.f32.mrf.mxu0  ;;  %v9528_v14 = vpop.f32.mrf.mxu1 }
 0xbe9   :  { %v5336_v63 = vadd.f32 %v11539_v33, %v5333_v38 }
 0xbeb   :  { %v8162_v36 = vmul.f32 -1.442695, %v5336_v63 }
 0xbed   :  { %10018 = vpow2.f32 %v8162_v36 }
 0xbee   :  { %v5409_v9 = vpop.f32.mrf.mxu0 }
 0xbef   :  { %v5480_v34 = vadd.f32 %v5479_v7, %v5409_v9 }
 0xbf0   :  { %v9495_v37 = vpop.f32.mrf.mxu0 }
 0xbf1   :  { %v5483_v39 = vadd.f32 %v11545_v26, %v5480_v34 }
 0xbf3   :  { %v8165_v42 = vmul.f32 -1.442695, %v5483_v39 }
 0xbf5   :  { %10020 = vpow2.f32 %v8165_v42 }
 0xbf6   :  { %v5556_v46 = vpop.f32.mrf.mxu0 }
 0xbf7   :  { %v5557_v4 = vadd.f32 %v11556_v60, %v5556_v46 }
 0xbf8   :  { %v9517_v47 = vpop.f32.mrf.mxu0 }
 0xbfa   :  { %v10019_v48 = vpop.eup %10018 }
 0xbfb   :  { %v5340_v49 = vadd.f32 1.0, %v10019_v48 }
 0xbfd   :  { %10022 = vrcp.f32 %v5340_v49 }
 0xc02   :  { %v10021_v57 = vpop.eup %10020 }
 0xc03   :  { %v5487_v58 = vadd.f32 1.0, %v10021_v57 }
 0xc05   :  { %10024 = vrcp.f32 %v5487_v58 }
 0xc0a   :  { %v10023_v27 = vpop.eup %10022 }
 0xc0b   :  { %v5630_v8 = vmul.f32 %v10023_v27, %v5627_v2 }
 0xc0d   :  { %v5631_v1 = vadd.f32 %v5630_v8, %v5557_v4 }
 0xc0f   :  { %10026 = vtanh.f32 %v5631_v1 }
 0xc12   :  { %v10025_v29 = vpop.eup %10024 }
 0xc13   :  { %v5633_v50 = vsub.f32 1.0, %v10025_v29  ;;  %v5635_v52 = vmul.f32 %v10025_v29, %v11561_v31  ;;  %v5783_v31 = vpop.f32.mrf.mxu1 }
 0xc15   :  { %v9550_v32 = vpop.f32.mrf.mxu1 }
 0xc16   :  { %v11779_v32 = vld [vmem:[#allocation6 + $0x20] sm:$0xff] }
 0xc17   :  { %v5930_v5 = vpop.f32.mrf.mxu1 }
 0xc19   :  { %v9572_v7 = vpop.f32.mrf.mxu1 }
 0xc1c   :  { %v10027_v6 = vpop.eup %10026 }
 0xc1d   :  { %v5634_v12 = vmul.f32 %v10027_v6, %v5633_v50 }
 0xc1f   :  { %v11644_v30 = vadd.f32 %v5635_v52, %v5634_v12 }
 0xc21   :  { %5638 = vst.msk [vmem:[#allocation2 + $0x8] sm:$0xff] %vm250_vm1, %v11644_v30  ;;  %9538 = vmatmul.mubr.msk.f32.vlgmr.msra.gmra.mxu0 %vm250_vm1, %v11644_v30  ;;  %9593 = vmatmul.mubr.msk.f32.vlgmr.msra.gmra.mxu1 %vm250_vm1, %v11644_v30 }
 0xc22   :  { %9552 = vmatpush3.msra.mxu0 %v11446_v51  ;;  %9559 = vmatprep.mubr.msk.f32.mxu0 %vm10317_vm0, %v11414_v25 }
 0xc23   :  { %9553 = vmatprep.subr.mxu0 %v11414_v25  ;;  %9607 = vmatpush3.msra.mxu1 %v11362_v41 }
 0xc24   :  { %9554 = vmatpush3.msra.mxu0 %v11452_v21  ;;  %9608 = vmatprep.subr.mxu1 %v11414_v25 }
 0xc25   :  { %9555 = vmatprep.subr.mxu0 %v11414_v25  ;;  %9609 = vmatpush3.msra.mxu1 %v11366_v43 }
 0xc26   :  { %9556 = vmatpush3.msra.mxu0 %v11458_v23  ;;  %9610 = vmatprep.subr.mxu1 %v11414_v25 }
 0xc27   :  { %9557 = vmatprep.subr.mxu0 %v11414_v25  ;;  %9611 = vmatpush3.msra.mxu1 %v11370_v44 }
 0xc28   :  { %9558 = vmatpush3.msra.mxu0 %v11464_v53  ;;  %9612 = vmatprep.subr.mxu1 %v11414_v25 }
 0xc29   :  { %9560 = vmatmul.mubr.msk.f32.vlgmr.msra.gmra.mxu0 %vm250_vm1, %v11644_v30  ;;  %9573 = vmatprep.subr.mxu0 %v11414_v25 }
 0xc2a   :  { %9574 = vmatpush3.msra.mxu0 %v11470_v54  ;;  %9581 = vmatprep.mubr.msk.f32.mxu0 %vm10317_vm0, %v11414_v25 }
 0xc2b   :  { %9575 = vmatprep.subr.mxu0 %v11414_v25  ;;  %9613 = vmatpush3.msra.mxu1 %v11373_v45 }
 0xc2c   :  { %9576 = vmatpush3.msra.mxu0 %v11478_v55  ;;  %9614 = vmatprep.mubr.msk.f32.mxu1 %vm10317_vm0, %v11414_v25 }
 0xc2d   :  { %9577 = vmatprep.subr.mxu0 %v11414_v25  ;;  %9628 = vmatprep.subr.mxu1 %v11414_v25 }
 0xc2e   :  { %9578 = vmatpush3.msra.mxu0 %v11484_v56  ;;  %9615 = vmatmul.mubr.msk.f32.vlgmr.msra.gmra.mxu1 %vm250_vm1, %v11696_v10 }
 0xc2f   :  { %9579 = vmatprep.subr.mxu0 %v11414_v25  ;;  %9629 = vmatpush3.msra.mxu1 %v11378_v15 }
 0xc30   :  { %9580 = vmatpush3.msra.mxu0 %v11491_v0  ;;  %9636 = vmatprep.mubr.msk.f32.mxu1 %vm10317_vm0, %v11414_v25 }
 0xc31   :  { %9582 = vmatmul.mubr.msk.f32.vlgmr.msra.gmra.mxu0 %vm250_vm1, %v11613_v11  ;;  %9595 = vmatprep.subr.mxu0 %v11414_v25 }
 0xc32   :  { %9596 = vmatpush3.msra.mxu0 %v11381_v16  ;;  %9603 = vmatprep.mubr.msk.f32.mxu0 %vm10317_vm0, %v11414_v25 }
 0xc33   :  { %9597 = vmatprep.subr.mxu0 %v11414_v25  ;;  %9630 = vmatprep.subr.mxu1 %v11414_v25 }
 0xc34   :  { %9598 = vmatpush3.msra.mxu0 %v11390_v18  ;;  %9631 = vmatpush3.msra.mxu1 %v11386_v17 }
 0xc35   :  { %9599 = vmatprep.subr.mxu0 %v11414_v25  ;;  %9632 = vmatprep.subr.mxu1 %v11414_v25 }
 0xc36   :  { %9600 = vmatpush3.msra.mxu0 %v11399_v20  ;;  %9633 = vmatpush3.msra.mxu1 %v11393_v19 }
 0xc37   :  { %9601 = vmatprep.subr.mxu0 %v11414_v25  ;;  %9634 = vmatprep.subr.mxu1 %v11414_v25 }
 0xc38   :  { %9602 = vmatpush3.msra.mxu0 %v11411_v28  ;;  %9635 = vmatpush3.msra.mxu1 %v11402_v22 }
 0xc39   :  { %9617 = vmatprep.subr.mxu0 %v11414_v25  ;;  %9650 = vmatprep.subr.mxu1 %v11414_v25 }
 0xc3a   :  { %9637 = vmatmul.mubr.msk.f32.vlgmr.msra.gmra.mxu1 %vm250_vm1, %v11696_v10 }
 0xc3b   :  { %9651 = vmatpush3.msra.mxu1 %v11408_v24  ;;  %9658 = vmatprep.mubr.msk.f32.mxu1 %vm10317_vm0, %v11414_v25 }
 0xc3c   :  { %9652 = vmatprep.subr.mxu1 %v11414_v25 }
 0xc3d   :  { %9653 = vmatpush3.msra.mxu1 %v11420_v61 }
 0xc3e   :  { %9654 = vmatprep.subr.mxu1 %v11414_v25 }
 0xc3f   :  { %9655 = vmatpush3.msra.mxu1 %v11425_v3 }
 0xc40   :  { %9656 = vmatprep.subr.mxu1 %v11414_v25 }
 0xc41   :  { %9657 = vmatpush3.msra.mxu1 %v11432_v62 }
 0xc42   :  { %9672 = vmatprep.subr.mxu1 %v11414_v25 }
 0xce1   :  { %v5710_v11 = vpop.f32.mrf.mxu0  ;;  %v6077_v13 = vpop.f32.mrf.mxu1 }
 0xce2   :  { %v5784_v35 = vadd.f32 %v5783_v31, %v5710_v11  ;;  %v6078_v58 = vadd.f32 %v11551_v59, %v6077_v13 }
 0xce3   :  { %v9539_v38 = vpop.f32.mrf.mxu0  ;;  %v9594_v40 = vpop.f32.mrf.mxu1 }
 0xce4   :  { %v5787_v14 = vadd.f32 %v11539_v33, %v5784_v35 }
 0xce6   :  { %v8170_v63 = vmul.f32 -1.442695, %v5787_v14 }
 0xce8   :  { %10028 = vpow2.f32 %v8170_v63 }
 0xce9   :  { %v5860_v36 = vpop.f32.mrf.mxu0 }
 0xcea   :  { %v5931_v9 = vadd.f32 %v5930_v5, %v5860_v36 }
 0xceb   :  { %v9561_v34 = vpop.f32.mrf.mxu0 }
 0xcec   :  { %v5934_v37 = vadd.f32 %v11545_v26, %v5931_v9 }
 0xcee   :  { %v8173_v39 = vmul.f32 -1.442695, %v5934_v37 }
 0xcf0   :  { %10030 = vpow2.f32 %v8173_v39 }
 0xcf1   :  { %v6007_v42 = vpop.f32.mrf.mxu0 }
 0xcf2   :  { %v6008_v2 = vadd.f32 %v11556_v60, %v6007_v42 }
 0xcf3   :  { %v9583_v46 = vpop.f32.mrf.mxu0 }
 0xcf5   :  { %v10029_v47 = vpop.eup %10028 }
 0xcf6   :  { %v5791_v48 = vadd.f32 1.0, %v10029_v47 }
 0xcf8   :  { %10032 = vrcp.f32 %v5791_v48 }
 0xcfd   :  { %v10031_v49 = vpop.eup %10030 }
 0xcfe   :  { %v5938_v57 = vadd.f32 1.0, %v10031_v49 }
 0xd00   :  { %10034 = vrcp.f32 %v5938_v57  ;;  %v11872_v57 = vld [vmem:[#allocation11 + $0x38] sm:$0xff] }
 0xd05   :  { %v10033_v4 = vpop.eup %10032 }
 0xd06   :  { %v6081_v27 = vmul.f32 %v10033_v4, %v6078_v58  ;;  %v11884_v58 = vld [vmem:[#allocation11 + $0x28] sm:$0xff]  ;;  %v11900_v4 = vld [vmem:[#allocation12 + $0x50] sm:$0xff] }
 0xd08   :  { %v6082_v8 = vadd.f32 %v6081_v27, %v6008_v2  ;;  %v11888_v2 = vld [vmem:[#allocation11 + $0x20] sm:$0xff]  ;;  %v11904_v27 = vld [vmem:[#allocation12 + $0x48] sm:$0xff] }
 0xd0a   :  { %10036 = vtanh.f32 %v6082_v8  ;;  %v11908_v8 = vld [vmem:[#allocation12 + $0x40] sm:$0xff] }
 0xd0d   :  { %v10035_v1 = vpop.eup %10034 }
 0xd0e   :  { %v6084_v29 = vsub.f32 1.0, %v10035_v1  ;;  %v6086_v12 = vmul.f32 %v10035_v1, %v11644_v30 }
 0xd17   :  { %v10037_v50 = vpop.eup %10036 }
 0xd18   :  { %v6085_v6 = vmul.f32 %v10037_v50, %v6084_v29 }
 0xd1a   :  { %v11727_v52 = vadd.f32 %v6086_v12, %v6085_v6 }
 0xd1c   :  { %6089 = vst.msk [vmem:[#allocation2 + $0x10] sm:$0xff] %vm250_vm1, %v11727_v52  ;;  %9604 = vmatmul.mubr.msk.f32.vlgmr.msra.gmra.mxu0 %vm250_vm1, %v11727_v52  ;;  %9659 = vmatmul.mubr.msk.f32.vlgmr.msra.gmra.mxu1 %vm250_vm1, %v11727_v52 }
 0xd1d   :  { %9618 = vmatpush3.msra.mxu0 %v11446_v51  ;;  %9625 = vmatprep.mubr.msk.f32.mxu0 %vm10317_vm0, %v11414_v25 }
 0xd1e   :  { %9619 = vmatprep.subr.mxu0 %v11414_v25  ;;  %9673 = vmatpush3.msra.mxu1 %v11362_v41 }
 0xd1f   :  { %9620 = vmatpush3.msra.mxu0 %v11452_v21  ;;  %9674 = vmatprep.subr.mxu1 %v11414_v25 }
 0xd20   :  { %9621 = vmatprep.subr.mxu0 %v11414_v25  ;;  %9675 = vmatpush3.msra.mxu1 %v11366_v43 }
 0xd21   :  { %9622 = vmatpush3.msra.mxu0 %v11458_v23  ;;  %9676 = vmatprep.subr.mxu1 %v11414_v25 }
 0xd22   :  { %9623 = vmatprep.subr.mxu0 %v11414_v25  ;;  %9677 = vmatpush3.msra.mxu1 %v11370_v44 }
 0xd23   :  { %9624 = vmatpush3.msra.mxu0 %v11464_v53  ;;  %9678 = vmatprep.subr.mxu1 %v11414_v25 }
 0xd24   :  { %9626 = vmatmul.mubr.msk.f32.vlgmr.msra.gmra.mxu0 %vm250_vm1, %v11727_v52  ;;  %9639 = vmatprep.subr.mxu0 %v11414_v25 }
 0xd25   :  { %9640 = vmatpush3.msra.mxu0 %v11470_v54  ;;  %9647 = vmatprep.mubr.msk.f32.mxu0 %vm10317_vm0, %v11414_v25 }
 0xd26   :  { %9641 = vmatprep.subr.mxu0 %v11414_v25  ;;  %9679 = vmatpush3.msra.mxu1 %v11373_v45  ;;  %v6234_v45 = vpop.f32.mrf.mxu1 }
 0xd27   :  { %9642 = vmatpush3.msra.mxu0 %v11478_v55  ;;  %9680 = vmatprep.mubr.msk.f32.mxu1 %vm10317_vm0, %v11414_v25 }
 0xd28   :  { %9643 = vmatprep.subr.mxu0 %v11414_v25  ;;  %9694 = vmatprep.subr.mxu1 %v11414_v25  ;;  %v9616_v30 = vpop.f32.mrf.mxu1 }
 0xd29   :  { %9644 = vmatpush3.msra.mxu0 %v11484_v56  ;;  %9681 = vmatmul.mubr.msk.f32.vlgmr.msra.gmra.mxu1 %vm250_vm1, %v11779_v32 }
 0xd2a   :  { %9645 = vmatprep.subr.mxu0 %v11414_v25  ;;  %9695 = vmatpush3.msra.mxu1 %v11378_v15 }
 0xd2b   :  { %9646 = vmatpush3.msra.mxu0 %v11491_v0  ;;  %9702 = vmatprep.mubr.msk.f32.mxu1 %vm10317_vm0, %v11414_v25 }
 0xd2c   :  { %9648 = vmatmul.mubr.msk.f32.vlgmr.msra.gmra.mxu0 %vm250_vm1, %v11696_v10  ;;  %9661 = vmatprep.subr.mxu0 %v11414_v25 }
 0xd2d   :  { %9662 = vmatpush3.msra.mxu0 %v11381_v16  ;;  %9669 = vmatprep.mubr.msk.f32.mxu0 %vm10317_vm0, %v11414_v25  ;;  %v6381_v16 = vpop.f32.mrf.mxu1 }
 0xd2e   :  { %9663 = vmatprep.subr.mxu0 %v11414_v25  ;;  %9696 = vmatprep.subr.mxu1 %v11414_v25 }
 0xd2f   :  { %9664 = vmatpush3.msra.mxu0 %v11390_v18  ;;  %v9638_v31 = vpop.f32.mrf.mxu1  ;;  %9697 = vmatpush3.msra.mxu1 %v11386_v17 }
 0xd30   :  { %9665 = vmatprep.subr.mxu0 %v11414_v25  ;;  %9698 = vmatprep.subr.mxu1 %v11414_v25 }
 0xd31   :  { %9666 = vmatpush3.msra.mxu0 %v11399_v20  ;;  %9699 = vmatpush3.msra.mxu1 %v11393_v19 }
 0xd32   :  { %9667 = vmatprep.subr.mxu0 %v11414_v25  ;;  %9700 = vmatprep.subr.mxu1 %v11414_v25 }
 0xd33   :  { %9668 = vmatpush3.msra.mxu0 %v11411_v28  ;;  %9701 = vmatpush3.msra.mxu1 %v11402_v22 }
 0xd34   :  { %9683 = vmatprep.subr.mxu0 %v11414_v25  ;;  %9716 = vmatprep.subr.mxu1 %v11414_v25 }
 0xd35   :  { %9703 = vmatmul.mubr.msk.f32.vlgmr.msra.gmra.mxu1 %vm250_vm1, %v11779_v32 }
 0xd36   :  { %9717 = vmatpush3.msra.mxu1 %v11408_v24  ;;  %9724 = vmatprep.mubr.msk.f32.mxu1 %vm10317_vm0, %v11414_v25 }
 0xd37   :  { %9718 = vmatprep.subr.mxu1 %v11414_v25 }
 0xd38   :  { %9719 = vmatpush3.msra.mxu1 %v11420_v61 }
 0xd39   :  { %9720 = vmatprep.subr.mxu1 %v11414_v25 }
 0xd3a   :  { %9721 = vmatpush3.msra.mxu1 %v11425_v3 }
 0xd3b   :  { %9722 = vmatprep.subr.mxu1 %v11414_v25 }
 0xd3c   :  { %9723 = vmatpush3.msra.mxu1 %v11432_v62 }
 0xd3d   :  { %9738 = vmatprep.subr.mxu1 %v11414_v25 }
 0xddc   :  { %v6161_v15 = vpop.f32.mrf.mxu0  ;;  %v6528_v17 = vpop.f32.mrf.mxu1 }
 0xddd   :  { %v6235_v18 = vadd.f32 %v6234_v45, %v6161_v15  ;;  %v6529_v63 = vadd.f32 %v11551_v59, %v6528_v17 }
 0xdde   :  { %v9605_v19 = vpop.f32.mrf.mxu0  ;;  %v9660_v22 = vpop.f32.mrf.mxu1 }
 0xddf   :  { %v6238_v24 = vadd.f32 %v11539_v33, %v6235_v18 }
 0xde1   :  { %v8178_v5 = vmul.f32 -1.442695, %v6238_v24 }
 0xde3   :  { %10038 = vpow2.f32 %v8178_v5 }
 0xde4   :  { %v6311_v61 = vpop.f32.mrf.mxu0 }
 0xde5   :  { %v6382_v7 = vadd.f32 %v6381_v16, %v6311_v61 }
 0xde6   :  { %v9627_v10 = vpop.f32.mrf.mxu0 }
 0xde7   :  { %v6385_v3 = vadd.f32 %v11545_v26, %v6382_v7 }
 0xde9   :  { %v8181_v11 = vmul.f32 -1.442695, %v6385_v3 }
 0xdeb   :  { %10040 = vpow2.f32 %v8181_v11 }
 0xdec   :  { %v6458_v13 = vpop.f32.mrf.mxu0 }
 0xded   :  { %v6459_v36 = vadd.f32 %v11556_v60, %v6458_v13 }
 0xdee   :  { %v9649_v62 = vpop.f32.mrf.mxu0 }
 0xdf0   :  { %v10039_v35 = vpop.eup %10038 }
 0xdf1   :  { %v6242_v38 = vadd.f32 1.0, %v10039_v35 }
 0xdf3   :  { %10042 = vrcp.f32 %v6242_v38 }
 0xdf8   :  { %v10041_v40 = vpop.eup %10040 }
 0xdf9   :  { %v6389_v14 = vadd.f32 1.0, %v10041_v40 }
 0xdfb   :  { %10044 = vrcp.f32 %v6389_v14 }
 0xe00   :  { %v10043_v9 = vpop.eup %10042 }
 0xe01   :  { %v6532_v34 = vmul.f32 %v10043_v9, %v6529_v63  ;;  %v11925_v63 = vld [vmem:[#allocation12 + $0x38] sm:$0xff]  ;;  %v11931_v9 = vld [vmem:[#allocation12 + $0x30] sm:$0xff] }
 0xe03   :  { %v6533_v37 = vadd.f32 %v6532_v34, %v6459_v36  ;;  %v10121_v36 = vld [vmem:[#allocation11 + $0x18] sm:$0xff]  ;;  %v10123_v34 = vld [vmem:[#allocation11 + $0x10] sm:$0xff] }
 0xe05   :  { %10046 = vtanh.f32 %v6533_v37  ;;  %v11936_v37 = vld [vmem:[#allocation12 + $0x28] sm:$0xff] }
 0xe08   :  { %v10045_v39 = vpop.eup %10044 }
 0xe09   :  { %v6535_v42 = vsub.f32 1.0, %v10045_v39  ;;  %v6537_v48 = vmul.f32 %v10045_v39, %v11727_v52  ;;  %v10125_v39 = vld [vmem:[#allocation11 + $0x8] sm:$0xff] }
 0xe12   :  { %v10047_v46 = vpop.eup %10046 }
 0xe13   :  { %v6536_v47 = vmul.f32 %v10047_v46, %v6535_v42  ;;  %v11941_v42 = vld [vmem:[#allocation12 + $0x20] sm:$0xff]  ;;  %v11948_v46 = vld [vmem:[#allocation11 + $0x58] sm:$0xff] }
 0xe15   :  { %v11810_v49 = vadd.f32 %v6537_v48, %v6536_v47 }
 0xe17   :  { %6540 = vst.msk [vmem:[#allocation2 + $0x18] sm:$0xff] %vm250_vm1, %v11810_v49  ;;  %9670 = vmatmul.mubr.msk.f32.vlgmr.msra.gmra.mxu0 %vm250_vm1, %v11810_v49  ;;  %9725 = vmatmul.mubr.msk.f32.vlgmr.msra.gmra.mxu1 %vm250_vm1, %v11810_v49 }
 0xe18   :  { %9684 = vmatpush3.msra.mxu0 %v11446_v51  ;;  %9691 = vmatprep.mubr.msk.f32.mxu0 %vm10317_vm0, %v11414_v25  ;;  %v6685_v51 = vpop.f32.mrf.mxu1 }
 0xe19   :  { %9685 = vmatprep.subr.mxu0 %v11414_v25  ;;  %9739 = vmatpush3.msra.mxu1 %v11362_v41  ;;  %v11840_v41 = vld [vmem:[#allocation11] sm:$0xff] }
 0xe1a   :  { %9686 = vmatpush3.msra.mxu0 %v11452_v21  ;;  %9740 = vmatprep.subr.mxu1 %v11414_v25  ;;  %v9682_v21 = vpop.f32.mrf.mxu1 }
 0xe1b   :  { %9687 = vmatprep.subr.mxu0 %v11414_v25  ;;  %9741 = vmatpush3.msra.mxu1 %v11366_v43  ;;  %v11854_v43 = vld [vmem:[#allocation12 + $0x18] sm:$0xff] }
 0xe1c   :  { %9688 = vmatpush3.msra.mxu0 %v11458_v23  ;;  %9742 = vmatprep.subr.mxu1 %v11414_v25  ;;  %v6832_v23 = vpop.f32.mrf.mxu1 }
 0xe1d   :  { %9689 = vmatprep.subr.mxu0 %v11414_v25  ;;  %9743 = vmatpush3.msra.mxu1 %v11370_v44  ;;  %v11860_v44 = vld [vmem:[#allocation12 + $0x10] sm:$0xff] }
 0xe1e   :  { %9690 = vmatpush3.msra.mxu0 %v11464_v53  ;;  %9744 = vmatprep.subr.mxu1 %v11414_v25  ;;  %v9704_v53 = vpop.f32.mrf.mxu1 }
 0xe1f   :  { %9692 = vmatmul.mubr.msk.f32.vlgmr.msra.gmra.mxu0 %vm250_vm1, %v11810_v49  ;;  %9705 = vmatprep.subr.mxu0 %v11414_v25 }
 0xe20   :  { %9706 = vmatpush3.msra.mxu0 %v11470_v54  ;;  %9713 = vmatprep.mubr.msk.f32.mxu0 %vm10317_vm0, %v11414_v25  ;;  %v11868_v54 = vld [vmem:[#allocation6 + $0x28] sm:$0xff] }
 0xe21   :  { %9707 = vmatprep.subr.mxu0 %v11414_v25  ;;  %9745 = vmatpush3.msra.mxu1 %v11840_v41 }
 0xe22   :  { %9708 = vmatpush3.msra.mxu0 %v11478_v55  ;;  %9746 = vmatprep.mubr.msk.f32.mxu1 %vm10317_vm0, %v11414_v25 }
 0xe23   :  { %9709 = vmatprep.subr.mxu0 %v11414_v25  ;;  %9760 = vmatprep.subr.mxu1 %v11414_v25 }
 0xe24   :  { %9710 = vmatpush3.msra.mxu0 %v11484_v56  ;;  %9747 = vmatmul.mubr.msk.f32.vlgmr.msra.gmra.mxu1 %vm250_vm1, %v11868_v54 }
 0xe25   :  { %9711 = vmatprep.subr.mxu0 %v11414_v25  ;;  %9761 = vmatpush3.msra.mxu1 %v11872_v57 }
 0xe26   :  { %9712 = vmatpush3.msra.mxu0 %v11491_v0  ;;  %9768 = vmatprep.mubr.msk.f32.mxu1 %vm10317_vm0, %v11414_v25 }
 0xe27   :  { %9714 = vmatmul.mubr.msk.f32.vlgmr.msra.gmra.mxu0 %vm250_vm1, %v11779_v32  ;;  %9727 = vmatprep.subr.mxu0 %v11414_v25 }
 0xe28   :  { %9728 = vmatpush3.msra.mxu0 %v11854_v43  ;;  %9735 = vmatprep.mubr.msk.f32.mxu0 %vm10317_vm0, %v11414_v25 }
 0xe29   :  { %9729 = vmatprep.subr.mxu0 %v11414_v25  ;;  %9762 = vmatprep.subr.mxu1 %v11414_v25 }
 0xe2a   :  { %9730 = vmatpush3.msra.mxu0 %v11860_v44 }
 0xe2b   :  { %9731 = vmatprep.subr.mxu0 %v11414_v25 }
 0xe2c   :  { %9732 = vmatpush3.msra.mxu0 %v11399_v20  ;;  %v11878_v20 = vld [vmem:[#allocation11 + $0x30] sm:$0xff] }
 0xe2d   :  { %9733 = vmatprep.subr.mxu0 %v11414_v25  ;;  %9763 = vmatpush3.msra.mxu1 %v11878_v20 }
 0xe2e   :  { %9734 = vmatpush3.msra.mxu0 %v11411_v28  ;;  %v11881_v28 = vld [vmem:[#allocation15] sm:$0xff] }
 0xe2f   :  { %9749 = vmatprep.subr.mxu0 %v11414_v25  ;;  %9764 = vmatprep.subr.mxu1 %v11881_v28  ;;  %v11894_v25 = vld [vmem:[#allocation12 + $0x58] sm:$0xff] }
 0xe30   :  { %9765 = vmatpush3.msra.mxu1 %v11884_v58 }
 0xe31   :  { %9766 = vmatprep.subr.mxu1 %v11881_v28 }
 0xe32   :  { %9767 = vmatpush3.msra.mxu1 %v11888_v2 }
 0xe33   :  { %9782 = vmatprep.subr.mxu1 %v11881_v28  ;;  %9769 = vmatmul.mubr.msk.f32.vlgmr.msra.gmra.mxu1 %vm250_vm1, %v11868_v54 }
 0xe34   :  { %9783 = vmatpush3.msra.mxu1 %v11894_v25  ;;  %9790 = vmatprep.mubr.msk.f32.mxu1 %vm10317_vm0, %v11881_v28 }
 0xe35   :  { %9784 = vmatprep.subr.mxu1 %v11881_v28 }
 0xe36   :  { %9785 = vmatpush3.msra.mxu1 %v11900_v4 }
 0xe37   :  { %9786 = vmatprep.subr.mxu1 %v11881_v28 }
 0xe38   :  { %9787 = vmatpush3.msra.mxu1 %v11904_v27 }
 0xe39   :  { %9788 = vmatprep.subr.mxu1 %v11881_v28 }
 0xe3a   :  { %9789 = vmatpush3.msra.mxu1 %v11908_v8 }
 0xe3b   :  { %9804 = vmatprep.subr.mxu1 %v11881_v28 }
 0xed7   :  { %v6612_v1 = vpop.f32.mrf.mxu0  ;;  %v6979_v29 = vpop.f32.mrf.mxu1 }
 0xed8   :  { %v6686_v50 = vadd.f32 %v6685_v51, %v6612_v1  ;;  %v6980_v61 = vadd.f32 %v11551_v59, %v6979_v29 }
 0xed9   :  { %v9671_v6 = vpop.f32.mrf.mxu0  ;;  %v9726_v12 = vpop.f32.mrf.mxu1 }
 0xeda   :  { %v6689_v52 = vadd.f32 %v11539_v33, %v6686_v50 }
 0xedc   :  { %v8186_v45 = vmul.f32 -1.442695, %v6689_v52 }
 0xede   :  { %10048 = vpow2.f32 %v8186_v45 }
 0xedf   :  { %v6762_v30 = vpop.f32.mrf.mxu0 }
 0xee0   :  { %v6833_v16 = vadd.f32 %v6832_v23, %v6762_v30 }
 0xee1   :  { %v9693_v31 = vpop.f32.mrf.mxu0 }
 0xee2   :  { %v6836_v32 = vadd.f32 %v11545_v26, %v6833_v16 }
 0xee4   :  { %v8189_v15 = vmul.f32 -1.442695, %v6836_v32 }
 0xee6   :  { %10050 = vpow2.f32 %v8189_v15 }
 0xee7   :  { %v6909_v17 = vpop.f32.mrf.mxu0 }
 0xee8   :  { %v6910_v7 = vadd.f32 %v11556_v60, %v6909_v17  ;;  %v7904_v17 = vld [vmem:[#allocation14 + $0x18] sm:$0xff] }
 0xee9   :  { %v9715_v18 = vpop.f32.mrf.mxu0 }
 0xeea   :  { %v7901_v18 = vld [vmem:[#allocation14] sm:$0xff] }
 0xeeb   :  { %v10049_v19 = vpop.eup %10048 }
 0xeec   :  { %v6693_v22 = vadd.f32 1.0, %v10049_v19 }
 0xeee   :  { %10052 = vrcp.f32 %v6693_v22  ;;  %v10130_v22 = vld [vmem:[#allocation11 + $0x50] sm:$0xff] }
 0xef3   :  { %v10051_v24 = vpop.eup %10050 }
 0xef4   :  { %v6840_v5 = vadd.f32 1.0, %v10051_v24 }
 0xef6   :  { %10054 = vrcp.f32 %v6840_v5  ;;  %v10131_v5 = vld [vmem:[#allocation11 + $0x48] sm:$0xff] }
 0xefb   :  { %v10053_v10 = vpop.eup %10052 }
 0xefc   :  { %v6983_v3 = vmul.f32 %v10053_v10, %v6980_v61  ;;  %v10132_v61 = vld [vmem:[#allocation11 + $0x40] sm:$0xff]  ;;  %v7895_v10 = vld [vmem:[#allocation2 + $0x8] sm:$0xff] }
 0xefe   :  { %v6984_v11 = vadd.f32 %v6983_v3, %v6910_v7  ;;  %v7894_v7 = vld [vmem:[#allocation2] sm:$0xff]  ;;  %v7896_v3 = vld [vmem:[#allocation2 + $0x10] sm:$0xff] }
 0xf00   :  { %10056 = vtanh.f32 %v6984_v11  ;;  %v7897_v11 = vld [vmem:[#allocation2 + $0x18] sm:$0xff] }
 0xf03   :  { %v10055_v13 = vpop.eup %10054 }
 0xf04   :  { %v6986_v62 = vsub.f32 1.0, %v10055_v13  ;;  %v6988_v40 = vmul.f32 %v10055_v13, %v11810_v49 }
 0xf0d   :  { %v10057_v35 = vpop.eup %10056 }
 0xf0e   :  { %v6987_v38 = vmul.f32 %v10057_v35, %v6986_v62 }
 0xf10   :  { %v11917_v14 = vadd.f32 %v6988_v40, %v6987_v38 }
 0xf12   :  { %6991 = vst.msk [vmem:[#allocation2 + $0x20] sm:$0xff] %vm250_vm1, %v11917_v14  ;;  %9736 = vmatmul.mubr.msk.f32.vlgmr.msra.gmra.mxu0 %vm250_vm1, %v11917_v14  ;;  %9791 = vmatmul.mubr.msk.f32.vlgmr.msra.gmra.mxu1 %vm250_vm1, %v11917_v14 }
 0xf13   :  { %9750 = vmatpush3.msra.mxu0 %v11925_v63  ;;  %9757 = vmatprep.mubr.msk.f32.mxu0 %vm10317_vm0, %v11881_v28 }
 0xf14   :  { %9751 = vmatprep.subr.mxu0 %v11881_v28  ;;  %9805 = vmatpush3.msra.mxu1 %v10121_v36 }
 0xf15   :  { %9752 = vmatpush3.msra.mxu0 %v11931_v9  ;;  %9806 = vmatprep.subr.mxu1 %v11881_v28 }
 0xf16   :  { %9753 = vmatprep.subr.mxu0 %v11881_v28  ;;  %9807 = vmatpush3.msra.mxu1 %v10123_v34  ;;  %v10133_v34 = vld [vmem:[%s12091_s7] ss:$0 sm:$0xff] }
 0xf17   :  { %9754 = vmatpush3.msra.mxu0 %v11936_v37  ;;  %9808 = vmatprep.subr.mxu1 %v11881_v28 }
 0xf18   :  { %9755 = vmatprep.subr.mxu0 %v11881_v28  ;;  %9809 = vmatpush3.msra.mxu1 %v10125_v39 }
 0xf19   :  { %9756 = vmatpush3.msra.mxu0 %v11941_v42  ;;  %9810 = vmatprep.subr.mxu1 %v11881_v28  ;;  %v7898_v19 = vld [vmem:[#allocation2 + $0x20] sm:$0xff] }
 0xf1a   :  { %9758 = vmatmul.mubr.msk.f32.vlgmr.msra.gmra.mxu0 %vm250_vm1, %v11917_v14  ;;  %9771 = vmatprep.subr.mxu0 %v11881_v28 }
 0xf1b   :  { %9772 = vmatpush3.msra.mxu0 %v11948_v46  ;;  %9779 = vmatprep.mubr.msk.f32.mxu0 %vm10317_vm0, %v11881_v28 }
 0xf1c   :  { %9773 = vmatprep.subr.mxu0 %v11881_v28  ;;  %9811 = vmatpush3.msra.mxu1 %v11840_v41  ;;  %v11974_v41 = vld [vmem:[#allocation6 + $0x30] sm:$0xff] }
 0xf1d   :  { %9774 = vmatpush3.msra.mxu0 %v11478_v55  ;;  %9812 = vmatprep.mubr.msk.f32.mxu1 %vm10317_vm0, %v11881_v28  ;;  %v10128_v55 = vld [vmem:[#allocation12 + $0x8] sm:$0xff] }
 0xf1e   :  { %9775 = vmatprep.subr.mxu0 %v11881_v28  ;;  %9826 = vmatprep.subr.mxu1 %v11881_v28 }
 0xf1f   :  { %9776 = vmatpush3.msra.mxu0 %v11484_v56  ;;  %v10129_v56 = vld [vmem:[#allocation12] sm:$0xff]  ;;  %9813 = vmatmul.mubr.msk.f32.vlgmr.msra.gmra.mxu1 %vm250_vm1, %v11974_v41 }
 0xf20   :  { %9777 = vmatprep.subr.mxu0 %v11881_v28  ;;  %9827 = vmatpush3.msra.mxu1 %v11872_v57 }
 0xf21   :  { %9778 = vmatpush3.msra.mxu0 %v11491_v0  ;;  %v7136_v0 = vpop.f32.mrf.mxu1  ;;  %9834 = vmatprep.mubr.msk.f32.mxu1 %vm10317_vm0, %v11881_v28 }
 0xf22   :  { %9780 = vmatmul.mubr.msk.f32.vlgmr.msra.gmra.mxu0 %vm250_vm1, %v11868_v54  ;;  %9793 = vmatprep.subr.mxu0 %v11881_v28 }
 0xf23   :  { %9794 = vmatpush3.msra.mxu0 %v11854_v43  ;;  %9801 = vmatprep.mubr.msk.f32.mxu0 %vm10317_vm0, %v11881_v28  ;;  %v9748_v47 = vpop.f32.mrf.mxu1 }
 0xf24   :  { %9795 = vmatprep.subr.mxu0 %v11881_v28  ;;  %9828 = vmatprep.subr.mxu1 %v11881_v28  ;;  %v10134_v47 = vld [vmem:[%s12091_s7 + $0x1] ss:$0 sm:$0xff] }
 0xf25   :  { %9796 = vmatpush3.msra.mxu0 %v11860_v44  ;;  %v7283_v48 = vpop.f32.mrf.mxu1  ;;  %9829 = vmatpush3.msra.mxu1 %v11878_v20 }
 0xf26   :  { %9797 = vmatprep.subr.mxu0 %v11881_v28  ;;  %9830 = vmatprep.subr.mxu1 %v11881_v28 }
 0xf27   :  { %9798 = vmatpush3.msra.mxu0 %v10128_v55  ;;  %v9770_v49 = vpop.f32.mrf.mxu1  ;;  %9831 = vmatpush3.msra.mxu1 %v11884_v58 }
 0xf28   :  { %9799 = vmatprep.subr.mxu0 %v11881_v28  ;;  %9832 = vmatprep.subr.mxu1 %v11881_v28 }
 0xf29   :  { %9800 = vmatpush3.msra.mxu0 %v10129_v56  ;;  %9833 = vmatpush3.msra.mxu1 %v11888_v2 }
 0xf2a   :  { %9815 = vmatprep.subr.mxu0 %v11881_v28  ;;  %9848 = vmatprep.subr.mxu1 %v11881_v28 }
 0xf2b   :  { %9835 = vmatmul.mubr.msk.f32.vlgmr.msra.gmra.mxu1 %vm250_vm1, %v11974_v41 }
 0xf2c   :  { %9849 = vmatpush3.msra.mxu1 %v11894_v25  ;;  %9856 = vmatprep.mubr.msk.f32.mxu1 %vm10317_vm0, %v11881_v28 }
 0xf2d   :  { %9850 = vmatprep.subr.mxu1 %v11881_v28 }
 0xf2e   :  { %9851 = vmatpush3.msra.mxu1 %v11900_v4 }
 0xf2f   :  { %9852 = vmatprep.subr.mxu1 %v11881_v28 }
 0xf30   :  { %9853 = vmatpush3.msra.mxu1 %v11904_v27 }
 0xf31   :  { %9854 = vmatprep.subr.mxu1 %v11881_v28 }
 0xf32   :  { %9855 = vmatpush3.msra.mxu1 %v11908_v8 }
 0xf33   :  { %9888 = vmatprep.subr.mxu1 %v11881_v28 }
 0xfd2   :  { %v7063_v43 = vpop.f32.mrf.mxu0  ;;  %v7430_v44 = vpop.f32.mrf.mxu1 }
 0xfd3   :  { %v7137_v51 = vadd.f32 %v7136_v0, %v7063_v43  ;;  %v7431_v6 = vadd.f32 %v11551_v59, %v7430_v44  ;;  %v7903_v59 = vld [vmem:[#allocation14 + $0x10] sm:$0xff] }
 0xfd4   :  { %v9737_v21 = vpop.f32.mrf.mxu0  ;;  %v9792_v23 = vpop.f32.mrf.mxu1 }
 0xfd5   :  { %v7140_v53 = vadd.f32 %v11539_v33, %v7137_v51 }
 0xfd7   :  { %v8194_v54 = vmul.f32 -1.442695, %v7140_v53 }
 0xfd9   :  { %10058 = vpow2.f32 %v8194_v54 }
 0xfda   :  { %v7213_v57 = vpop.f32.mrf.mxu0 }
 0xfdb   :  { %v7284_v20 = vadd.f32 %v7283_v48, %v7213_v57 }
 0xfdc   :  { %v9759_v58 = vpop.f32.mrf.mxu0 }
 0xfdd   :  { %v7287_v2 = vadd.f32 %v11545_v26, %v7284_v20 }
 0xfdf   :  { %v8197_v25 = vmul.f32 -1.442695, %v7287_v2  ;;  %v7587_v13 = vpop.f32.mrf.mxu1 }
 0xfe1   :  { %10060 = vpow2.f32 %v8197_v25  ;;  %v9814_v62 = vpop.f32.mrf.mxu1 }
 0xfe2   :  { %v7360_v4 = vpop.f32.mrf.mxu0 }
 0xfe3   :  { %v7361_v33 = vadd.f32 %v11556_v60, %v7360_v4  ;;  %v7902_v60 = vld [vmem:[#allocation14 + $0x8] sm:$0xff] }
 0xfe4   :  { %v9781_v27 = vpop.f32.mrf.mxu0 }
 0xfe6   :  { %v10059_v8 = vpop.eup %10058 }
 0xfe7   :  { %v7144_v1 = vadd.f32 1.0, %v10059_v8 }
 0xfe9   :  { %10062 = vrcp.f32 %v7144_v1 }
 0xfeb   :  { %v7734_v35 = vpop.f32.mrf.mxu1 }
 0xfed   :  { %v9836_v38 = vpop.f32.mrf.mxu1 }
 0xfee   :  { %v10061_v29 = vpop.eup %10060 }
 0xfef   :  { %v7291_v50 = vadd.f32 1.0, %v10061_v29 }
 0xff1   :  { %10064 = vrcp.f32 %v7291_v50  ;;  %v10135_v50 = vld [vmem:[%s12091_s7 + $0x3] ss:$0 sm:$0xff] }
 0xff6   :  { %v10063_v12 = vpop.eup %10062 }
 0xff7   :  { %v7434_v52 = vmul.f32 %v10063_v12, %v7431_v6 }
 0xff9   :  { %v7435_v45 = vadd.f32 %v7434_v52, %v7361_v33  ;;  %v10136_v33 = vld [vmem:[%s12091_s7 + $0x2] ss:$0 sm:$0xff]  ;;  %s10318_s7 = smov [#allocation15]  }
 0xffa   :  { %s8046_s3 = sshll.u32 %s10318_s7, 4  ;;  %s8047_s3 = int_to_ptr.vmem [resolvable:$true] %s8046_s3 }
 0xffb   :  { %10066 = vtanh.f32 %v7435_v45  ;;  %s10277_s11 = scalar_lea.vmem %s8047_s3, 1024  ;;  %p10282_p8 = scmp.lt.s32.totalorder %s8047_s3, %s8047_s3 }
 0xffc   :  { %p10278_p7 = scmp.ne.s32.totalorder %s8047_s3, %s10277_s11  ;;  %p10283_p9 = scmp.lt.s32.totalorder %s10277_s11, %s10277_s11 }
 0xffe   :  { %v10065_v30 = vpop.eup %10064  ;;  %p10284_p10 = por %p10283_p9, %p10282_p8 }
 0xfff   :  { %v7437_v26 = vsub.f32 1.0, %v10065_v30  ;;  %v7439_v32 = vmul.f32 %v10065_v30, %v11917_v14 }
0x1000   :  { %p10285_p11 = pnand %p10284_p10, %p10278_p7 }
0x1008   :  { %v10067_v16 = vpop.eup %10066 }
0x1009   :  { %v7438_v31 = vmul.f32 %v10067_v16, %v7437_v26 }
0x100b   :  { %v12005_v15 = vadd.f32 %v7439_v32, %v7438_v31 }
0x100d   :  { %7442 = vst.msk [vmem:[#allocation2 + $0x28] sm:$0xff] %vm250_vm1, %v12005_v15  ;;  %9802 = vmatmul.mubr.msk.f32.vlgmr.msra.gmra.mxu0 %vm250_vm1, %v12005_v15  ;;  %9857 = vmatmul.mubr.msk.f32.vlgmr.msra.gmra.mxu1 %vm250_vm1, %v12005_v15 }
0x100e   :  { %9816 = vmatpush3.msra.mxu0 %v11925_v63  ;;  %9892 = vmatpush3.msra.mxu1 %v7904_v17 }
0x100f   :  { %9817 = vmatprep.subr.mxu0 %v11881_v28  ;;  %9889 = vmatprep.subr.mxu1 %v11881_v28 }
0x1010   :  { %9818 = vmatpush3.msra.mxu0 %v11931_v9  ;;  %9893 = vmatpush3.msra.mxu1 %v7903_v59 }
0x1011   :  { %9819 = vmatprep.subr.mxu0 %v11881_v28  ;;  %9890 = vmatprep.subr.mxu1 %v11881_v28 }
0x1012   :  { %9820 = vmatpush3.msra.mxu0 %v11936_v37  ;;  %9894 = vmatpush3.msra.mxu1 %v7902_v60 }
0x1013   :  { %9821 = vmatprep.subr.mxu0 %v11881_v28  ;;  %9891 = vmatprep.subr.mxu1 %v11881_v28 }
0x1014   :  { %9822 = vmatpush3.msra.mxu0 %v11941_v42  ;;  %9823 = vmatprep.mubr.msk.f32.mxu0 %vm10317_vm0, %v11881_v28  ;;  %v7899_v24 = vld [vmem:[#allocation2 + $0x28] sm:$0xff] }
0x1015   :  { %9895 = vmatpush3.msra.mxu1 %v7901_v18  ;;  %9879 = vmatprep.mubr.msk.f32.mxu1 %vm10317_vm0, %v11881_v28 }
0x1016   :  { %9824 = vmatmul.mubr.msk.f32.vlgmr.msra.gmra.mxu0 %vm250_vm1, %v12005_v15  ;;  %9837 = vmatprep.subr.mxu0 %v11881_v28 }
0x1017   :  { %9880 = vmatmul.mubr.msk.f32.vlgmr.msra.gmra.mxu1 %vm250_vm1, %v7898_v19  ;;  %9838 = vmatpush3.msra.mxu0 %v11948_v46 }
0x1018   :  { %9839 = vmatprep.subr.mxu0 %v11881_v28  ;;  %9882 = vmatprep.mubr.msk.f32.mxu1 %vm10317_vm0, %v11881_v28 }
0x1019   :  { %9840 = vmatpush3.msra.mxu0 %v10130_v22  ;;  %9845 = vmatprep.mubr.msk.f32.mxu0 %vm10317_vm0, %v11881_v28 }
0x101a   :  { %9841 = vmatprep.subr.mxu0 %v11881_v28 }
0x101b   :  { %9883 = vmatmul.mubr.msk.f32.gmra.mxu1 %vm250_vm1, %v7899_v24  ;;  %9842 = vmatpush3.msra.mxu0 %v10131_v5 }
0x101c   :  { %9843 = vmatprep.subr.mxu0 %v11881_v28  ;;  %9885 = vmatprep.mubr.msk.f32.mxu1 %vm10317_vm0, %v11881_v28 }
0x101d   :  { %9844 = vmatpush3.msra.mxu0 %v10132_v61 }
0x101e   :  { %9859 = vmatprep.subr.mxu0 %v11881_v28  ;;  %9846 = vmatmul.mubr.msk.f32.vlgmr.msra.gmra.mxu0 %vm250_vm1, %v11974_v41 }
0x101f   :  { %9860 = vmatpush3.msra.mxu0 %v7904_v17  ;;  %9867 = vmatprep.mubr.msk.f32.mxu0 %vm10317_vm0, %v11881_v28 }
0x1020   :  { %9861 = vmatprep.subr.mxu0 %v11881_v28 }
0x1021   :  { %9862 = vmatpush3.msra.mxu0 %v7903_v59 }
0x1022   :  { %9863 = vmatprep.subr.mxu0 %v11881_v28 }
0x1023   :  { %9864 = vmatpush3.msra.mxu0 %v7902_v60 }
0x1024   :  { %9865 = vmatprep.subr.mxu0 %v11881_v28 }
0x1025   :  { %9866 = vmatpush3.msra.mxu0 %v7901_v18 }
0x1026   :  { %9868 = vmatmul.mubr.msk.f32.vlgmr.msra.gmra.mxu0 %vm250_vm1, %v7894_v7 }
0x1027   :  { %9870 = vmatprep.mubr.msk.f32.mxu0 %vm10317_vm0, %v11881_v28 }
0x102a   :  { %9871 = vmatmul.mubr.msk.f32.gmra.mxu0 %vm250_vm1, %v7895_v10 }
0x102b   :  { %9873 = vmatprep.mubr.msk.f32.mxu0 %vm10317_vm0, %v11881_v28 }
0x102e   :  { %9874 = vmatmul.mubr.msk.f32.gmra.mxu0 %vm250_vm1, %v7896_v3 }
0x102f   :  { %9876 = vmatprep.mubr.msk.f32.mxu0 %vm10317_vm0, %v11881_v28  ;;  %v8208_v28 = vld [vmem:[%s12093_s9] ss:$0 sm:$0xff] }
0x1032   :  { %9877 = vmatmul.mubr.msk.f32.gmra.mxu0 %vm250_vm1, %v7897_v11 }
0x10cd   :  { %v7514_v40 = vpop.f32.mrf.mxu0  ;;  %v7881_v14 = vpop.f32.mrf.mxu1 }
0x10ce   :  { %v7588_v63 = vadd.f32 %v7587_v13, %v7514_v40  ;;  %v7882_v6 = vadd.f32 %v10135_v50, %v7881_v14 }
0x10cf   :  { %v9803_v36 = vpop.f32.mrf.mxu0  ;;  %v9858_v9 = vpop.f32.mrf.mxu1 }
0x10d0   :  { %v7591_v37 = vadd.f32 %v10133_v34, %v7588_v63 }
0x10d2   :  { %v8202_v39 = vmul.f32 -1.442695, %v7591_v37 }
0x10d4   :  { %10068 = vpow2.f32 %v8202_v39 }
0x10d6   :  { %v7664_v42 = vpop.f32.mrf.mxu0 }
0x10d7   :  { %v7735_v46 = vadd.f32 %v7734_v35, %v7664_v42  ;;  %v8019_v55 = vpop.f32.mrf.mxu1 }
0x10d8   :  { %v8020_v56 = vadd.f32 %v8208_v28, %v8019_v55  ;;  %v9825_v0 = vpop.f32.mrf.mxu0 }
0x10d9   :  { %v7738_v48 = vadd.f32 %v10134_v47, %v7735_v46  ;;  %v9881_v49 = vpop.f32.mrf.mxu1 }
0x10da   :  { %8038 = vst [vmem:[#allocation15 + $0x28] sm:$0xff] %v8020_v56 }
0x10db   :  { %v8205_v41 = vmul.f32 -1.442695, %v7738_v48  ;;  %v8024_v43 = vpop.f32.mrf.mxu1 }
0x10dc   :  { %v8025_v44 = vadd.f32 %v8208_v28, %v8024_v43 }
0x10dd   :  { %v9884_v51 = vpop.f32.mrf.mxu1  ;;  %10070 = vpow2.f32 %v8205_v41 }
0x10de   :  { %8039 = vst [vmem:[#allocation15 + $0x30] sm:$0xff] %v8025_v44  ;;  %v7811_v21 = vpop.f32.mrf.mxu0 }
0x10df   :  { %v7812_v12 = vadd.f32 %v10136_v33, %v7811_v21 }
0x10e0   :  { %v9847_v23 = vpop.f32.mrf.mxu0 }
0x10e1   :  { %v10069_v53 = vpop.eup %10068 }
0x10e2   :  { %v7595_v54 = vadd.f32 1.0, %v10069_v53 }
0x10e4   :  { %10072 = vrcp.f32 %v7595_v54 }
0x10e6   :  { %v7999_v57 = vpop.f32.mrf.mxu0 }
0x10e7   :  { %v8000_v20 = vadd.f32 %v8208_v28, %v7999_v57 }
0x10e8   :  { %v9869_v58 = vpop.f32.mrf.mxu0 }
0x10e9   :  { %8034 = vst [vmem:[#allocation15 + $0x8] sm:$0xff] %v8000_v20 }
0x10ea   :  { %v8004_v2 = vpop.f32.mrf.mxu0  ;;  %v10071_v25 = vpop.eup %10070 }
0x10eb   :  { %v8005_v4 = vadd.f32 %v8208_v28, %v8004_v2  ;;  %v7742_v8 = vadd.f32 1.0, %v10071_v25 }
0x10ec   :  { %v9872_v27 = vpop.f32.mrf.mxu0 }
0x10ed   :  { %8035 = vst [vmem:[#allocation15 + $0x10] sm:$0xff] %v8005_v4  ;;  %10074 = vrcp.f32 %v7742_v8 }
0x10ee   :  { %v8009_v1 = vpop.f32.mrf.mxu0 }
0x10ef   :  { %v8010_v29 = vadd.f32 %v8208_v28, %v8009_v1 }
0x10f0   :  { %v9875_v52 = vpop.f32.mrf.mxu0 }
0x10f1   :  { %v10073_v45 = vpop.eup %10072  ;;  %8036 = vst [vmem:[#allocation15 + $0x18] sm:$0xff] %v8010_v29 }
0x10f2   :  { %v7885_v30 = vmul.f32 %v10073_v45, %v7882_v6  ;;  %v8014_v26 = vpop.f32.mrf.mxu0 }
0x10f3   :  { %v8015_v16 = vadd.f32 %v8208_v28, %v8014_v26 }
0x10f4   :  { %v7886_v31 = vadd.f32 %v7885_v30, %v7812_v12  ;;  %v9878_v32 = vpop.f32.mrf.mxu0 }
0x10f5   :  { %8037 = vst [vmem:[#allocation15 + $0x20] sm:$0xff] %v8015_v16 }
0x10f6   :  { %10076 = vtanh.f32 %v7886_v31 }
0x10fa   :  { %v10075_v17 = vpop.eup %10074 }
0x10fb   :  { %v7888_v59 = vsub.f32 1.0, %v10075_v17  ;;  %v7890_v19 = vmul.f32 %v10075_v17, %v12005_v15 }
0x1103   :  { %v10077_v60 = vpop.eup %10076 }
0x1104   :  { %v7889_v18 = vmul.f32 %v10077_v60, %v7888_v59 }
0x1106   :  { %v7891_v22 = vadd.f32 %v7890_v19, %v7889_v18 }
0x1108   :  { %7893 = vst.msk [vmem:[#allocation2 + $0x30] sm:$0xff] %vm250_vm1, %v7891_v22 }
0x110f   :  { %v7900_v24 = vld [vmem:[#allocation2 + $0x30] sm:$0xff] }
0x1110   :  { %9886 = vmatmul.mubr.msk.f32.gmra.mxu1 %vm250_vm1, %v7900_v24 }
0x11d0   :  { %v8029_v5 = vpop.f32.mrf.mxu1 }
0x11d1   :  { %v8030_v61 = vadd.f32 %v8208_v28, %v8029_v5 }
0x11d2   :  { %v9887_v7 = vpop.f32.mrf.mxu1 }
0x11d3   :  { %8040 = vst [vmem:[#allocation15 + $0x38] sm:$0xff] %v8030_v61 }
0x11d4   :  { %10288 = shalt.err (!%p10285_p11)
}
0x11d5   :  { %8052 = dma.vmem_to_hbm [thread:$0]  %s8047_s3, 1024, %s12094_s10, [#allocation5], %s10309_s18, %s10309_s18, %s10310_s19  }
0x11d6   :  { %10305 = dma.done.wait [#allocation5], 1024  }
0x11d7   :  { %10306 = vsyncadd [#allocation5], 4294966272 }
0x11d8   :  { %8056 = vsyncpa [#allocation4], 1 }
0x11d9   :  { %8057 = vsyncpa [#allocation7], 1 }
0x11da   :  { %8058 = vsyncpa [#allocation10], 1 }
0x11db   :  { %8059 = vsyncpa [#allocation13], 1 }
0x11dc   :  { %8060 = vsyncpa [#allocation5], 1 }

</bundles_post_ra>
